<compile_context>
chip_gen: v5e
topology: v5e:2x2
jax: 0.10.0
libtpu: 0.0.40
codegen_flags: <defaults>
</compile_context>

<pallas_src>
import functools

import jax
import jax.numpy as jnp
from jax.experimental import pallas as pl
from jax.experimental.pallas import tpu as pltpu


# ----------------------------------------------------------------------------
# Fused kernel: [bi-LSTM x num_layers] + fc + log_softmax, all in VMEM
# ----------------------------------------------------------------------------
def _bilstm_layer(x_tm, wih, whh_fw, whh_bw, b):
    """One bidirectional LSTM layer.

    x_tm:   (T, B, Din)  time-major input
    wih:    (Din, 8H)    [fw W_ih^T | bw W_ih^T]
    whh_*:  (H, 4H)      W_hh^T per direction
    b:      (1, 8H)      [fw (b_ih+b_hh) | bw (b_ih+b_hh)]
    returns seq_fw (list of T (B,H)), seq_bw (list of T (B,H)), h_fw_last, h_bw_last
    """
    T, B, Din = x_tm.shape
    H = whh_fw.shape[0]
    H4 = 4 * H

    # Hot path #1: one MXU matmul projects the whole sequence for BOTH directions (N = 8H = 256).
    xp = jnp.dot(x_tm.reshape(T * B, Din), wih, preferred_element_type=jnp.float32) + b
    xp = xp.reshape(T, B, 2 * H4)

    def cell(g, c):
        # PyTorch gate order: i, f, g, o
        i_g = jax.nn.sigmoid(g[:, 0 * H:1 * H])
        f_g = jax.nn.sigmoid(g[:, 1 * H:2 * H])
        g_g = jnp.tanh(g[:, 2 * H:3 * H])
        o_g = jax.nn.sigmoid(g[:, 3 * H:4 * H])
        c_new = f_g * c + i_g * g_g
        h_new = o_g * jnp.tanh(c_new)
        return h_new, c_new

    h_fw = jnp.zeros((B, H), jnp.float32)
    c_fw = jnp.zeros((B, H), jnp.float32)
    h_bw = jnp.zeros((B, H), jnp.float32)
    c_bw = jnp.zeros((B, H), jnp.float32)
    seq_fw = [None] * T
    seq_bw = [None] * T

    # Fully unrolled recurrence (T is small and static). Backward direction reads the
    # sequence at t' = T-1-t (no jnp.flip / no HBM copy).
    for t in range(T):
        tb = T - 1 - t
        # Hot path #2: recurrent matmuls on the MXU (weights already transposed).
        g_fw = xp[t, :, :H4] + jnp.dot(h_fw, whh_fw, preferred_element_type=jnp.float32)
        h_fw, c_fw = cell(g_fw, c_fw)
        seq_fw[t] = h_fw

        g_bw = xp[tb, :, H4:] + jnp.dot(h_bw, whh_bw, preferred_element_type=jnp.float32)
        h_bw, c_bw = cell(g_bw, c_bw)
        seq_bw[tb] = h_bw

    return seq_fw, seq_bw, h_fw, h_bw


def fused_model_kernel(num_layers, emb_ref, *refs):
    """refs = [wih, whh_fw, whh_bw, b] * num_layers + [fc_w, fc_b] + [out_ref]."""
    layer_refs = refs[:4 * num_layers]
    fcw_ref, fcb_ref, out_ref = refs[4 * num_layers:]

    T = emb_ref.shape[0]
    x = emb_ref[...].astype(jnp.float32)          # (T, B, Epad), time-major

    h_fw = h_bw = None
    for l in range(num_layers):
        wih = layer_refs[4 * l + 0][...]          # (Din, 8H)
        whh_fw = layer_refs[4 * l + 1][...]       # (H, 4H)
        whh_bw = layer_refs[4 * l + 2][...]       # (H, 4H)
        b = layer_refs[4 * l + 3][...]            # (1, 8H)
        seq_fw, seq_bw, h_fw, h_bw = _bilstm_layer(x, wih, whh_fw, whh_bw, b)
        if l + 1 < num_layers:
            # Next layer's input: (T, B, 2H), built in VMEM, never written to HBM.
            x = jnp.stack(
                [jnp.concatenate([seq_fw[t], seq_bw[t]], axis=-1) for t in range(T)],
                axis=0)
        # TODO(synk): inter-layer dropout is a train-only op in PyTorch; eval forward skips it.

    # h_n[-2] (last-layer forward final) | h_n[-1] (last-layer backward final)
    feat = jnp.concatenate([h_fw, h_bw], axis=-1)                         # (B, 2H)
    logits = jnp.dot(feat, fcw_ref[...], preferred_element_type=jnp.float32) + fcb_ref[...]
    m = jnp.max(logits, axis=-1, keepdims=True)
    z = logits - m
    lse = jnp.log(jnp.sum(jnp.exp(z), axis=-1, keepdims=True))
    out_ref[...] = z - lse


def _full_spec(shape):
    n = len(shape)
    return pl.BlockSpec(tuple(int(s) for s in shape), lambda i, _n=n: (0,) * _n)


# ----------------------------------------------------------------------------
# Parameter init (weights pre-packed / pre-transposed for the kernel)
# ----------------------------------------------------------------------------
def init_params(key, vocab_size, embed_dim, hidden_size, num_layers):
    Ep = ((embed_dim + 127) // 128) * 128          # pad E=100 -> 128 (lane aligned)

    params = {}
    k_emb, key = jax.random.split(key)
    emb = jax.random.normal(k_emb, (vocab_size, embed_dim), jnp.float32)
    params["embedding"] = jnp.pad(emb, ((0, 0), (0, Ep - embed_dim)))

    scale = 1.0 / float(hidden_size) ** 0.5
    layers = []
    for layer in range(num_layers):
        in_dim = embed_dim if layer == 0 else 2 * hidden_size
        in_dim_pad = Ep if layer == 0 else 2 * hidden_size
        wih_t, bias, whh_t = [], [], []
        for _ in range(2):  # forward, backward
            key, k1, k2, k3, k4 = jax.random.split(key, 5)
            w_ih = jax.random.uniform(k1, (4 * hidden_size, in_dim), jnp.float32, -scale, scale)
            w_hh = jax.random.uniform(k2, (4 * hidden_size, hidden_size), jnp.float32, -scale, scale)
            b_ih = jax.random.uniform(k3, (4 * hidden_size,), jnp.float32, -scale, scale)
            b_hh = jax.random.uniform(k4, (4 * hidden_size,), jnp.float32, -scale, scale)
            # pre-transpose + zero-pad the K dim; combine the two biases
            wih_t.append(jnp.pad(w_ih, ((0, 0), (0, in_dim_pad - in_dim))).T)   # (Din_pad, 4H)
            whh_t.append(w_hh.T)                                                # (H, 4H)
            bias.append(b_ih + b_hh)
        layers.append({
            "wih": jnp.concatenate(wih_t, axis=1),       # (Din_pad, 8H)  [fw | bw]
            "whh_fw": whh_t[0],
            "whh_bw": whh_t[1],
            "b": jnp.concatenate(bias)[None, :],         # (1, 8H)
        })
    params["lstm"] = layers

    key, k_w, k_b = jax.random.split(key, 3)
    fc_scale = 1.0 / float(2 * hidden_size) ** 0.5
    params["fc_w"] = jax.random.uniform(k_w, (2, 2 * hidden_size), jnp.float32,
                                        -fc_scale, fc_scale).T               # (2H, 2)
    params["fc_b"] = jax.random.uniform(k_b, (1, 2), jnp.float32, -fc_scale, fc_scale)
    return params


# ----------------------------------------------------------------------------
# Forward pass: one embedding gather + ONE fused pallas_call
# ----------------------------------------------------------------------------
@jax.jit
def forward(params, token_ids):
    num_layers = len(params["lstm"])
    B, T = token_ids.shape

    # Embedding lookup (gather glue, plain JAX), produced directly in time-major layout.
    emb_tm = jnp.take(params["embedding"], token_ids.T, axis=0)    # (T, B, Epad)

    inputs = [emb_tm]
    in_specs = [_full_spec(emb_tm.shape)]
    for lyr in params["lstm"]:
        for name in ("wih", "whh_fw", "whh_bw", "b"):
            inputs.append(lyr[name])
            in_specs.append(_full_spec(lyr[name].shape))
    inputs += [params["fc_w"], params["fc_b"]]
    in_specs += [_full_spec(params["fc_w"].shape), _full_spec(params["fc_b"].shape)]

    return pl.pallas_call(
        functools.partial(fused_model_kernel, num_layers),
        out_shape=jax.ShapeDtypeStruct((B, 2), jnp.float32),
        grid=(1,),
        in_specs=in_specs,
        out_specs=_full_spec((B, 2)),
        compiler_params=pltpu.CompilerParams(dimension_semantics=("arbitrary",)),
    )(*inputs)


if __name__ == "__main__":
    VOCAB = 50
    EMBED = 100
    HIDDEN = 32
    NUM_LAYERS = 2
    B, T = 2, 8

    key = jax.random.PRNGKey(0)
    k_params, k_tokens = jax.random.split(key)
    params = init_params(k_params, VOCAB, EMBED, HIDDEN, NUM_LAYERS)
    token_ids = jax.random.randint(k_tokens, (B, T), 0, VOCAB, dtype=jnp.int32)

    out = forward(params, token_ids)
    out = jax.block_until_ready(out)
    assert out.shape == (B, 2)
    # log_softmax rows must exp-sum to 1
    assert jnp.allclose(jnp.sum(jnp.exp(out), axis=-1), 1.0, atol=1e-5)
    print("KERNEL_OK")
</pallas_src>

<mosaic_0001>
module attributes {stable_mosaic.version = 11 : i64} {
  func.func @fused_model_kernel(%arg0: i32, %arg1: memref<8x2x128xf32, #tpu.memory_space<vmem>>, %arg2: memref<128x256xf32, #tpu.memory_space<vmem>>, %arg3: memref<32x128xf32, #tpu.memory_space<vmem>>, %arg4: memref<32x128xf32, #tpu.memory_space<vmem>>, %arg5: memref<1x256xf32, #tpu.memory_space<vmem>>, %arg6: memref<64x256xf32, #tpu.memory_space<vmem>>, %arg7: memref<32x128xf32, #tpu.memory_space<vmem>>, %arg8: memref<32x128xf32, #tpu.memory_space<vmem>>, %arg9: memref<1x256xf32, #tpu.memory_space<vmem>>, %arg10: memref<64x2xf32, #tpu.memory_space<vmem>>, %arg11: memref<1x2xf32, #tpu.memory_space<vmem>>, %arg12: memref<2x2xf32, #tpu.memory_space<vmem>>) attributes {dimension_semantics = [#tpu.dimension_semantics<arbitrary>], iteration_bounds = array<i64: 1>, scalar_prefetch = 0 : i64, scratch_operands = 0 : i64, tpu.core_type = #tpu.core_type<tc>, window_params = [{pipeline_mode = #tpu.pipeline_mode<synchronous>, transform_indices = @transform_0, window_bounds = array<i64: 8, 2, 128>}, {pipeline_mode = #tpu.pipeline_mode<synchronous>, transform_indices = @transform_1, window_bounds = array<i64: 128, 256>}, {pipeline_mode = #tpu.pipeline_mode<synchronous>, transform_indices = @transform_2, window_bounds = array<i64: 32, 128>}, {pipeline_mode = #tpu.pipeline_mode<synchronous>, transform_indices = @transform_3, window_bounds = array<i64: 32, 128>}, {pipeline_mode = #tpu.pipeline_mode<synchronous>, transform_indices = @transform_4, window_bounds = array<i64: 1, 256>}, {pipeline_mode = #tpu.pipeline_mode<synchronous>, transform_indices = @transform_5, window_bounds = array<i64: 64, 256>}, {pipeline_mode = #tpu.pipeline_mode<synchronous>, transform_indices = @transform_6, window_bounds = array<i64: 32, 128>}, {pipeline_mode = #tpu.pipeline_mode<synchronous>, transform_indices = @transform_7, window_bounds = array<i64: 32, 128>}, {pipeline_mode = #tpu.pipeline_mode<synchronous>, transform_indices = @transform_8, window_bounds = array<i64: 1, 256>}, {pipeline_mode = #tpu.pipeline_mode<synchronous>, transform_indices = @transform_9, window_bounds = array<i64: 64, 2>}, {pipeline_mode = #tpu.pipeline_mode<synchronous>, transform_indices = @transform_10, window_bounds = array<i64: 1, 2>}, {pipeline_mode = #tpu.pipeline_mode<synchronous>, transform_indices = @transform_11, window_bounds = array<i64: 2, 2>}]} {
    %c0 = arith.constant 0 : index
    %c0_0 = arith.constant 0 : index
    %c0_1 = arith.constant 0 : index
    %0 = vector.load %arg1[%c0, %c0_0, %c0_1] : memref<8x2x128xf32, #tpu.memory_space<vmem>>, vector<8x2x128xf32>
    %c0_2 = arith.constant 0 : index
    %c0_3 = arith.constant 0 : index
    %1 = vector.load %arg2[%c0_2, %c0_3] : memref<128x256xf32, #tpu.memory_space<vmem>>, vector<128x256xf32>
    %c0_4 = arith.constant 0 : index
    %c0_5 = arith.constant 0 : index
    %2 = vector.load %arg3[%c0_4, %c0_5] : memref<32x128xf32, #tpu.memory_space<vmem>>, vector<32x128xf32>
    %c0_6 = arith.constant 0 : index
    %c0_7 = arith.constant 0 : index
    %3 = vector.load %arg4[%c0_6, %c0_7] : memref<32x128xf32, #tpu.memory_space<vmem>>, vector<32x128xf32>
    %c0_8 = arith.constant 0 : index
    %c0_9 = arith.constant 0 : index
    %4 = vector.load %arg5[%c0_8, %c0_9] : memref<1x256xf32, #tpu.memory_space<vmem>>, vector<1x256xf32>
    %5 = vector.shape_cast %0 : vector<8x2x128xf32> to vector<16x128xf32>
    %cst = arith.constant dense<0.000000e+00> : vector<16x256xf32>
    %6 = tpu.matmul %5, %1, %cst {dimension_numbers = #tpu.dot_dimension_numbers<[1], [0], [0], [1], [0, 0, 1, 1], [], []>} : vector<16x128xf32>, vector<128x256xf32>, vector<16x256xf32> -> vector<16x256xf32>
    %7 = vector.broadcast %4 : vector<1x256xf32> to vector<16x256xf32>
    %8 = arith.addf %6, %7 : vector<16x256xf32>
    %9 = vector.shape_cast %8 : vector<16x256xf32> to vector<8x2x256xf32>
    %cst_10 = arith.constant 0.000000e+00 : f32
    %10 = vector.broadcast %cst_10 : f32 to vector<2x32xf32>
    %cst_11 = arith.constant 0.000000e+00 : f32
    %11 = vector.broadcast %cst_11 : f32 to vector<2x32xf32>
    %cst_12 = arith.constant 0.000000e+00 : f32
    %12 = vector.broadcast %cst_12 : f32 to vector<2x32xf32>
    %cst_13 = arith.constant 0.000000e+00 : f32
    %13 = vector.broadcast %cst_13 : f32 to vector<2x32xf32>
    %14 = vector.extract_strided_slice %9 {offsets = [0, 0, 0], sizes = [1, 2, 128], strides = [1, 1, 1]} : vector<8x2x256xf32> to vector<1x2x128xf32>
    %15 = vector.shape_cast %14 : vector<1x2x128xf32> to vector<2x128xf32>
    %cst_14 = arith.constant dense<0.000000e+00> : vector<2x128xf32>
    %16 = tpu.matmul %10, %2, %cst_14 {dimension_numbers = #tpu.dot_dimension_numbers<[1], [0], [0], [1], [0, 0, 1, 1], [], []>} : vector<2x32xf32>, vector<32x128xf32>, vector<2x128xf32> -> vector<2x128xf32>
    %17 = arith.addf %15, %16 : vector<2x128xf32>
    %18 = vector.extract_strided_slice %17 {offsets = [0, 0], sizes = [2, 32], strides = [1, 1]} : vector<2x128xf32> to vector<2x32xf32>
    %19 = arith.negf %18 : vector<2x32xf32>
    %20 = math.exp %19 : vector<2x32xf32>
    %cst_15 = arith.constant 1.000000e+00 : f32
    %21 = vector.broadcast %cst_15 : f32 to vector<2x32xf32>
    %22 = arith.addf %21, %20 : vector<2x32xf32>
    %23 = arith.divf %21, %22 : vector<2x32xf32>
    %24 = vector.extract_strided_slice %17 {offsets = [0, 32], sizes = [2, 32], strides = [1, 1]} : vector<2x128xf32> to vector<2x32xf32>
    %25 = arith.negf %24 : vector<2x32xf32>
    %26 = math.exp %25 : vector<2x32xf32>
    %cst_16 = arith.constant 1.000000e+00 : f32
    %27 = vector.broadcast %cst_16 : f32 to vector<2x32xf32>
    %28 = arith.addf %27, %26 : vector<2x32xf32>
    %29 = arith.divf %27, %28 : vector<2x32xf32>
    %30 = vector.extract_strided_slice %17 {offsets = [0, 64], sizes = [2, 32], strides = [1, 1]} : vector<2x128xf32> to vector<2x32xf32>
    %31 = math.tanh %30 : vector<2x32xf32>
    %32 = vector.extract_strided_slice %17 {offsets = [0, 96], sizes = [2, 32], strides = [1, 1]} : vector<2x128xf32> to vector<2x32xf32>
    %33 = arith.negf %32 : vector<2x32xf32>
    %34 = math.exp %33 : vector<2x32xf32>
    %cst_17 = arith.constant 1.000000e+00 : f32
    %35 = vector.broadcast %cst_17 : f32 to vector<2x32xf32>
    %36 = arith.addf %35, %34 : vector<2x32xf32>
    %37 = arith.divf %35, %36 : vector<2x32xf32>
    %38 = arith.mulf %29, %11 : vector<2x32xf32>
    %39 = arith.mulf %23, %31 : vector<2x32xf32>
    %40 = arith.addf %38, %39 : vector<2x32xf32>
    %41 = math.tanh %40 : vector<2x32xf32>
    %42 = arith.mulf %37, %41 : vector<2x32xf32>
    %43 = vector.extract_strided_slice %9 {offsets = [7, 0, 128], sizes = [1, 2, 128], strides = [1, 1, 1]} : vector<8x2x256xf32> to vector<1x2x128xf32>
    %44 = vector.shape_cast %43 : vector<1x2x128xf32> to vector<2x128xf32>
    %cst_18 = arith.constant dense<0.000000e+00> : vector<2x128xf32>
    %45 = tpu.matmul %12, %3, %cst_18 {dimension_numbers = #tpu.dot_dimension_numbers<[1], [0], [0], [1], [0, 0, 1, 1], [], []>} : vector<2x32xf32>, vector<32x128xf32>, vector<2x128xf32> -> vector<2x128xf32>
    %46 = arith.addf %44, %45 : vector<2x128xf32>
    %47 = vector.extract_strided_slice %46 {offsets = [0, 0], sizes = [2, 32], strides = [1, 1]} : vector<2x128xf32> to vector<2x32xf32>
    %48 = arith.negf %47 : vector<2x32xf32>
    %49 = math.exp %48 : vector<2x32xf32>
    %cst_19 = arith.constant 1.000000e+00 : f32
    %50 = vector.broadcast %cst_19 : f32 to vector<2x32xf32>
    %51 = arith.addf %50, %49 : vector<2x32xf32>
    %52 = arith.divf %50, %51 : vector<2x32xf32>
    %53 = vector.extract_strided_slice %46 {offsets = [0, 32], sizes = [2, 32], strides = [1, 1]} : vector<2x128xf32> to vector<2x32xf32>
    %54 = arith.negf %53 : vector<2x32xf32>
    %55 = math.exp %54 : vector<2x32xf32>
    %cst_20 = arith.constant 1.000000e+00 : f32
    %56 = vector.broadcast %cst_20 : f32 to vector<2x32xf32>
    %57 = arith.addf %56, %55 : vector<2x32xf32>
    %58 = arith.divf %56, %57 : vector<2x32xf32>
    %59 = vector.extract_strided_slice %46 {offsets = [0, 64], sizes = [2, 32], strides = [1, 1]} : vector<2x128xf32> to vector<2x32xf32>
    %60 = math.tanh %59 : vector<2x32xf32>
    %61 = vector.extract_strided_slice %46 {offsets = [0, 96], sizes = [2, 32], strides = [1, 1]} : vector<2x128xf32> to vector<2x32xf32>
    %62 = arith.negf %61 : vector<2x32xf32>
    %63 = math.exp %62 : vector<2x32xf32>
    %cst_21 = arith.constant 1.000000e+00 : f32
    %64 = vector.broadcast %cst_21 : f32 to vector<2x32xf32>
    %65 = arith.addf %64, %63 : vector<2x32xf32>
    %66 = arith.divf %64, %65 : vector<2x32xf32>
    %67 = arith.mulf %58, %13 : vector<2x32xf32>
    %68 = arith.mulf %52, %60 : vector<2x32xf32>
    %69 = arith.addf %67, %68 : vector<2x32xf32>
    %70 = math.tanh %69 : vector<2x32xf32>
    %71 = arith.mulf %66, %70 : vector<2x32xf32>
    %72 = vector.extract_strided_slice %9 {offsets = [1, 0, 0], sizes = [1, 2, 128], strides = [1, 1, 1]} : vector<8x2x256xf32> to vector<1x2x128xf32>
    %73 = vector.shape_cast %72 : vector<1x2x128xf32> to vector<2x128xf32>
    %cst_22 = arith.constant dense<0.000000e+00> : vector<2x128xf32>
    %74 = tpu.matmul %42, %2, %cst_22 {dimension_numbers = #tpu.dot_dimension_numbers<[1], [0], [0], [1], [0, 0, 1, 1], [], []>} : vector<2x32xf32>, vector<32x128xf32>, vector<2x128xf32> -> vector<2x128xf32>
    %75 = arith.addf %73, %74 : vector<2x128xf32>
    %76 = vector.extract_strided_slice %75 {offsets = [0, 0], sizes = [2, 32], strides = [1, 1]} : vector<2x128xf32> to vector<2x32xf32>
    %77 = arith.negf %76 : vector<2x32xf32>
    %78 = math.exp %77 : vector<2x32xf32>
    %cst_23 = arith.constant 1.000000e+00 : f32
    %79 = vector.broadcast %cst_23 : f32 to vector<2x32xf32>
    %80 = arith.addf %79, %78 : vector<2x32xf32>
    %81 = arith.divf %79, %80 : vector<2x32xf32>
    %82 = vector.extract_strided_slice %75 {offsets = [0, 32], sizes = [2, 32], strides = [1, 1]} : vector<2x128xf32> to vector<2x32xf32>
    %83 = arith.negf %82 : vector<2x32xf32>
    %84 = math.exp %83 : vector<2x32xf32>
    %cst_24 = arith.constant 1.000000e+00 : f32
    %85 = vector.broadcast %cst_24 : f32 to vector<2x32xf32>
    %86 = arith.addf %85, %84 : vector<2x32xf32>
    %87 = arith.divf %85, %86 : vector<2x32xf32>
    %88 = vector.extract_strided_slice %75 {offsets = [0, 64], sizes = [2, 32], strides = [1, 1]} : vector<2x128xf32> to vector<2x32xf32>
    %89 = math.tanh %88 : vector<2x32xf32>
    %90 = vector.extract_strided_slice %75 {offsets = [0, 96], sizes = [2, 32], strides = [1, 1]} : vector<2x128xf32> to vector<2x32xf32>
    %91 = arith.negf %90 : vector<2x32xf32>
    %92 = math.exp %91 : vector<2x32xf32>
    %cst_25 = arith.constant 1.000000e+00 : f32
    %93 = vector.broadcast %cst_25 : f32 to vector<2x32xf32>
    %94 = arith.addf %93, %92 : vector<2x32xf32>
    %95 = arith.divf %93, %94 : vector<2x32xf32>
    %96 = arith.mulf %87, %40 : vector<2x32xf32>
    %97 = arith.mulf %81, %89 : vector<2x32xf32>
    %98 = arith.addf %96, %97 : vector<2x32xf32>
    %99 = math.tanh %98 : vector<2x32xf32>
    %100 = arith.mulf %95, %99 : vector<2x32xf32>
    %101 = vector.extract_strided_slice %9 {offsets = [6, 0, 128], sizes = [1, 2, 128], strides = [1, 1, 1]} : vector<8x2x256xf32> to vector<1x2x128xf32>
    %102 = vector.shape_cast %101 : vector<1x2x128xf32> to vector<2x128xf32>
    %cst_26 = arith.constant dense<0.000000e+00> : vector<2x128xf32>
    %103 = tpu.matmul %71, %3, %cst_26 {dimension_numbers = #tpu.dot_dimension_numbers<[1], [0], [0], [1], [0, 0, 1, 1], [], []>} : vector<2x32xf32>, vector<32x128xf32>, vector<2x128xf32> -> vector<2x128xf32>
    %104 = arith.addf %102, %103 : vector<2x128xf32>
    %105 = vector.extract_strided_slice %104 {offsets = [0, 0], sizes = [2, 32], strides = [1, 1]} : vector<2x128xf32> to vector<2x32xf32>
    %106 = arith.negf %105 : vector<2x32xf32>
    %107 = math.exp %106 : vector<2x32xf32>
    %cst_27 = arith.constant 1.000000e+00 : f32
    %108 = vector.broadcast %cst_27 : f32 to vector<2x32xf32>
    %109 = arith.addf %108, %107 : vector<2x32xf32>
    %110 = arith.divf %108, %109 : vector<2x32xf32>
    %111 = vector.extract_strided_slice %104 {offsets = [0, 32], sizes = [2, 32], strides = [1, 1]} : vector<2x128xf32> to vector<2x32xf32>
    %112 = arith.negf %111 : vector<2x32xf32>
    %113 = math.exp %112 : vector<2x32xf32>
    %cst_28 = arith.constant 1.000000e+00 : f32
    %114 = vector.broadcast %cst_28 : f32 to vector<2x32xf32>
    %115 = arith.addf %114, %113 : vector<2x32xf32>
    %116 = arith.divf %114, %115 : vector<2x32xf32>
    %117 = vector.extract_strided_slice %104 {offsets = [0, 64], sizes = [2, 32], strides = [1, 1]} : vector<2x128xf32> to vector<2x32xf32>
    %118 = math.tanh %117 : vector<2x32xf32>
    %119 = vector.extract_strided_slice %104 {offsets = [0, 96], sizes = [2, 32], strides = [1, 1]} : vector<2x128xf32> to vector<2x32xf32>
    %120 = arith.negf %119 : vector<2x32xf32>
    %121 = math.exp %120 : vector<2x32xf32>
    %cst_29 = arith.constant 1.000000e+00 : f32
    %122 = vector.broadcast %cst_29 : f32 to vector<2x32xf32>
    %123 = arith.addf %122, %121 : vector<2x32xf32>
    %124 = arith.divf %122, %123 : vector<2x32xf32>
    %125 = arith.mulf %116, %69 : vector<2x32xf32>
    %126 = arith.mulf %110, %118 : vector<2x32xf32>
    %127 = arith.addf %125, %126 : vector<2x32xf32>
    %128 = math.tanh %127 : vector<2x32xf32>
    %129 = arith.mulf %124, %128 : vector<2x32xf32>
    %130 = vector.extract_strided_slice %9 {offsets = [2, 0, 0], sizes = [1, 2, 128], strides = [1, 1, 1]} : vector<8x2x256xf32> to vector<1x2x128xf32>
    %131 = vector.shape_cast %130 : vector<1x2x128xf32> to vector<2x128xf32>
    %cst_30 = arith.constant dense<0.000000e+00> : vector<2x128xf32>
    %132 = tpu.matmul %100, %2, %cst_30 {dimension_numbers = #tpu.dot_dimension_numbers<[1], [0], [0], [1], [0, 0, 1, 1], [], []>} : vector<2x32xf32>, vector<32x128xf32>, vector<2x128xf32> -> vector<2x128xf32>
    %133 = arith.addf %131, %132 : vector<2x128xf32>
    %134 = vector.extract_strided_slice %133 {offsets = [0, 0], sizes = [2, 32], strides = [1, 1]} : vector<2x128xf32> to vector<2x32xf32>
    %135 = arith.negf %134 : vector<2x32xf32>
    %136 = math.exp %135 : vector<2x32xf32>
    %cst_31 = arith.constant 1.000000e+00 : f32
    %137 = vector.broadcast %cst_31 : f32 to vector<2x32xf32>
    %138 = arith.addf %137, %136 : vector<2x32xf32>
    %139 = arith.divf %137, %138 : vector<2x32xf32>
    %140 = vector.extract_strided_slice %133 {offsets = [0, 32], sizes = [2, 32], strides = [1, 1]} : vector<2x128xf32> to vector<2x32xf32>
    %141 = arith.negf %140 : vector<2x32xf32>
    %142 = math.exp %141 : vector<2x32xf32>
    %cst_32 = arith.constant 1.000000e+00 : f32
    %143 = vector.broadcast %cst_32 : f32 to vector<2x32xf32>
    %144 = arith.addf %143, %142 : vector<2x32xf32>
    %145 = arith.divf %143, %144 : vector<2x32xf32>
    %146 = vector.extract_strided_slice %133 {offsets = [0, 64], sizes = [2, 32], strides = [1, 1]} : vector<2x128xf32> to vector<2x32xf32>
    %147 = math.tanh %146 : vector<2x32xf32>
    %148 = vector.extract_strided_slice %133 {offsets = [0, 96], sizes = [2, 32], strides = [1, 1]} : vector<2x128xf32> to vector<2x32xf32>
    %149 = arith.negf %148 : vector<2x32xf32>
    %150 = math.exp %149 : vector<2x32xf32>
    %cst_33 = arith.constant 1.000000e+00 : f32
    %151 = vector.broadcast %cst_33 : f32 to vector<2x32xf32>
    %152 = arith.addf %151, %150 : vector<2x32xf32>
    %153 = arith.divf %151, %152 : vector<2x32xf32>
    %154 = arith.mulf %145, %98 : vector<2x32xf32>
    %155 = arith.mulf %139, %147 : vector<2x32xf32>
    %156 = arith.addf %154, %155 : vector<2x32xf32>
    %157 = math.tanh %156 : vector<2x32xf32>
    %158 = arith.mulf %153, %157 : vector<2x32xf32>
    %159 = vector.extract_strided_slice %9 {offsets = [5, 0, 128], sizes = [1, 2, 128], strides = [1, 1, 1]} : vector<8x2x256xf32> to vector<1x2x128xf32>
    %160 = vector.shape_cast %159 : vector<1x2x128xf32> to vector<2x128xf32>
    %cst_34 = arith.constant dense<0.000000e+00> : vector<2x128xf32>
    %161 = tpu.matmul %129, %3, %cst_34 {dimension_numbers = #tpu.dot_dimension_numbers<[1], [0], [0], [1], [0, 0, 1, 1], [], []>} : vector<2x32xf32>, vector<32x128xf32>, vector<2x128xf32> -> vector<2x128xf32>
    %162 = arith.addf %160, %161 : vector<2x128xf32>
    %163 = vector.extract_strided_slice %162 {offsets = [0, 0], sizes = [2, 32], strides = [1, 1]} : vector<2x128xf32> to vector<2x32xf32>
    %164 = arith.negf %163 : vector<2x32xf32>
    %165 = math.exp %164 : vector<2x32xf32>
    %cst_35 = arith.constant 1.000000e+00 : f32
    %166 = vector.broadcast %cst_35 : f32 to vector<2x32xf32>
    %167 = arith.addf %166, %165 : vector<2x32xf32>
    %168 = arith.divf %166, %167 : vector<2x32xf32>
    %169 = vector.extract_strided_slice %162 {offsets = [0, 32], sizes = [2, 32], strides = [1, 1]} : vector<2x128xf32> to vector<2x32xf32>
    %170 = arith.negf %169 : vector<2x32xf32>
    %171 = math.exp %170 : vector<2x32xf32>
    %cst_36 = arith.constant 1.000000e+00 : f32
    %172 = vector.broadcast %cst_36 : f32 to vector<2x32xf32>
    %173 = arith.addf %172, %171 : vector<2x32xf32>
    %174 = arith.divf %172, %173 : vector<2x32xf32>
    %175 = vector.extract_strided_slice %162 {offsets = [0, 64], sizes = [2, 32], strides = [1, 1]} : vector<2x128xf32> to vector<2x32xf32>
    %176 = math.tanh %175 : vector<2x32xf32>
    %177 = vector.extract_strided_slice %162 {offsets = [0, 96], sizes = [2, 32], strides = [1, 1]} : vector<2x128xf32> to vector<2x32xf32>
    %178 = arith.negf %177 : vector<2x32xf32>
    %179 = math.exp %178 : vector<2x32xf32>
    %cst_37 = arith.constant 1.000000e+00 : f32
    %180 = vector.broadcast %cst_37 : f32 to vector<2x32xf32>
    %181 = arith.addf %180, %179 : vector<2x32xf32>
    %182 = arith.divf %180, %181 : vector<2x32xf32>
    %183 = arith.mulf %174, %127 : vector<2x32xf32>
    %184 = arith.mulf %168, %176 : vector<2x32xf32>
    %185 = arith.addf %183, %184 : vector<2x32xf32>
    %186 = math.tanh %185 : vector<2x32xf32>
    %187 = arith.mulf %182, %186 : vector<2x32xf32>
    %188 = vector.extract_strided_slice %9 {offsets = [3, 0, 0], sizes = [1, 2, 128], strides = [1, 1, 1]} : vector<8x2x256xf32> to vector<1x2x128xf32>
    %189 = vector.shape_cast %188 : vector<1x2x128xf32> to vector<2x128xf32>
    %cst_38 = arith.constant dense<0.000000e+00> : vector<2x128xf32>
    %190 = tpu.matmul %158, %2, %cst_38 {dimension_numbers = #tpu.dot_dimension_numbers<[1], [0], [0], [1], [0, 0, 1, 1], [], []>} : vector<2x32xf32>, vector<32x128xf32>, vector<2x128xf32> -> vector<2x128xf32>
    %191 = arith.addf %189, %190 : vector<2x128xf32>
    %192 = vector.extract_strided_slice %191 {offsets = [0, 0], sizes = [2, 32], strides = [1, 1]} : vector<2x128xf32> to vector<2x32xf32>
    %193 = arith.negf %192 : vector<2x32xf32>
    %194 = math.exp %193 : vector<2x32xf32>
    %cst_39 = arith.constant 1.000000e+00 : f32
    %195 = vector.broadcast %cst_39 : f32 to vector<2x32xf32>
    %196 = arith.addf %195, %194 : vector<2x32xf32>
    %197 = arith.divf %195, %196 : vector<2x32xf32>
    %198 = vector.extract_strided_slice %191 {offsets = [0, 32], sizes = [2, 32], strides = [1, 1]} : vector<2x128xf32> to vector<2x32xf32>
    %199 = arith.negf %198 : vector<2x32xf32>
    %200 = math.exp %199 : vector<2x32xf32>
    %cst_40 = arith.constant 1.000000e+00 : f32
    %201 = vector.broadcast %cst_40 : f32 to vector<2x32xf32>
    %202 = arith.addf %201, %200 : vector<2x32xf32>
    %203 = arith.divf %201, %202 : vector<2x32xf32>
    %204 = vector.extract_strided_slice %191 {offsets = [0, 64], sizes = [2, 32], strides = [1, 1]} : vector<2x128xf32> to vector<2x32xf32>
    %205 = math.tanh %204 : vector<2x32xf32>
    %206 = vector.extract_strided_slice %191 {offsets = [0, 96], sizes = [2, 32], strides = [1, 1]} : vector<2x128xf32> to vector<2x32xf32>
    %207 = arith.negf %206 : vector<2x32xf32>
    %208 = math.exp %207 : vector<2x32xf32>
    %cst_41 = arith.constant 1.000000e+00 : f32
    %209 = vector.broadcast %cst_41 : f32 to vector<2x32xf32>
    %210 = arith.addf %209, %208 : vector<2x32xf32>
    %211 = arith.divf %209, %210 : vector<2x32xf32>
    %212 = arith.mulf %203, %156 : vector<2x32xf32>
    %213 = arith.mulf %197, %205 : vector<2x32xf32>
    %214 = arith.addf %212, %213 : vector<2x32xf32>
    %215 = math.tanh %214 : vector<2x32xf32>
    %216 = arith.mulf %211, %215 : vector<2x32xf32>
    %217 = vector.extract_strided_slice %9 {offsets = [4, 0, 128], sizes = [1, 2, 128], strides = [1, 1, 1]} : vector<8x2x256xf32> to vector<1x2x128xf32>
    %218 = vector.shape_cast %217 : vector<1x2x128xf32> to vector<2x128xf32>
    %cst_42 = arith.constant dense<0.000000e+00> : vector<2x128xf32>
    %219 = tpu.matmul %187, %3, %cst_42 {dimension_numbers = #tpu.dot_dimension_numbers<[1], [0], [0], [1], [0, 0, 1, 1], [], []>} : vector<2x32xf32>, vector<32x128xf32>, vector<2x128xf32> -> vector<2x128xf32>
    %220 = arith.addf %218, %219 : vector<2x128xf32>
    %221 = vector.extract_strided_slice %220 {offsets = [0, 0], sizes = [2, 32], strides = [1, 1]} : vector<2x128xf32> to vector<2x32xf32>
    %222 = arith.negf %221 : vector<2x32xf32>
    %223 = math.exp %222 : vector<2x32xf32>
    %cst_43 = arith.constant 1.000000e+00 : f32
    %224 = vector.broadcast %cst_43 : f32 to vector<2x32xf32>
    %225 = arith.addf %224, %223 : vector<2x32xf32>
    %226 = arith.divf %224, %225 : vector<2x32xf32>
    %227 = vector.extract_strided_slice %220 {offsets = [0, 32], sizes = [2, 32], strides = [1, 1]} : vector<2x128xf32> to vector<2x32xf32>
    %228 = arith.negf %227 : vector<2x32xf32>
    %229 = math.exp %228 : vector<2x32xf32>
    %cst_44 = arith.constant 1.000000e+00 : f32
    %230 = vector.broadcast %cst_44 : f32 to vector<2x32xf32>
    %231 = arith.addf %230, %229 : vector<2x32xf32>
    %232 = arith.divf %230, %231 : vector<2x32xf32>
    %233 = vector.extract_strided_slice %220 {offsets = [0, 64], sizes = [2, 32], strides = [1, 1]} : vector<2x128xf32> to vector<2x32xf32>
    %234 = math.tanh %233 : vector<2x32xf32>
    %235 = vector.extract_strided_slice %220 {offsets = [0, 96], sizes = [2, 32], strides = [1, 1]} : vector<2x128xf32> to vector<2x32xf32>
    %236 = arith.negf %235 : vector<2x32xf32>
    %237 = math.exp %236 : vector<2x32xf32>
    %cst_45 = arith.constant 1.000000e+00 : f32
    %238 = vector.broadcast %cst_45 : f32 to vector<2x32xf32>
    %239 = arith.addf %238, %237 : vector<2x32xf32>
    %240 = arith.divf %238, %239 : vector<2x32xf32>
    %241 = arith.mulf %232, %185 : vector<2x32xf32>
    %242 = arith.mulf %226, %234 : vector<2x32xf32>
    %243 = arith.addf %241, %242 : vector<2x32xf32>
    %244 = math.tanh %243 : vector<2x32xf32>
    %245 = arith.mulf %240, %244 : vector<2x32xf32>
    %246 = vector.extract_strided_slice %9 {offsets = [4, 0, 0], sizes = [1, 2, 128], strides = [1, 1, 1]} : vector<8x2x256xf32> to vector<1x2x128xf32>
    %247 = vector.shape_cast %246 : vector<1x2x128xf32> to vector<2x128xf32>
    %cst_46 = arith.constant dense<0.000000e+00> : vector<2x128xf32>
    %248 = tpu.matmul %216, %2, %cst_46 {dimension_numbers = #tpu.dot_dimension_numbers<[1], [0], [0], [1], [0, 0, 1, 1], [], []>} : vector<2x32xf32>, vector<32x128xf32>, vector<2x128xf32> -> vector<2x128xf32>
    %249 = arith.addf %247, %248 : vector<2x128xf32>
    %250 = vector.extract_strided_slice %249 {offsets = [0, 0], sizes = [2, 32], strides = [1, 1]} : vector<2x128xf32> to vector<2x32xf32>
    %251 = arith.negf %250 : vector<2x32xf32>
    %252 = math.exp %251 : vector<2x32xf32>
    %cst_47 = arith.constant 1.000000e+00 : f32
    %253 = vector.broadcast %cst_47 : f32 to vector<2x32xf32>
    %254 = arith.addf %253, %252 : vector<2x32xf32>
    %255 = arith.divf %253, %254 : vector<2x32xf32>
    %256 = vector.extract_strided_slice %249 {offsets = [0, 32], sizes = [2, 32], strides = [1, 1]} : vector<2x128xf32> to vector<2x32xf32>
    %257 = arith.negf %256 : vector<2x32xf32>
    %258 = math.exp %257 : vector<2x32xf32>
    %cst_48 = arith.constant 1.000000e+00 : f32
    %259 = vector.broadcast %cst_48 : f32 to vector<2x32xf32>
    %260 = arith.addf %259, %258 : vector<2x32xf32>
    %261 = arith.divf %259, %260 : vector<2x32xf32>
    %262 = vector.extract_strided_slice %249 {offsets = [0, 64], sizes = [2, 32], strides = [1, 1]} : vector<2x128xf32> to vector<2x32xf32>
    %263 = math.tanh %262 : vector<2x32xf32>
    %264 = vector.extract_strided_slice %249 {offsets = [0, 96], sizes = [2, 32], strides = [1, 1]} : vector<2x128xf32> to vector<2x32xf32>
    %265 = arith.negf %264 : vector<2x32xf32>
    %266 = math.exp %265 : vector<2x32xf32>
    %cst_49 = arith.constant 1.000000e+00 : f32
    %267 = vector.broadcast %cst_49 : f32 to vector<2x32xf32>
    %268 = arith.addf %267, %266 : vector<2x32xf32>
    %269 = arith.divf %267, %268 : vector<2x32xf32>
    %270 = arith.mulf %261, %214 : vector<2x32xf32>
    %271 = arith.mulf %255, %263 : vector<2x32xf32>
    %272 = arith.addf %270, %271 : vector<2x32xf32>
    %273 = math.tanh %272 : vector<2x32xf32>
    %274 = arith.mulf %269, %273 : vector<2x32xf32>
    %275 = vector.extract_strided_slice %9 {offsets = [3, 0, 128], sizes = [1, 2, 128], strides = [1, 1, 1]} : vector<8x2x256xf32> to vector<1x2x128xf32>
    %276 = vector.shape_cast %275 : vector<1x2x128xf32> to vector<2x128xf32>
    %cst_50 = arith.constant dense<0.000000e+00> : vector<2x128xf32>
    %277 = tpu.matmul %245, %3, %cst_50 {dimension_numbers = #tpu.dot_dimension_numbers<[1], [0], [0], [1], [0, 0, 1, 1], [], []>} : vector<2x32xf32>, vector<32x128xf32>, vector<2x128xf32> -> vector<2x128xf32>
    %278 = arith.addf %276, %277 : vector<2x128xf32>
    %279 = vector.extract_strided_slice %278 {offsets = [0, 0], sizes = [2, 32], strides = [1, 1]} : vector<2x128xf32> to vector<2x32xf32>
    %280 = arith.negf %279 : vector<2x32xf32>
    %281 = math.exp %280 : vector<2x32xf32>
    %cst_51 = arith.constant 1.000000e+00 : f32
    %282 = vector.broadcast %cst_51 : f32 to vector<2x32xf32>
    %283 = arith.addf %282, %281 : vector<2x32xf32>
    %284 = arith.divf %282, %283 : vector<2x32xf32>
    %285 = vector.extract_strided_slice %278 {offsets = [0, 32], sizes = [2, 32], strides = [1, 1]} : vector<2x128xf32> to vector<2x32xf32>
    %286 = arith.negf %285 : vector<2x32xf32>
    %287 = math.exp %286 : vector<2x32xf32>
    %cst_52 = arith.constant 1.000000e+00 : f32
    %288 = vector.broadcast %cst_52 : f32 to vector<2x32xf32>
    %289 = arith.addf %288, %287 : vector<2x32xf32>
    %290 = arith.divf %288, %289 : vector<2x32xf32>
    %291 = vector.extract_strided_slice %278 {offsets = [0, 64], sizes = [2, 32], strides = [1, 1]} : vector<2x128xf32> to vector<2x32xf32>
    %292 = math.tanh %291 : vector<2x32xf32>
    %293 = vector.extract_strided_slice %278 {offsets = [0, 96], sizes = [2, 32], strides = [1, 1]} : vector<2x128xf32> to vector<2x32xf32>
    %294 = arith.negf %293 : vector<2x32xf32>
    %295 = math.exp %294 : vector<2x32xf32>
    %cst_53 = arith.constant 1.000000e+00 : f32
    %296 = vector.broadcast %cst_53 : f32 to vector<2x32xf32>
    %297 = arith.addf %296, %295 : vector<2x32xf32>
    %298 = arith.divf %296, %297 : vector<2x32xf32>
    %299 = arith.mulf %290, %243 : vector<2x32xf32>
    %300 = arith.mulf %284, %292 : vector<2x32xf32>
    %301 = arith.addf %299, %300 : vector<2x32xf32>
    %302 = math.tanh %301 : vector<2x32xf32>
    %303 = arith.mulf %298, %302 : vector<2x32xf32>
    %304 = vector.extract_strided_slice %9 {offsets = [5, 0, 0], sizes = [1, 2, 128], strides = [1, 1, 1]} : vector<8x2x256xf32> to vector<1x2x128xf32>
    %305 = vector.shape_cast %304 : vector<1x2x128xf32> to vector<2x128xf32>
    %cst_54 = arith.constant dense<0.000000e+00> : vector<2x128xf32>
    %306 = tpu.matmul %274, %2, %cst_54 {dimension_numbers = #tpu.dot_dimension_numbers<[1], [0], [0], [1], [0, 0, 1, 1], [], []>} : vector<2x32xf32>, vector<32x128xf32>, vector<2x128xf32> -> vector<2x128xf32>
    %307 = arith.addf %305, %306 : vector<2x128xf32>
    %308 = vector.extract_strided_slice %307 {offsets = [0, 0], sizes = [2, 32], strides = [1, 1]} : vector<2x128xf32> to vector<2x32xf32>
    %309 = arith.negf %308 : vector<2x32xf32>
    %310 = math.exp %309 : vector<2x32xf32>
    %cst_55 = arith.constant 1.000000e+00 : f32
    %311 = vector.broadcast %cst_55 : f32 to vector<2x32xf32>
    %312 = arith.addf %311, %310 : vector<2x32xf32>
    %313 = arith.divf %311, %312 : vector<2x32xf32>
    %314 = vector.extract_strided_slice %307 {offsets = [0, 32], sizes = [2, 32], strides = [1, 1]} : vector<2x128xf32> to vector<2x32xf32>
    %315 = arith.negf %314 : vector<2x32xf32>
    %316 = math.exp %315 : vector<2x32xf32>
    %cst_56 = arith.constant 1.000000e+00 : f32
    %317 = vector.broadcast %cst_56 : f32 to vector<2x32xf32>
    %318 = arith.addf %317, %316 : vector<2x32xf32>
    %319 = arith.divf %317, %318 : vector<2x32xf32>
    %320 = vector.extract_strided_slice %307 {offsets = [0, 64], sizes = [2, 32], strides = [1, 1]} : vector<2x128xf32> to vector<2x32xf32>
    %321 = math.tanh %320 : vector<2x32xf32>
    %322 = vector.extract_strided_slice %307 {offsets = [0, 96], sizes = [2, 32], strides = [1, 1]} : vector<2x128xf32> to vector<2x32xf32>
    %323 = arith.negf %322 : vector<2x32xf32>
    %324 = math.exp %323 : vector<2x32xf32>
    %cst_57 = arith.constant 1.000000e+00 : f32
    %325 = vector.broadcast %cst_57 : f32 to vector<2x32xf32>
    %326 = arith.addf %325, %324 : vector<2x32xf32>
    %327 = arith.divf %325, %326 : vector<2x32xf32>
    %328 = arith.mulf %319, %272 : vector<2x32xf32>
    %329 = arith.mulf %313, %321 : vector<2x32xf32>
    %330 = arith.addf %328, %329 : vector<2x32xf32>
    %331 = math.tanh %330 : vector<2x32xf32>
    %332 = arith.mulf %327, %331 : vector<2x32xf32>
    %333 = vector.extract_strided_slice %9 {offsets = [2, 0, 128], sizes = [1, 2, 128], strides = [1, 1, 1]} : vector<8x2x256xf32> to vector<1x2x128xf32>
    %334 = vector.shape_cast %333 : vector<1x2x128xf32> to vector<2x128xf32>
    %cst_58 = arith.constant dense<0.000000e+00> : vector<2x128xf32>
    %335 = tpu.matmul %303, %3, %cst_58 {dimension_numbers = #tpu.dot_dimension_numbers<[1], [0], [0], [1], [0, 0, 1, 1], [], []>} : vector<2x32xf32>, vector<32x128xf32>, vector<2x128xf32> -> vector<2x128xf32>
    %336 = arith.addf %334, %335 : vector<2x128xf32>
    %337 = vector.extract_strided_slice %336 {offsets = [0, 0], sizes = [2, 32], strides = [1, 1]} : vector<2x128xf32> to vector<2x32xf32>
    %338 = arith.negf %337 : vector<2x32xf32>
    %339 = math.exp %338 : vector<2x32xf32>
    %cst_59 = arith.constant 1.000000e+00 : f32
    %340 = vector.broadcast %cst_59 : f32 to vector<2x32xf32>
    %341 = arith.addf %340, %339 : vector<2x32xf32>
    %342 = arith.divf %340, %341 : vector<2x32xf32>
    %343 = vector.extract_strided_slice %336 {offsets = [0, 32], sizes = [2, 32], strides = [1, 1]} : vector<2x128xf32> to vector<2x32xf32>
    %344 = arith.negf %343 : vector<2x32xf32>
    %345 = math.exp %344 : vector<2x32xf32>
    %cst_60 = arith.constant 1.000000e+00 : f32
    %346 = vector.broadcast %cst_60 : f32 to vector<2x32xf32>
    %347 = arith.addf %346, %345 : vector<2x32xf32>
    %348 = arith.divf %346, %347 : vector<2x32xf32>
    %349 = vector.extract_strided_slice %336 {offsets = [0, 64], sizes = [2, 32], strides = [1, 1]} : vector<2x128xf32> to vector<2x32xf32>
    %350 = math.tanh %349 : vector<2x32xf32>
    %351 = vector.extract_strided_slice %336 {offsets = [0, 96], sizes = [2, 32], strides = [1, 1]} : vector<2x128xf32> to vector<2x32xf32>
    %352 = arith.negf %351 : vector<2x32xf32>
    %353 = math.exp %352 : vector<2x32xf32>
    %cst_61 = arith.constant 1.000000e+00 : f32
    %354 = vector.broadcast %cst_61 : f32 to vector<2x32xf32>
    %355 = arith.addf %354, %353 : vector<2x32xf32>
    %356 = arith.divf %354, %355 : vector<2x32xf32>
    %357 = arith.mulf %348, %301 : vector<2x32xf32>
    %358 = arith.mulf %342, %350 : vector<2x32xf32>
    %359 = arith.addf %357, %358 : vector<2x32xf32>
    %360 = math.tanh %359 : vector<2x32xf32>
    %361 = arith.mulf %356, %360 : vector<2x32xf32>
    %362 = vector.extract_strided_slice %9 {offsets = [6, 0, 0], sizes = [1, 2, 128], strides = [1, 1, 1]} : vector<8x2x256xf32> to vector<1x2x128xf32>
    %363 = vector.shape_cast %362 : vector<1x2x128xf32> to vector<2x128xf32>
    %cst_62 = arith.constant dense<0.000000e+00> : vector<2x128xf32>
    %364 = tpu.matmul %332, %2, %cst_62 {dimension_numbers = #tpu.dot_dimension_numbers<[1], [0], [0], [1], [0, 0, 1, 1], [], []>} : vector<2x32xf32>, vector<32x128xf32>, vector<2x128xf32> -> vector<2x128xf32>
    %365 = arith.addf %363, %364 : vector<2x128xf32>
    %366 = vector.extract_strided_slice %365 {offsets = [0, 0], sizes = [2, 32], strides = [1, 1]} : vector<2x128xf32> to vector<2x32xf32>
    %367 = arith.negf %366 : vector<2x32xf32>
    %368 = math.exp %367 : vector<2x32xf32>
    %cst_63 = arith.constant 1.000000e+00 : f32
    %369 = vector.broadcast %cst_63 : f32 to vector<2x32xf32>
    %370 = arith.addf %369, %368 : vector<2x32xf32>
    %371 = arith.divf %369, %370 : vector<2x32xf32>
    %372 = vector.extract_strided_slice %365 {offsets = [0, 32], sizes = [2, 32], strides = [1, 1]} : vector<2x128xf32> to vector<2x32xf32>
    %373 = arith.negf %372 : vector<2x32xf32>
    %374 = math.exp %373 : vector<2x32xf32>
    %cst_64 = arith.constant 1.000000e+00 : f32
    %375 = vector.broadcast %cst_64 : f32 to vector<2x32xf32>
    %376 = arith.addf %375, %374 : vector<2x32xf32>
    %377 = arith.divf %375, %376 : vector<2x32xf32>
    %378 = vector.extract_strided_slice %365 {offsets = [0, 64], sizes = [2, 32], strides = [1, 1]} : vector<2x128xf32> to vector<2x32xf32>
    %379 = math.tanh %378 : vector<2x32xf32>
    %380 = vector.extract_strided_slice %365 {offsets = [0, 96], sizes = [2, 32], strides = [1, 1]} : vector<2x128xf32> to vector<2x32xf32>
    %381 = arith.negf %380 : vector<2x32xf32>
    %382 = math.exp %381 : vector<2x32xf32>
    %cst_65 = arith.constant 1.000000e+00 : f32
    %383 = vector.broadcast %cst_65 : f32 to vector<2x32xf32>
    %384 = arith.addf %383, %382 : vector<2x32xf32>
    %385 = arith.divf %383, %384 : vector<2x32xf32>
    %386 = arith.mulf %377, %330 : vector<2x32xf32>
    %387 = arith.mulf %371, %379 : vector<2x32xf32>
    %388 = arith.addf %386, %387 : vector<2x32xf32>
    %389 = math.tanh %388 : vector<2x32xf32>
    %390 = arith.mulf %385, %389 : vector<2x32xf32>
    %391 = vector.extract_strided_slice %9 {offsets = [1, 0, 128], sizes = [1, 2, 128], strides = [1, 1, 1]} : vector<8x2x256xf32> to vector<1x2x128xf32>
    %392 = vector.shape_cast %391 : vector<1x2x128xf32> to vector<2x128xf32>
    %cst_66 = arith.constant dense<0.000000e+00> : vector<2x128xf32>
    %393 = tpu.matmul %361, %3, %cst_66 {dimension_numbers = #tpu.dot_dimension_numbers<[1], [0], [0], [1], [0, 0, 1, 1], [], []>} : vector<2x32xf32>, vector<32x128xf32>, vector<2x128xf32> -> vector<2x128xf32>
    %394 = arith.addf %392, %393 : vector<2x128xf32>
    %395 = vector.extract_strided_slice %394 {offsets = [0, 0], sizes = [2, 32], strides = [1, 1]} : vector<2x128xf32> to vector<2x32xf32>
    %396 = arith.negf %395 : vector<2x32xf32>
    %397 = math.exp %396 : vector<2x32xf32>
    %cst_67 = arith.constant 1.000000e+00 : f32
    %398 = vector.broadcast %cst_67 : f32 to vector<2x32xf32>
    %399 = arith.addf %398, %397 : vector<2x32xf32>
    %400 = arith.divf %398, %399 : vector<2x32xf32>
    %401 = vector.extract_strided_slice %394 {offsets = [0, 32], sizes = [2, 32], strides = [1, 1]} : vector<2x128xf32> to vector<2x32xf32>
    %402 = arith.negf %401 : vector<2x32xf32>
    %403 = math.exp %402 : vector<2x32xf32>
    %cst_68 = arith.constant 1.000000e+00 : f32
    %404 = vector.broadcast %cst_68 : f32 to vector<2x32xf32>
    %405 = arith.addf %404, %403 : vector<2x32xf32>
    %406 = arith.divf %404, %405 : vector<2x32xf32>
    %407 = vector.extract_strided_slice %394 {offsets = [0, 64], sizes = [2, 32], strides = [1, 1]} : vector<2x128xf32> to vector<2x32xf32>
    %408 = math.tanh %407 : vector<2x32xf32>
    %409 = vector.extract_strided_slice %394 {offsets = [0, 96], sizes = [2, 32], strides = [1, 1]} : vector<2x128xf32> to vector<2x32xf32>
    %410 = arith.negf %409 : vector<2x32xf32>
    %411 = math.exp %410 : vector<2x32xf32>
    %cst_69 = arith.constant 1.000000e+00 : f32
    %412 = vector.broadcast %cst_69 : f32 to vector<2x32xf32>
    %413 = arith.addf %412, %411 : vector<2x32xf32>
    %414 = arith.divf %412, %413 : vector<2x32xf32>
    %415 = arith.mulf %406, %359 : vector<2x32xf32>
    %416 = arith.mulf %400, %408 : vector<2x32xf32>
    %417 = arith.addf %415, %416 : vector<2x32xf32>
    %418 = math.tanh %417 : vector<2x32xf32>
    %419 = arith.mulf %414, %418 : vector<2x32xf32>
    %420 = vector.extract_strided_slice %9 {offsets = [7, 0, 0], sizes = [1, 2, 128], strides = [1, 1, 1]} : vector<8x2x256xf32> to vector<1x2x128xf32>
    %421 = vector.shape_cast %420 : vector<1x2x128xf32> to vector<2x128xf32>
    %cst_70 = arith.constant dense<0.000000e+00> : vector<2x128xf32>
    %422 = tpu.matmul %390, %2, %cst_70 {dimension_numbers = #tpu.dot_dimension_numbers<[1], [0], [0], [1], [0, 0, 1, 1], [], []>} : vector<2x32xf32>, vector<32x128xf32>, vector<2x128xf32> -> vector<2x128xf32>
    %423 = arith.addf %421, %422 : vector<2x128xf32>
    %424 = vector.extract_strided_slice %423 {offsets = [0, 0], sizes = [2, 32], strides = [1, 1]} : vector<2x128xf32> to vector<2x32xf32>
    %425 = arith.negf %424 : vector<2x32xf32>
    %426 = math.exp %425 : vector<2x32xf32>
    %cst_71 = arith.constant 1.000000e+00 : f32
    %427 = vector.broadcast %cst_71 : f32 to vector<2x32xf32>
    %428 = arith.addf %427, %426 : vector<2x32xf32>
    %429 = arith.divf %427, %428 : vector<2x32xf32>
    %430 = vector.extract_strided_slice %423 {offsets = [0, 32], sizes = [2, 32], strides = [1, 1]} : vector<2x128xf32> to vector<2x32xf32>
    %431 = arith.negf %430 : vector<2x32xf32>
    %432 = math.exp %431 : vector<2x32xf32>
    %cst_72 = arith.constant 1.000000e+00 : f32
    %433 = vector.broadcast %cst_72 : f32 to vector<2x32xf32>
    %434 = arith.addf %433, %432 : vector<2x32xf32>
    %435 = arith.divf %433, %434 : vector<2x32xf32>
    %436 = vector.extract_strided_slice %423 {offsets = [0, 64], sizes = [2, 32], strides = [1, 1]} : vector<2x128xf32> to vector<2x32xf32>
    %437 = math.tanh %436 : vector<2x32xf32>
    %438 = vector.extract_strided_slice %423 {offsets = [0, 96], sizes = [2, 32], strides = [1, 1]} : vector<2x128xf32> to vector<2x32xf32>
    %439 = arith.negf %438 : vector<2x32xf32>
    %440 = math.exp %439 : vector<2x32xf32>
    %cst_73 = arith.constant 1.000000e+00 : f32
    %441 = vector.broadcast %cst_73 : f32 to vector<2x32xf32>
    %442 = arith.addf %441, %440 : vector<2x32xf32>
    %443 = arith.divf %441, %442 : vector<2x32xf32>
    %444 = arith.mulf %435, %388 : vector<2x32xf32>
    %445 = arith.mulf %429, %437 : vector<2x32xf32>
    %446 = arith.addf %444, %445 : vector<2x32xf32>
    %447 = math.tanh %446 : vector<2x32xf32>
    %448 = arith.mulf %443, %447 : vector<2x32xf32>
    %449 = vector.extract_strided_slice %9 {offsets = [0, 0, 128], sizes = [1, 2, 128], strides = [1, 1, 1]} : vector<8x2x256xf32> to vector<1x2x128xf32>
    %450 = vector.shape_cast %449 : vector<1x2x128xf32> to vector<2x128xf32>
    %cst_74 = arith.constant dense<0.000000e+00> : vector<2x128xf32>
    %451 = tpu.matmul %419, %3, %cst_74 {dimension_numbers = #tpu.dot_dimension_numbers<[1], [0], [0], [1], [0, 0, 1, 1], [], []>} : vector<2x32xf32>, vector<32x128xf32>, vector<2x128xf32> -> vector<2x128xf32>
    %452 = arith.addf %450, %451 : vector<2x128xf32>
    %453 = vector.extract_strided_slice %452 {offsets = [0, 0], sizes = [2, 32], strides = [1, 1]} : vector<2x128xf32> to vector<2x32xf32>
    %454 = arith.negf %453 : vector<2x32xf32>
    %455 = math.exp %454 : vector<2x32xf32>
    %cst_75 = arith.constant 1.000000e+00 : f32
    %456 = vector.broadcast %cst_75 : f32 to vector<2x32xf32>
    %457 = arith.addf %456, %455 : vector<2x32xf32>
    %458 = arith.divf %456, %457 : vector<2x32xf32>
    %459 = vector.extract_strided_slice %452 {offsets = [0, 32], sizes = [2, 32], strides = [1, 1]} : vector<2x128xf32> to vector<2x32xf32>
    %460 = arith.negf %459 : vector<2x32xf32>
    %461 = math.exp %460 : vector<2x32xf32>
    %cst_76 = arith.constant 1.000000e+00 : f32
    %462 = vector.broadcast %cst_76 : f32 to vector<2x32xf32>
    %463 = arith.addf %462, %461 : vector<2x32xf32>
    %464 = arith.divf %462, %463 : vector<2x32xf32>
    %465 = vector.extract_strided_slice %452 {offsets = [0, 64], sizes = [2, 32], strides = [1, 1]} : vector<2x128xf32> to vector<2x32xf32>
    %466 = math.tanh %465 : vector<2x32xf32>
    %467 = vector.extract_strided_slice %452 {offsets = [0, 96], sizes = [2, 32], strides = [1, 1]} : vector<2x128xf32> to vector<2x32xf32>
    %468 = arith.negf %467 : vector<2x32xf32>
    %469 = math.exp %468 : vector<2x32xf32>
    %cst_77 = arith.constant 1.000000e+00 : f32
    %470 = vector.broadcast %cst_77 : f32 to vector<2x32xf32>
    %471 = arith.addf %470, %469 : vector<2x32xf32>
    %472 = arith.divf %470, %471 : vector<2x32xf32>
    %473 = arith.mulf %464, %417 : vector<2x32xf32>
    %474 = arith.mulf %458, %466 : vector<2x32xf32>
    %475 = arith.addf %473, %474 : vector<2x32xf32>
    %476 = math.tanh %475 : vector<2x32xf32>
    %477 = arith.mulf %472, %476 : vector<2x32xf32>
    %478 = tpu.concatenate %42, %477 in 1 : vector<2x32xf32>, vector<2x32xf32> -> vector<2x64xf32>
    %479 = tpu.concatenate %100, %419 in 1 : vector<2x32xf32>, vector<2x32xf32> -> vector<2x64xf32>
    %480 = tpu.concatenate %158, %361 in 1 : vector<2x32xf32>, vector<2x32xf32> -> vector<2x64xf32>
    %481 = tpu.concatenate %216, %303 in 1 : vector<2x32xf32>, vector<2x32xf32> -> vector<2x64xf32>
    %482 = tpu.concatenate %274, %245 in 1 : vector<2x32xf32>, vector<2x32xf32> -> vector<2x64xf32>
    %483 = tpu.concatenate %332, %187 in 1 : vector<2x32xf32>, vector<2x32xf32> -> vector<2x64xf32>
    %484 = tpu.concatenate %390, %129 in 1 : vector<2x32xf32>, vector<2x32xf32> -> vector<2x64xf32>
    %485 = tpu.concatenate %448, %71 in 1 : vector<2x32xf32>, vector<2x32xf32> -> vector<2x64xf32>
    %486 = vector.shape_cast %478 : vector<2x64xf32> to vector<1x2x64xf32>
    %487 = vector.shape_cast %479 : vector<2x64xf32> to vector<1x2x64xf32>
    %488 = vector.shape_cast %480 : vector<2x64xf32> to vector<1x2x64xf32>
    %489 = vector.shape_cast %481 : vector<2x64xf32> to vector<1x2x64xf32>
    %490 = vector.shape_cast %482 : vector<2x64xf32> to vector<1x2x64xf32>
    %491 = vector.shape_cast %483 : vector<2x64xf32> to vector<1x2x64xf32>
    %492 = vector.shape_cast %484 : vector<2x64xf32> to vector<1x2x64xf32>
    %493 = vector.shape_cast %485 : vector<2x64xf32> to vector<1x2x64xf32>
    %494 = tpu.concatenate %486, %487, %488, %489, %490, %491, %492, %493 in 0 : vector<1x2x64xf32>, vector<1x2x64xf32>, vector<1x2x64xf32>, vector<1x2x64xf32>, vector<1x2x64xf32>, vector<1x2x64xf32>, vector<1x2x64xf32>, vector<1x2x64xf32> -> vector<8x2x64xf32>
    %c0_78 = arith.constant 0 : index
    %c0_79 = arith.constant 0 : index
    %495 = vector.load %arg6[%c0_78, %c0_79] : memref<64x256xf32, #tpu.memory_space<vmem>>, vector<64x256xf32>
    %c0_80 = arith.constant 0 : index
    %c0_81 = arith.constant 0 : index
    %496 = vector.load %arg7[%c0_80, %c0_81] : memref<32x128xf32, #tpu.memory_space<vmem>>, vector<32x128xf32>
    %c0_82 = arith.constant 0 : index
    %c0_83 = arith.constant 0 : index
    %497 = vector.load %arg8[%c0_82, %c0_83] : memref<32x128xf32, #tpu.memory_space<vmem>>, vector<32x128xf32>
    %c0_84 = arith.constant 0 : index
    %c0_85 = arith.constant 0 : index
    %498 = vector.load %arg9[%c0_84, %c0_85] : memref<1x256xf32, #tpu.memory_space<vmem>>, vector<1x256xf32>
    %499 = vector.shape_cast %494 : vector<8x2x64xf32> to vector<16x64xf32>
    %cst_86 = arith.constant dense<0.000000e+00> : vector<16x256xf32>
    %500 = tpu.matmul %499, %495, %cst_86 {dimension_numbers = #tpu.dot_dimension_numbers<[1], [0], [0], [1], [0, 0, 1, 1], [], []>} : vector<16x64xf32>, vector<64x256xf32>, vector<16x256xf32> -> vector<16x256xf32>
    %501 = vector.broadcast %498 : vector<1x256xf32> to vector<16x256xf32>
    %502 = arith.addf %500, %501 : vector<16x256xf32>
    %503 = vector.shape_cast %502 : vector<16x256xf32> to vector<8x2x256xf32>
    %cst_87 = arith.constant 0.000000e+00 : f32
    %504 = vector.broadcast %cst_87 : f32 to vector<2x32xf32>
    %cst_88 = arith.constant 0.000000e+00 : f32
    %505 = vector.broadcast %cst_88 : f32 to vector<2x32xf32>
    %cst_89 = arith.constant 0.000000e+00 : f32
    %506 = vector.broadcast %cst_89 : f32 to vector<2x32xf32>
    %cst_90 = arith.constant 0.000000e+00 : f32
    %507 = vector.broadcast %cst_90 : f32 to vector<2x32xf32>
    %508 = vector.extract_strided_slice %503 {offsets = [0, 0, 0], sizes = [1, 2, 128], strides = [1, 1, 1]} : vector<8x2x256xf32> to vector<1x2x128xf32>
    %509 = vector.shape_cast %508 : vector<1x2x128xf32> to vector<2x128xf32>
    %cst_91 = arith.constant dense<0.000000e+00> : vector<2x128xf32>
    %510 = tpu.matmul %504, %496, %cst_91 {dimension_numbers = #tpu.dot_dimension_numbers<[1], [0], [0], [1], [0, 0, 1, 1], [], []>} : vector<2x32xf32>, vector<32x128xf32>, vector<2x128xf32> -> vector<2x128xf32>
    %511 = arith.addf %509, %510 : vector<2x128xf32>
    %512 = vector.extract_strided_slice %511 {offsets = [0, 0], sizes = [2, 32], strides = [1, 1]} : vector<2x128xf32> to vector<2x32xf32>
    %513 = arith.negf %512 : vector<2x32xf32>
    %514 = math.exp %513 : vector<2x32xf32>
    %cst_92 = arith.constant 1.000000e+00 : f32
    %515 = vector.broadcast %cst_92 : f32 to vector<2x32xf32>
    %516 = arith.addf %515, %514 : vector<2x32xf32>
    %517 = arith.divf %515, %516 : vector<2x32xf32>
    %518 = vector.extract_strided_slice %511 {offsets = [0, 32], sizes = [2, 32], strides = [1, 1]} : vector<2x128xf32> to vector<2x32xf32>
    %519 = arith.negf %518 : vector<2x32xf32>
    %520 = math.exp %519 : vector<2x32xf32>
    %cst_93 = arith.constant 1.000000e+00 : f32
    %521 = vector.broadcast %cst_93 : f32 to vector<2x32xf32>
    %522 = arith.addf %521, %520 : vector<2x32xf32>
    %523 = arith.divf %521, %522 : vector<2x32xf32>
    %524 = vector.extract_strided_slice %511 {offsets = [0, 64], sizes = [2, 32], strides = [1, 1]} : vector<2x128xf32> to vector<2x32xf32>
    %525 = math.tanh %524 : vector<2x32xf32>
    %526 = vector.extract_strided_slice %511 {offsets = [0, 96], sizes = [2, 32], strides = [1, 1]} : vector<2x128xf32> to vector<2x32xf32>
    %527 = arith.negf %526 : vector<2x32xf32>
    %528 = math.exp %527 : vector<2x32xf32>
    %cst_94 = arith.constant 1.000000e+00 : f32
    %529 = vector.broadcast %cst_94 : f32 to vector<2x32xf32>
    %530 = arith.addf %529, %528 : vector<2x32xf32>
    %531 = arith.divf %529, %530 : vector<2x32xf32>
    %532 = arith.mulf %523, %505 : vector<2x32xf32>
    %533 = arith.mulf %517, %525 : vector<2x32xf32>
    %534 = arith.addf %532, %533 : vector<2x32xf32>
    %535 = math.tanh %534 : vector<2x32xf32>
    %536 = arith.mulf %531, %535 : vector<2x32xf32>
    %537 = vector.extract_strided_slice %503 {offsets = [7, 0, 128], sizes = [1, 2, 128], strides = [1, 1, 1]} : vector<8x2x256xf32> to vector<1x2x128xf32>
    %538 = vector.shape_cast %537 : vector<1x2x128xf32> to vector<2x128xf32>
    %cst_95 = arith.constant dense<0.000000e+00> : vector<2x128xf32>
    %539 = tpu.matmul %506, %497, %cst_95 {dimension_numbers = #tpu.dot_dimension_numbers<[1], [0], [0], [1], [0, 0, 1, 1], [], []>} : vector<2x32xf32>, vector<32x128xf32>, vector<2x128xf32> -> vector<2x128xf32>
    %540 = arith.addf %538, %539 : vector<2x128xf32>
    %541 = vector.extract_strided_slice %540 {offsets = [0, 0], sizes = [2, 32], strides = [1, 1]} : vector<2x128xf32> to vector<2x32xf32>
    %542 = arith.negf %541 : vector<2x32xf32>
    %543 = math.exp %542 : vector<2x32xf32>
    %cst_96 = arith.constant 1.000000e+00 : f32
    %544 = vector.broadcast %cst_96 : f32 to vector<2x32xf32>
    %545 = arith.addf %544, %543 : vector<2x32xf32>
    %546 = arith.divf %544, %545 : vector<2x32xf32>
    %547 = vector.extract_strided_slice %540 {offsets = [0, 32], sizes = [2, 32], strides = [1, 1]} : vector<2x128xf32> to vector<2x32xf32>
    %548 = arith.negf %547 : vector<2x32xf32>
    %549 = math.exp %548 : vector<2x32xf32>
    %cst_97 = arith.constant 1.000000e+00 : f32
    %550 = vector.broadcast %cst_97 : f32 to vector<2x32xf32>
    %551 = arith.addf %550, %549 : vector<2x32xf32>
    %552 = arith.divf %550, %551 : vector<2x32xf32>
    %553 = vector.extract_strided_slice %540 {offsets = [0, 64], sizes = [2, 32], strides = [1, 1]} : vector<2x128xf32> to vector<2x32xf32>
    %554 = math.tanh %553 : vector<2x32xf32>
    %555 = vector.extract_strided_slice %540 {offsets = [0, 96], sizes = [2, 32], strides = [1, 1]} : vector<2x128xf32> to vector<2x32xf32>
    %556 = arith.negf %555 : vector<2x32xf32>
    %557 = math.exp %556 : vector<2x32xf32>
    %cst_98 = arith.constant 1.000000e+00 : f32
    %558 = vector.broadcast %cst_98 : f32 to vector<2x32xf32>
    %559 = arith.addf %558, %557 : vector<2x32xf32>
    %560 = arith.divf %558, %559 : vector<2x32xf32>
    %561 = arith.mulf %552, %507 : vector<2x32xf32>
    %562 = arith.mulf %546, %554 : vector<2x32xf32>
    %563 = arith.addf %561, %562 : vector<2x32xf32>
    %564 = math.tanh %563 : vector<2x32xf32>
    %565 = arith.mulf %560, %564 : vector<2x32xf32>
    %566 = vector.extract_strided_slice %503 {offsets = [1, 0, 0], sizes = [1, 2, 128], strides = [1, 1, 1]} : vector<8x2x256xf32> to vector<1x2x128xf32>
    %567 = vector.shape_cast %566 : vector<1x2x128xf32> to vector<2x128xf32>
    %cst_99 = arith.constant dense<0.000000e+00> : vector<2x128xf32>
    %568 = tpu.matmul %536, %496, %cst_99 {dimension_numbers = #tpu.dot_dimension_numbers<[1], [0], [0], [1], [0, 0, 1, 1], [], []>} : vector<2x32xf32>, vector<32x128xf32>, vector<2x128xf32> -> vector<2x128xf32>
    %569 = arith.addf %567, %568 : vector<2x128xf32>
    %570 = vector.extract_strided_slice %569 {offsets = [0, 0], sizes = [2, 32], strides = [1, 1]} : vector<2x128xf32> to vector<2x32xf32>
    %571 = arith.negf %570 : vector<2x32xf32>
    %572 = math.exp %571 : vector<2x32xf32>
    %cst_100 = arith.constant 1.000000e+00 : f32
    %573 = vector.broadcast %cst_100 : f32 to vector<2x32xf32>
    %574 = arith.addf %573, %572 : vector<2x32xf32>
    %575 = arith.divf %573, %574 : vector<2x32xf32>
    %576 = vector.extract_strided_slice %569 {offsets = [0, 32], sizes = [2, 32], strides = [1, 1]} : vector<2x128xf32> to vector<2x32xf32>
    %577 = arith.negf %576 : vector<2x32xf32>
    %578 = math.exp %577 : vector<2x32xf32>
    %cst_101 = arith.constant 1.000000e+00 : f32
    %579 = vector.broadcast %cst_101 : f32 to vector<2x32xf32>
    %580 = arith.addf %579, %578 : vector<2x32xf32>
    %581 = arith.divf %579, %580 : vector<2x32xf32>
    %582 = vector.extract_strided_slice %569 {offsets = [0, 64], sizes = [2, 32], strides = [1, 1]} : vector<2x128xf32> to vector<2x32xf32>
    %583 = math.tanh %582 : vector<2x32xf32>
    %584 = vector.extract_strided_slice %569 {offsets = [0, 96], sizes = [2, 32], strides = [1, 1]} : vector<2x128xf32> to vector<2x32xf32>
    %585 = arith.negf %584 : vector<2x32xf32>
    %586 = math.exp %585 : vector<2x32xf32>
    %cst_102 = arith.constant 1.000000e+00 : f32
    %587 = vector.broadcast %cst_102 : f32 to vector<2x32xf32>
    %588 = arith.addf %587, %586 : vector<2x32xf32>
    %589 = arith.divf %587, %588 : vector<2x32xf32>
    %590 = arith.mulf %581, %534 : vector<2x32xf32>
    %591 = arith.mulf %575, %583 : vector<2x32xf32>
    %592 = arith.addf %590, %591 : vector<2x32xf32>
    %593 = math.tanh %592 : vector<2x32xf32>
    %594 = arith.mulf %589, %593 : vector<2x32xf32>
    %595 = vector.extract_strided_slice %503 {offsets = [6, 0, 128], sizes = [1, 2, 128], strides = [1, 1, 1]} : vector<8x2x256xf32> to vector<1x2x128xf32>
    %596 = vector.shape_cast %595 : vector<1x2x128xf32> to vector<2x128xf32>
    %cst_103 = arith.constant dense<0.000000e+00> : vector<2x128xf32>
    %597 = tpu.matmul %565, %497, %cst_103 {dimension_numbers = #tpu.dot_dimension_numbers<[1], [0], [0], [1], [0, 0, 1, 1], [], []>} : vector<2x32xf32>, vector<32x128xf32>, vector<2x128xf32> -> vector<2x128xf32>
    %598 = arith.addf %596, %597 : vector<2x128xf32>
    %599 = vector.extract_strided_slice %598 {offsets = [0, 0], sizes = [2, 32], strides = [1, 1]} : vector<2x128xf32> to vector<2x32xf32>
    %600 = arith.negf %599 : vector<2x32xf32>
    %601 = math.exp %600 : vector<2x32xf32>
    %cst_104 = arith.constant 1.000000e+00 : f32
    %602 = vector.broadcast %cst_104 : f32 to vector<2x32xf32>
    %603 = arith.addf %602, %601 : vector<2x32xf32>
    %604 = arith.divf %602, %603 : vector<2x32xf32>
    %605 = vector.extract_strided_slice %598 {offsets = [0, 32], sizes = [2, 32], strides = [1, 1]} : vector<2x128xf32> to vector<2x32xf32>
    %606 = arith.negf %605 : vector<2x32xf32>
    %607 = math.exp %606 : vector<2x32xf32>
    %cst_105 = arith.constant 1.000000e+00 : f32
    %608 = vector.broadcast %cst_105 : f32 to vector<2x32xf32>
    %609 = arith.addf %608, %607 : vector<2x32xf32>
    %610 = arith.divf %608, %609 : vector<2x32xf32>
    %611 = vector.extract_strided_slice %598 {offsets = [0, 64], sizes = [2, 32], strides = [1, 1]} : vector<2x128xf32> to vector<2x32xf32>
    %612 = math.tanh %611 : vector<2x32xf32>
    %613 = vector.extract_strided_slice %598 {offsets = [0, 96], sizes = [2, 32], strides = [1, 1]} : vector<2x128xf32> to vector<2x32xf32>
    %614 = arith.negf %613 : vector<2x32xf32>
    %615 = math.exp %614 : vector<2x32xf32>
    %cst_106 = arith.constant 1.000000e+00 : f32
    %616 = vector.broadcast %cst_106 : f32 to vector<2x32xf32>
    %617 = arith.addf %616, %615 : vector<2x32xf32>
    %618 = arith.divf %616, %617 : vector<2x32xf32>
    %619 = arith.mulf %610, %563 : vector<2x32xf32>
    %620 = arith.mulf %604, %612 : vector<2x32xf32>
    %621 = arith.addf %619, %620 : vector<2x32xf32>
    %622 = math.tanh %621 : vector<2x32xf32>
    %623 = arith.mulf %618, %622 : vector<2x32xf32>
    %624 = vector.extract_strided_slice %503 {offsets = [2, 0, 0], sizes = [1, 2, 128], strides = [1, 1, 1]} : vector<8x2x256xf32> to vector<1x2x128xf32>
    %625 = vector.shape_cast %624 : vector<1x2x128xf32> to vector<2x128xf32>
    %cst_107 = arith.constant dense<0.000000e+00> : vector<2x128xf32>
    %626 = tpu.matmul %594, %496, %cst_107 {dimension_numbers = #tpu.dot_dimension_numbers<[1], [0], [0], [1], [0, 0, 1, 1], [], []>} : vector<2x32xf32>, vector<32x128xf32>, vector<2x128xf32> -> vector<2x128xf32>
    %627 = arith.addf %625, %626 : vector<2x128xf32>
    %628 = vector.extract_strided_slice %627 {offsets = [0, 0], sizes = [2, 32], strides = [1, 1]} : vector<2x128xf32> to vector<2x32xf32>
    %629 = arith.negf %628 : vector<2x32xf32>
    %630 = math.exp %629 : vector<2x32xf32>
    %cst_108 = arith.constant 1.000000e+00 : f32
    %631 = vector.broadcast %cst_108 : f32 to vector<2x32xf32>
    %632 = arith.addf %631, %630 : vector<2x32xf32>
    %633 = arith.divf %631, %632 : vector<2x32xf32>
    %634 = vector.extract_strided_slice %627 {offsets = [0, 32], sizes = [2, 32], strides = [1, 1]} : vector<2x128xf32> to vector<2x32xf32>
    %635 = arith.negf %634 : vector<2x32xf32>
    %636 = math.exp %635 : vector<2x32xf32>
    %cst_109 = arith.constant 1.000000e+00 : f32
    %637 = vector.broadcast %cst_109 : f32 to vector<2x32xf32>
    %638 = arith.addf %637, %636 : vector<2x32xf32>
    %639 = arith.divf %637, %638 : vector<2x32xf32>
    %640 = vector.extract_strided_slice %627 {offsets = [0, 64], sizes = [2, 32], strides = [1, 1]} : vector<2x128xf32> to vector<2x32xf32>
    %641 = math.tanh %640 : vector<2x32xf32>
    %642 = vector.extract_strided_slice %627 {offsets = [0, 96], sizes = [2, 32], strides = [1, 1]} : vector<2x128xf32> to vector<2x32xf32>
    %643 = arith.negf %642 : vector<2x32xf32>
    %644 = math.exp %643 : vector<2x32xf32>
    %cst_110 = arith.constant 1.000000e+00 : f32
    %645 = vector.broadcast %cst_110 : f32 to vector<2x32xf32>
    %646 = arith.addf %645, %644 : vector<2x32xf32>
    %647 = arith.divf %645, %646 : vector<2x32xf32>
    %648 = arith.mulf %639, %592 : vector<2x32xf32>
    %649 = arith.mulf %633, %641 : vector<2x32xf32>
    %650 = arith.addf %648, %649 : vector<2x32xf32>
    %651 = math.tanh %650 : vector<2x32xf32>
    %652 = arith.mulf %647, %651 : vector<2x32xf32>
    %653 = vector.extract_strided_slice %503 {offsets = [5, 0, 128], sizes = [1, 2, 128], strides = [1, 1, 1]} : vector<8x2x256xf32> to vector<1x2x128xf32>
    %654 = vector.shape_cast %653 : vector<1x2x128xf32> to vector<2x128xf32>
    %cst_111 = arith.constant dense<0.000000e+00> : vector<2x128xf32>
    %655 = tpu.matmul %623, %497, %cst_111 {dimension_numbers = #tpu.dot_dimension_numbers<[1], [0], [0], [1], [0, 0, 1, 1], [], []>} : vector<2x32xf32>, vector<32x128xf32>, vector<2x128xf32> -> vector<2x128xf32>
    %656 = arith.addf %654, %655 : vector<2x128xf32>
    %657 = vector.extract_strided_slice %656 {offsets = [0, 0], sizes = [2, 32], strides = [1, 1]} : vector<2x128xf32> to vector<2x32xf32>
    %658 = arith.negf %657 : vector<2x32xf32>
    %659 = math.exp %658 : vector<2x32xf32>
    %cst_112 = arith.constant 1.000000e+00 : f32
    %660 = vector.broadcast %cst_112 : f32 to vector<2x32xf32>
    %661 = arith.addf %660, %659 : vector<2x32xf32>
    %662 = arith.divf %660, %661 : vector<2x32xf32>
    %663 = vector.extract_strided_slice %656 {offsets = [0, 32], sizes = [2, 32], strides = [1, 1]} : vector<2x128xf32> to vector<2x32xf32>
    %664 = arith.negf %663 : vector<2x32xf32>
    %665 = math.exp %664 : vector<2x32xf32>
    %cst_113 = arith.constant 1.000000e+00 : f32
    %666 = vector.broadcast %cst_113 : f32 to vector<2x32xf32>
    %667 = arith.addf %666, %665 : vector<2x32xf32>
    %668 = arith.divf %666, %667 : vector<2x32xf32>
    %669 = vector.extract_strided_slice %656 {offsets = [0, 64], sizes = [2, 32], strides = [1, 1]} : vector<2x128xf32> to vector<2x32xf32>
    %670 = math.tanh %669 : vector<2x32xf32>
    %671 = vector.extract_strided_slice %656 {offsets = [0, 96], sizes = [2, 32], strides = [1, 1]} : vector<2x128xf32> to vector<2x32xf32>
    %672 = arith.negf %671 : vector<2x32xf32>
    %673 = math.exp %672 : vector<2x32xf32>
    %cst_114 = arith.constant 1.000000e+00 : f32
    %674 = vector.broadcast %cst_114 : f32 to vector<2x32xf32>
    %675 = arith.addf %674, %673 : vector<2x32xf32>
    %676 = arith.divf %674, %675 : vector<2x32xf32>
    %677 = arith.mulf %668, %621 : vector<2x32xf32>
    %678 = arith.mulf %662, %670 : vector<2x32xf32>
    %679 = arith.addf %677, %678 : vector<2x32xf32>
    %680 = math.tanh %679 : vector<2x32xf32>
    %681 = arith.mulf %676, %680 : vector<2x32xf32>
    %682 = vector.extract_strided_slice %503 {offsets = [3, 0, 0], sizes = [1, 2, 128], strides = [1, 1, 1]} : vector<8x2x256xf32> to vector<1x2x128xf32>
    %683 = vector.shape_cast %682 : vector<1x2x128xf32> to vector<2x128xf32>
    %cst_115 = arith.constant dense<0.000000e+00> : vector<2x128xf32>
    %684 = tpu.matmul %652, %496, %cst_115 {dimension_numbers = #tpu.dot_dimension_numbers<[1], [0], [0], [1], [0, 0, 1, 1], [], []>} : vector<2x32xf32>, vector<32x128xf32>, vector<2x128xf32> -> vector<2x128xf32>
    %685 = arith.addf %683, %684 : vector<2x128xf32>
    %686 = vector.extract_strided_slice %685 {offsets = [0, 0], sizes = [2, 32], strides = [1, 1]} : vector<2x128xf32> to vector<2x32xf32>
    %687 = arith.negf %686 : vector<2x32xf32>
    %688 = math.exp %687 : vector<2x32xf32>
    %cst_116 = arith.constant 1.000000e+00 : f32
    %689 = vector.broadcast %cst_116 : f32 to vector<2x32xf32>
    %690 = arith.addf %689, %688 : vector<2x32xf32>
    %691 = arith.divf %689, %690 : vector<2x32xf32>
    %692 = vector.extract_strided_slice %685 {offsets = [0, 32], sizes = [2, 32], strides = [1, 1]} : vector<2x128xf32> to vector<2x32xf32>
    %693 = arith.negf %692 : vector<2x32xf32>
    %694 = math.exp %693 : vector<2x32xf32>
    %cst_117 = arith.constant 1.000000e+00 : f32
    %695 = vector.broadcast %cst_117 : f32 to vector<2x32xf32>
    %696 = arith.addf %695, %694 : vector<2x32xf32>
    %697 = arith.divf %695, %696 : vector<2x32xf32>
    %698 = vector.extract_strided_slice %685 {offsets = [0, 64], sizes = [2, 32], strides = [1, 1]} : vector<2x128xf32> to vector<2x32xf32>
    %699 = math.tanh %698 : vector<2x32xf32>
    %700 = vector.extract_strided_slice %685 {offsets = [0, 96], sizes = [2, 32], strides = [1, 1]} : vector<2x128xf32> to vector<2x32xf32>
    %701 = arith.negf %700 : vector<2x32xf32>
    %702 = math.exp %701 : vector<2x32xf32>
    %cst_118 = arith.constant 1.000000e+00 : f32
    %703 = vector.broadcast %cst_118 : f32 to vector<2x32xf32>
    %704 = arith.addf %703, %702 : vector<2x32xf32>
    %705 = arith.divf %703, %704 : vector<2x32xf32>
    %706 = arith.mulf %697, %650 : vector<2x32xf32>
    %707 = arith.mulf %691, %699 : vector<2x32xf32>
    %708 = arith.addf %706, %707 : vector<2x32xf32>
    %709 = math.tanh %708 : vector<2x32xf32>
    %710 = arith.mulf %705, %709 : vector<2x32xf32>
    %711 = vector.extract_strided_slice %503 {offsets = [4, 0, 128], sizes = [1, 2, 128], strides = [1, 1, 1]} : vector<8x2x256xf32> to vector<1x2x128xf32>
    %712 = vector.shape_cast %711 : vector<1x2x128xf32> to vector<2x128xf32>
    %cst_119 = arith.constant dense<0.000000e+00> : vector<2x128xf32>
    %713 = tpu.matmul %681, %497, %cst_119 {dimension_numbers = #tpu.dot_dimension_numbers<[1], [0], [0], [1], [0, 0, 1, 1], [], []>} : vector<2x32xf32>, vector<32x128xf32>, vector<2x128xf32> -> vector<2x128xf32>
    %714 = arith.addf %712, %713 : vector<2x128xf32>
    %715 = vector.extract_strided_slice %714 {offsets = [0, 0], sizes = [2, 32], strides = [1, 1]} : vector<2x128xf32> to vector<2x32xf32>
    %716 = arith.negf %715 : vector<2x32xf32>
    %717 = math.exp %716 : vector<2x32xf32>
    %cst_120 = arith.constant 1.000000e+00 : f32
    %718 = vector.broadcast %cst_120 : f32 to vector<2x32xf32>
    %719 = arith.addf %718, %717 : vector<2x32xf32>
    %720 = arith.divf %718, %719 : vector<2x32xf32>
    %721 = vector.extract_strided_slice %714 {offsets = [0, 32], sizes = [2, 32], strides = [1, 1]} : vector<2x128xf32> to vector<2x32xf32>
    %722 = arith.negf %721 : vector<2x32xf32>
    %723 = math.exp %722 : vector<2x32xf32>
    %cst_121 = arith.constant 1.000000e+00 : f32
    %724 = vector.broadcast %cst_121 : f32 to vector<2x32xf32>
    %725 = arith.addf %724, %723 : vector<2x32xf32>
    %726 = arith.divf %724, %725 : vector<2x32xf32>
    %727 = vector.extract_strided_slice %714 {offsets = [0, 64], sizes = [2, 32], strides = [1, 1]} : vector<2x128xf32> to vector<2x32xf32>
    %728 = math.tanh %727 : vector<2x32xf32>
    %729 = vector.extract_strided_slice %714 {offsets = [0, 96], sizes = [2, 32], strides = [1, 1]} : vector<2x128xf32> to vector<2x32xf32>
    %730 = arith.negf %729 : vector<2x32xf32>
    %731 = math.exp %730 : vector<2x32xf32>
    %cst_122 = arith.constant 1.000000e+00 : f32
    %732 = vector.broadcast %cst_122 : f32 to vector<2x32xf32>
    %733 = arith.addf %732, %731 : vector<2x32xf32>
    %734 = arith.divf %732, %733 : vector<2x32xf32>
    %735 = arith.mulf %726, %679 : vector<2x32xf32>
    %736 = arith.mulf %720, %728 : vector<2x32xf32>
    %737 = arith.addf %735, %736 : vector<2x32xf32>
    %738 = math.tanh %737 : vector<2x32xf32>
    %739 = arith.mulf %734, %738 : vector<2x32xf32>
    %740 = vector.extract_strided_slice %503 {offsets = [4, 0, 0], sizes = [1, 2, 128], strides = [1, 1, 1]} : vector<8x2x256xf32> to vector<1x2x128xf32>
    %741 = vector.shape_cast %740 : vector<1x2x128xf32> to vector<2x128xf32>
    %cst_123 = arith.constant dense<0.000000e+00> : vector<2x128xf32>
    %742 = tpu.matmul %710, %496, %cst_123 {dimension_numbers = #tpu.dot_dimension_numbers<[1], [0], [0], [1], [0, 0, 1, 1], [], []>} : vector<2x32xf32>, vector<32x128xf32>, vector<2x128xf32> -> vector<2x128xf32>
    %743 = arith.addf %741, %742 : vector<2x128xf32>
    %744 = vector.extract_strided_slice %743 {offsets = [0, 0], sizes = [2, 32], strides = [1, 1]} : vector<2x128xf32> to vector<2x32xf32>
    %745 = arith.negf %744 : vector<2x32xf32>
    %746 = math.exp %745 : vector<2x32xf32>
    %cst_124 = arith.constant 1.000000e+00 : f32
    %747 = vector.broadcast %cst_124 : f32 to vector<2x32xf32>
    %748 = arith.addf %747, %746 : vector<2x32xf32>
    %749 = arith.divf %747, %748 : vector<2x32xf32>
    %750 = vector.extract_strided_slice %743 {offsets = [0, 32], sizes = [2, 32], strides = [1, 1]} : vector<2x128xf32> to vector<2x32xf32>
    %751 = arith.negf %750 : vector<2x32xf32>
    %752 = math.exp %751 : vector<2x32xf32>
    %cst_125 = arith.constant 1.000000e+00 : f32
    %753 = vector.broadcast %cst_125 : f32 to vector<2x32xf32>
    %754 = arith.addf %753, %752 : vector<2x32xf32>
    %755 = arith.divf %753, %754 : vector<2x32xf32>
    %756 = vector.extract_strided_slice %743 {offsets = [0, 64], sizes = [2, 32], strides = [1, 1]} : vector<2x128xf32> to vector<2x32xf32>
    %757 = math.tanh %756 : vector<2x32xf32>
    %758 = vector.extract_strided_slice %743 {offsets = [0, 96], sizes = [2, 32], strides = [1, 1]} : vector<2x128xf32> to vector<2x32xf32>
    %759 = arith.negf %758 : vector<2x32xf32>
    %760 = math.exp %759 : vector<2x32xf32>
    %cst_126 = arith.constant 1.000000e+00 : f32
    %761 = vector.broadcast %cst_126 : f32 to vector<2x32xf32>
    %762 = arith.addf %761, %760 : vector<2x32xf32>
    %763 = arith.divf %761, %762 : vector<2x32xf32>
    %764 = arith.mulf %755, %708 : vector<2x32xf32>
    %765 = arith.mulf %749, %757 : vector<2x32xf32>
    %766 = arith.addf %764, %765 : vector<2x32xf32>
    %767 = math.tanh %766 : vector<2x32xf32>
    %768 = arith.mulf %763, %767 : vector<2x32xf32>
    %769 = vector.extract_strided_slice %503 {offsets = [3, 0, 128], sizes = [1, 2, 128], strides = [1, 1, 1]} : vector<8x2x256xf32> to vector<1x2x128xf32>
    %770 = vector.shape_cast %769 : vector<1x2x128xf32> to vector<2x128xf32>
    %cst_127 = arith.constant dense<0.000000e+00> : vector<2x128xf32>
    %771 = tpu.matmul %739, %497, %cst_127 {dimension_numbers = #tpu.dot_dimension_numbers<[1], [0], [0], [1], [0, 0, 1, 1], [], []>} : vector<2x32xf32>, vector<32x128xf32>, vector<2x128xf32> -> vector<2x128xf32>
    %772 = arith.addf %770, %771 : vector<2x128xf32>
    %773 = vector.extract_strided_slice %772 {offsets = [0, 0], sizes = [2, 32], strides = [1, 1]} : vector<2x128xf32> to vector<2x32xf32>
    %774 = arith.negf %773 : vector<2x32xf32>
    %775 = math.exp %774 : vector<2x32xf32>
    %cst_128 = arith.constant 1.000000e+00 : f32
    %776 = vector.broadcast %cst_128 : f32 to vector<2x32xf32>
    %777 = arith.addf %776, %775 : vector<2x32xf32>
    %778 = arith.divf %776, %777 : vector<2x32xf32>
    %779 = vector.extract_strided_slice %772 {offsets = [0, 32], sizes = [2, 32], strides = [1, 1]} : vector<2x128xf32> to vector<2x32xf32>
    %780 = arith.negf %779 : vector<2x32xf32>
    %781 = math.exp %780 : vector<2x32xf32>
    %cst_129 = arith.constant 1.000000e+00 : f32
    %782 = vector.broadcast %cst_129 : f32 to vector<2x32xf32>
    %783 = arith.addf %782, %781 : vector<2x32xf32>
    %784 = arith.divf %782, %783 : vector<2x32xf32>
    %785 = vector.extract_strided_slice %772 {offsets = [0, 64], sizes = [2, 32], strides = [1, 1]} : vector<2x128xf32> to vector<2x32xf32>
    %786 = math.tanh %785 : vector<2x32xf32>
    %787 = vector.extract_strided_slice %772 {offsets = [0, 96], sizes = [2, 32], strides = [1, 1]} : vector<2x128xf32> to vector<2x32xf32>
    %788 = arith.negf %787 : vector<2x32xf32>
    %789 = math.exp %788 : vector<2x32xf32>
    %cst_130 = arith.constant 1.000000e+00 : f32
    %790 = vector.broadcast %cst_130 : f32 to vector<2x32xf32>
    %791 = arith.addf %790, %789 : vector<2x32xf32>
    %792 = arith.divf %790, %791 : vector<2x32xf32>
    %793 = arith.mulf %784, %737 : vector<2x32xf32>
    %794 = arith.mulf %778, %786 : vector<2x32xf32>
    %795 = arith.addf %793, %794 : vector<2x32xf32>
    %796 = math.tanh %795 : vector<2x32xf32>
    %797 = arith.mulf %792, %796 : vector<2x32xf32>
    %798 = vector.extract_strided_slice %503 {offsets = [5, 0, 0], sizes = [1, 2, 128], strides = [1, 1, 1]} : vector<8x2x256xf32> to vector<1x2x128xf32>
    %799 = vector.shape_cast %798 : vector<1x2x128xf32> to vector<2x128xf32>
    %cst_131 = arith.constant dense<0.000000e+00> : vector<2x128xf32>
    %800 = tpu.matmul %768, %496, %cst_131 {dimension_numbers = #tpu.dot_dimension_numbers<[1], [0], [0], [1], [0, 0, 1, 1], [], []>} : vector<2x32xf32>, vector<32x128xf32>, vector<2x128xf32> -> vector<2x128xf32>
    %801 = arith.addf %799, %800 : vector<2x128xf32>
    %802 = vector.extract_strided_slice %801 {offsets = [0, 0], sizes = [2, 32], strides = [1, 1]} : vector<2x128xf32> to vector<2x32xf32>
    %803 = arith.negf %802 : vector<2x32xf32>
    %804 = math.exp %803 : vector<2x32xf32>
    %cst_132 = arith.constant 1.000000e+00 : f32
    %805 = vector.broadcast %cst_132 : f32 to vector<2x32xf32>
    %806 = arith.addf %805, %804 : vector<2x32xf32>
    %807 = arith.divf %805, %806 : vector<2x32xf32>
    %808 = vector.extract_strided_slice %801 {offsets = [0, 32], sizes = [2, 32], strides = [1, 1]} : vector<2x128xf32> to vector<2x32xf32>
    %809 = arith.negf %808 : vector<2x32xf32>
    %810 = math.exp %809 : vector<2x32xf32>
    %cst_133 = arith.constant 1.000000e+00 : f32
    %811 = vector.broadcast %cst_133 : f32 to vector<2x32xf32>
    %812 = arith.addf %811, %810 : vector<2x32xf32>
    %813 = arith.divf %811, %812 : vector<2x32xf32>
    %814 = vector.extract_strided_slice %801 {offsets = [0, 64], sizes = [2, 32], strides = [1, 1]} : vector<2x128xf32> to vector<2x32xf32>
    %815 = math.tanh %814 : vector<2x32xf32>
    %816 = vector.extract_strided_slice %801 {offsets = [0, 96], sizes = [2, 32], strides = [1, 1]} : vector<2x128xf32> to vector<2x32xf32>
    %817 = arith.negf %816 : vector<2x32xf32>
    %818 = math.exp %817 : vector<2x32xf32>
    %cst_134 = arith.constant 1.000000e+00 : f32
    %819 = vector.broadcast %cst_134 : f32 to vector<2x32xf32>
    %820 = arith.addf %819, %818 : vector<2x32xf32>
    %821 = arith.divf %819, %820 : vector<2x32xf32>
    %822 = arith.mulf %813, %766 : vector<2x32xf32>
    %823 = arith.mulf %807, %815 : vector<2x32xf32>
    %824 = arith.addf %822, %823 : vector<2x32xf32>
    %825 = math.tanh %824 : vector<2x32xf32>
    %826 = arith.mulf %821, %825 : vector<2x32xf32>
    %827 = vector.extract_strided_slice %503 {offsets = [2, 0, 128], sizes = [1, 2, 128], strides = [1, 1, 1]} : vector<8x2x256xf32> to vector<1x2x128xf32>
    %828 = vector.shape_cast %827 : vector<1x2x128xf32> to vector<2x128xf32>
    %cst_135 = arith.constant dense<0.000000e+00> : vector<2x128xf32>
    %829 = tpu.matmul %797, %497, %cst_135 {dimension_numbers = #tpu.dot_dimension_numbers<[1], [0], [0], [1], [0, 0, 1, 1], [], []>} : vector<2x32xf32>, vector<32x128xf32>, vector<2x128xf32> -> vector<2x128xf32>
    %830 = arith.addf %828, %829 : vector<2x128xf32>
    %831 = vector.extract_strided_slice %830 {offsets = [0, 0], sizes = [2, 32], strides = [1, 1]} : vector<2x128xf32> to vector<2x32xf32>
    %832 = arith.negf %831 : vector<2x32xf32>
    %833 = math.exp %832 : vector<2x32xf32>
    %cst_136 = arith.constant 1.000000e+00 : f32
    %834 = vector.broadcast %cst_136 : f32 to vector<2x32xf32>
    %835 = arith.addf %834, %833 : vector<2x32xf32>
    %836 = arith.divf %834, %835 : vector<2x32xf32>
    %837 = vector.extract_strided_slice %830 {offsets = [0, 32], sizes = [2, 32], strides = [1, 1]} : vector<2x128xf32> to vector<2x32xf32>
    %838 = arith.negf %837 : vector<2x32xf32>
    %839 = math.exp %838 : vector<2x32xf32>
    %cst_137 = arith.constant 1.000000e+00 : f32
    %840 = vector.broadcast %cst_137 : f32 to vector<2x32xf32>
    %841 = arith.addf %840, %839 : vector<2x32xf32>
    %842 = arith.divf %840, %841 : vector<2x32xf32>
    %843 = vector.extract_strided_slice %830 {offsets = [0, 64], sizes = [2, 32], strides = [1, 1]} : vector<2x128xf32> to vector<2x32xf32>
    %844 = math.tanh %843 : vector<2x32xf32>
    %845 = vector.extract_strided_slice %830 {offsets = [0, 96], sizes = [2, 32], strides = [1, 1]} : vector<2x128xf32> to vector<2x32xf32>
    %846 = arith.negf %845 : vector<2x32xf32>
    %847 = math.exp %846 : vector<2x32xf32>
    %cst_138 = arith.constant 1.000000e+00 : f32
    %848 = vector.broadcast %cst_138 : f32 to vector<2x32xf32>
    %849 = arith.addf %848, %847 : vector<2x32xf32>
    %850 = arith.divf %848, %849 : vector<2x32xf32>
    %851 = arith.mulf %842, %795 : vector<2x32xf32>
    %852 = arith.mulf %836, %844 : vector<2x32xf32>
    %853 = arith.addf %851, %852 : vector<2x32xf32>
    %854 = math.tanh %853 : vector<2x32xf32>
    %855 = arith.mulf %850, %854 : vector<2x32xf32>
    %856 = vector.extract_strided_slice %503 {offsets = [6, 0, 0], sizes = [1, 2, 128], strides = [1, 1, 1]} : vector<8x2x256xf32> to vector<1x2x128xf32>
    %857 = vector.shape_cast %856 : vector<1x2x128xf32> to vector<2x128xf32>
    %cst_139 = arith.constant dense<0.000000e+00> : vector<2x128xf32>
    %858 = tpu.matmul %826, %496, %cst_139 {dimension_numbers = #tpu.dot_dimension_numbers<[1], [0], [0], [1], [0, 0, 1, 1], [], []>} : vector<2x32xf32>, vector<32x128xf32>, vector<2x128xf32> -> vector<2x128xf32>
    %859 = arith.addf %857, %858 : vector<2x128xf32>
    %860 = vector.extract_strided_slice %859 {offsets = [0, 0], sizes = [2, 32], strides = [1, 1]} : vector<2x128xf32> to vector<2x32xf32>
    %861 = arith.negf %860 : vector<2x32xf32>
    %862 = math.exp %861 : vector<2x32xf32>
    %cst_140 = arith.constant 1.000000e+00 : f32
    %863 = vector.broadcast %cst_140 : f32 to vector<2x32xf32>
    %864 = arith.addf %863, %862 : vector<2x32xf32>
    %865 = arith.divf %863, %864 : vector<2x32xf32>
    %866 = vector.extract_strided_slice %859 {offsets = [0, 32], sizes = [2, 32], strides = [1, 1]} : vector<2x128xf32> to vector<2x32xf32>
    %867 = arith.negf %866 : vector<2x32xf32>
    %868 = math.exp %867 : vector<2x32xf32>
    %cst_141 = arith.constant 1.000000e+00 : f32
    %869 = vector.broadcast %cst_141 : f32 to vector<2x32xf32>
    %870 = arith.addf %869, %868 : vector<2x32xf32>
    %871 = arith.divf %869, %870 : vector<2x32xf32>
    %872 = vector.extract_strided_slice %859 {offsets = [0, 64], sizes = [2, 32], strides = [1, 1]} : vector<2x128xf32> to vector<2x32xf32>
    %873 = math.tanh %872 : vector<2x32xf32>
    %874 = vector.extract_strided_slice %859 {offsets = [0, 96], sizes = [2, 32], strides = [1, 1]} : vector<2x128xf32> to vector<2x32xf32>
    %875 = arith.negf %874 : vector<2x32xf32>
    %876 = math.exp %875 : vector<2x32xf32>
    %cst_142 = arith.constant 1.000000e+00 : f32
    %877 = vector.broadcast %cst_142 : f32 to vector<2x32xf32>
    %878 = arith.addf %877, %876 : vector<2x32xf32>
    %879 = arith.divf %877, %878 : vector<2x32xf32>
    %880 = arith.mulf %871, %824 : vector<2x32xf32>
    %881 = arith.mulf %865, %873 : vector<2x32xf32>
    %882 = arith.addf %880, %881 : vector<2x32xf32>
    %883 = math.tanh %882 : vector<2x32xf32>
    %884 = arith.mulf %879, %883 : vector<2x32xf32>
    %885 = vector.extract_strided_slice %503 {offsets = [1, 0, 128], sizes = [1, 2, 128], strides = [1, 1, 1]} : vector<8x2x256xf32> to vector<1x2x128xf32>
    %886 = vector.shape_cast %885 : vector<1x2x128xf32> to vector<2x128xf32>
    %cst_143 = arith.constant dense<0.000000e+00> : vector<2x128xf32>
    %887 = tpu.matmul %855, %497, %cst_143 {dimension_numbers = #tpu.dot_dimension_numbers<[1], [0], [0], [1], [0, 0, 1, 1], [], []>} : vector<2x32xf32>, vector<32x128xf32>, vector<2x128xf32> -> vector<2x128xf32>
    %888 = arith.addf %886, %887 : vector<2x128xf32>
    %889 = vector.extract_strided_slice %888 {offsets = [0, 0], sizes = [2, 32], strides = [1, 1]} : vector<2x128xf32> to vector<2x32xf32>
    %890 = arith.negf %889 : vector<2x32xf32>
    %891 = math.exp %890 : vector<2x32xf32>
    %cst_144 = arith.constant 1.000000e+00 : f32
    %892 = vector.broadcast %cst_144 : f32 to vector<2x32xf32>
    %893 = arith.addf %892, %891 : vector<2x32xf32>
    %894 = arith.divf %892, %893 : vector<2x32xf32>
    %895 = vector.extract_strided_slice %888 {offsets = [0, 32], sizes = [2, 32], strides = [1, 1]} : vector<2x128xf32> to vector<2x32xf32>
    %896 = arith.negf %895 : vector<2x32xf32>
    %897 = math.exp %896 : vector<2x32xf32>
    %cst_145 = arith.constant 1.000000e+00 : f32
    %898 = vector.broadcast %cst_145 : f32 to vector<2x32xf32>
    %899 = arith.addf %898, %897 : vector<2x32xf32>
    %900 = arith.divf %898, %899 : vector<2x32xf32>
    %901 = vector.extract_strided_slice %888 {offsets = [0, 64], sizes = [2, 32], strides = [1, 1]} : vector<2x128xf32> to vector<2x32xf32>
    %902 = math.tanh %901 : vector<2x32xf32>
    %903 = vector.extract_strided_slice %888 {offsets = [0, 96], sizes = [2, 32], strides = [1, 1]} : vector<2x128xf32> to vector<2x32xf32>
    %904 = arith.negf %903 : vector<2x32xf32>
    %905 = math.exp %904 : vector<2x32xf32>
    %cst_146 = arith.constant 1.000000e+00 : f32
    %906 = vector.broadcast %cst_146 : f32 to vector<2x32xf32>
    %907 = arith.addf %906, %905 : vector<2x32xf32>
    %908 = arith.divf %906, %907 : vector<2x32xf32>
    %909 = arith.mulf %900, %853 : vector<2x32xf32>
    %910 = arith.mulf %894, %902 : vector<2x32xf32>
    %911 = arith.addf %909, %910 : vector<2x32xf32>
    %912 = math.tanh %911 : vector<2x32xf32>
    %913 = arith.mulf %908, %912 : vector<2x32xf32>
    %914 = vector.extract_strided_slice %503 {offsets = [7, 0, 0], sizes = [1, 2, 128], strides = [1, 1, 1]} : vector<8x2x256xf32> to vector<1x2x128xf32>
    %915 = vector.shape_cast %914 : vector<1x2x128xf32> to vector<2x128xf32>
    %cst_147 = arith.constant dense<0.000000e+00> : vector<2x128xf32>
    %916 = tpu.matmul %884, %496, %cst_147 {dimension_numbers = #tpu.dot_dimension_numbers<[1], [0], [0], [1], [0, 0, 1, 1], [], []>} : vector<2x32xf32>, vector<32x128xf32>, vector<2x128xf32> -> vector<2x128xf32>
    %917 = arith.addf %915, %916 : vector<2x128xf32>
    %918 = vector.extract_strided_slice %917 {offsets = [0, 0], sizes = [2, 32], strides = [1, 1]} : vector<2x128xf32> to vector<2x32xf32>
    %919 = arith.negf %918 : vector<2x32xf32>
    %920 = math.exp %919 : vector<2x32xf32>
    %cst_148 = arith.constant 1.000000e+00 : f32
    %921 = vector.broadcast %cst_148 : f32 to vector<2x32xf32>
    %922 = arith.addf %921, %920 : vector<2x32xf32>
    %923 = arith.divf %921, %922 : vector<2x32xf32>
    %924 = vector.extract_strided_slice %917 {offsets = [0, 32], sizes = [2, 32], strides = [1, 1]} : vector<2x128xf32> to vector<2x32xf32>
    %925 = arith.negf %924 : vector<2x32xf32>
    %926 = math.exp %925 : vector<2x32xf32>
    %cst_149 = arith.constant 1.000000e+00 : f32
    %927 = vector.broadcast %cst_149 : f32 to vector<2x32xf32>
    %928 = arith.addf %927, %926 : vector<2x32xf32>
    %929 = arith.divf %927, %928 : vector<2x32xf32>
    %930 = vector.extract_strided_slice %917 {offsets = [0, 64], sizes = [2, 32], strides = [1, 1]} : vector<2x128xf32> to vector<2x32xf32>
    %931 = math.tanh %930 : vector<2x32xf32>
    %932 = vector.extract_strided_slice %917 {offsets = [0, 96], sizes = [2, 32], strides = [1, 1]} : vector<2x128xf32> to vector<2x32xf32>
    %933 = arith.negf %932 : vector<2x32xf32>
    %934 = math.exp %933 : vector<2x32xf32>
    %cst_150 = arith.constant 1.000000e+00 : f32
    %935 = vector.broadcast %cst_150 : f32 to vector<2x32xf32>
    %936 = arith.addf %935, %934 : vector<2x32xf32>
    %937 = arith.divf %935, %936 : vector<2x32xf32>
    %938 = arith.mulf %929, %882 : vector<2x32xf32>
    %939 = arith.mulf %923, %931 : vector<2x32xf32>
    %940 = arith.addf %938, %939 : vector<2x32xf32>
    %941 = math.tanh %940 : vector<2x32xf32>
    %942 = arith.mulf %937, %941 : vector<2x32xf32>
    %943 = vector.extract_strided_slice %503 {offsets = [0, 0, 128], sizes = [1, 2, 128], strides = [1, 1, 1]} : vector<8x2x256xf32> to vector<1x2x128xf32>
    %944 = vector.shape_cast %943 : vector<1x2x128xf32> to vector<2x128xf32>
    %cst_151 = arith.constant dense<0.000000e+00> : vector<2x128xf32>
    %945 = tpu.matmul %913, %497, %cst_151 {dimension_numbers = #tpu.dot_dimension_numbers<[1], [0], [0], [1], [0, 0, 1, 1], [], []>} : vector<2x32xf32>, vector<32x128xf32>, vector<2x128xf32> -> vector<2x128xf32>
    %946 = arith.addf %944, %945 : vector<2x128xf32>
    %947 = vector.extract_strided_slice %946 {offsets = [0, 0], sizes = [2, 32], strides = [1, 1]} : vector<2x128xf32> to vector<2x32xf32>
    %948 = arith.negf %947 : vector<2x32xf32>
    %949 = math.exp %948 : vector<2x32xf32>
    %cst_152 = arith.constant 1.000000e+00 : f32
    %950 = vector.broadcast %cst_152 : f32 to vector<2x32xf32>
    %951 = arith.addf %950, %949 : vector<2x32xf32>
    %952 = arith.divf %950, %951 : vector<2x32xf32>
    %953 = vector.extract_strided_slice %946 {offsets = [0, 32], sizes = [2, 32], strides = [1, 1]} : vector<2x128xf32> to vector<2x32xf32>
    %954 = arith.negf %953 : vector<2x32xf32>
    %955 = math.exp %954 : vector<2x32xf32>
    %cst_153 = arith.constant 1.000000e+00 : f32
    %956 = vector.broadcast %cst_153 : f32 to vector<2x32xf32>
    %957 = arith.addf %956, %955 : vector<2x32xf32>
    %958 = arith.divf %956, %957 : vector<2x32xf32>
    %959 = vector.extract_strided_slice %946 {offsets = [0, 64], sizes = [2, 32], strides = [1, 1]} : vector<2x128xf32> to vector<2x32xf32>
    %960 = math.tanh %959 : vector<2x32xf32>
    %961 = vector.extract_strided_slice %946 {offsets = [0, 96], sizes = [2, 32], strides = [1, 1]} : vector<2x128xf32> to vector<2x32xf32>
    %962 = arith.negf %961 : vector<2x32xf32>
    %963 = math.exp %962 : vector<2x32xf32>
    %cst_154 = arith.constant 1.000000e+00 : f32
    %964 = vector.broadcast %cst_154 : f32 to vector<2x32xf32>
    %965 = arith.addf %964, %963 : vector<2x32xf32>
    %966 = arith.divf %964, %965 : vector<2x32xf32>
    %967 = arith.mulf %958, %911 : vector<2x32xf32>
    %968 = arith.mulf %952, %960 : vector<2x32xf32>
    %969 = arith.addf %967, %968 : vector<2x32xf32>
    %970 = math.tanh %969 : vector<2x32xf32>
    %971 = arith.mulf %966, %970 : vector<2x32xf32>
    %972 = tpu.concatenate %942, %971 in 1 : vector<2x32xf32>, vector<2x32xf32> -> vector<2x64xf32>
    %c0_155 = arith.constant 0 : index
    %c0_156 = arith.constant 0 : index
    %973 = vector.load %arg10[%c0_155, %c0_156] : memref<64x2xf32, #tpu.memory_space<vmem>>, vector<64x2xf32>
    %cst_157 = arith.constant dense<0.000000e+00> : vector<2x2xf32>
    %974 = tpu.matmul %972, %973, %cst_157 {dimension_numbers = #tpu.dot_dimension_numbers<[1], [0], [0], [1], [0, 0, 1, 1], [], []>} : vector<2x64xf32>, vector<64x2xf32>, vector<2x2xf32> -> vector<2x2xf32>
    %c0_158 = arith.constant 0 : index
    %c0_159 = arith.constant 0 : index
    %975 = vector.load %arg11[%c0_158, %c0_159] : memref<1x2xf32, #tpu.memory_space<vmem>>, vector<1x2xf32>
    %976 = vector.broadcast %975 : vector<1x2xf32> to vector<2x2xf32>
    %977 = arith.addf %974, %976 : vector<2x2xf32>
    %cst_160 = arith.constant dense<0xFF800000> : vector<2xf32>
    %978 = vector.multi_reduction <maximumf>, %977, %cst_160 [1] : vector<2x2xf32> to vector<2xf32>
    %979 = vector.shape_cast %978 : vector<2xf32> to vector<2x1xf32>
    %980 = vector.broadcast %979 : vector<2x1xf32> to vector<2x2xf32>
    %981 = arith.subf %977, %980 : vector<2x2xf32>
    %982 = math.exp %981 : vector<2x2xf32>
    %cst_161 = arith.constant dense<0.000000e+00> : vector<2xf32>
    %983 = vector.multi_reduction <add>, %982, %cst_161 [1] : vector<2x2xf32> to vector<2xf32>
    %984 = vector.shape_cast %983 : vector<2xf32> to vector<2x1xf32>
    %985 = math.log %984 : vector<2x1xf32>
    %986 = vector.broadcast %985 : vector<2x1xf32> to vector<2x2xf32>
    %987 = arith.subf %981, %986 : vector<2x2xf32>
    %c0_162 = arith.constant 0 : index
    %c0_163 = arith.constant 0 : index
    %988 = vector.load %arg12[%c0_162, %c0_163] : memref<2x2xf32, #tpu.memory_space<vmem>>, vector<2x2xf32>
    tpu.vector_store %arg12[%c0_162, %c0_163], %987 {strides = array<i32>} : memref<2x2xf32, #tpu.memory_space<vmem>>, vector<2x2xf32>,
    return
  }
  func.func @transform_0(%arg0: i32) -> (i32, i32, i32) {
    %c0_i32 = arith.constant 0 : i32
    %c0_i32_0 = arith.constant 0 : i32
    %c0_i32_1 = arith.constant 0 : i32
    %c0_i32_2 = arith.constant 0 : i32
    return %c0_i32, %c0_i32_0, %c0_i32_1 : i32, i32, i32
  }
  func.func @transform_1(%arg0: i32) -> (i32, i32) {
    %c0_i32 = arith.constant 0 : i32
    %c0_i32_0 = arith.constant 0 : i32
    %c0_i32_1 = arith.constant 0 : i32
    return %c0_i32, %c0_i32_0 : i32, i32
  }
  func.func @transform_2(%arg0: i32) -> (i32, i32) {
    %c0_i32 = arith.constant 0 : i32
    %c0_i32_0 = arith.constant 0 : i32
    %c0_i32_1 = arith.constant 0 : i32
    return %c0_i32, %c0_i32_0 : i32, i32
  }
  func.func @transform_3(%arg0: i32) -> (i32, i32) {
    %c0_i32 = arith.constant 0 : i32
    %c0_i32_0 = arith.constant 0 : i32
    %c0_i32_1 = arith.constant 0 : i32
    return %c0_i32, %c0_i32_0 : i32, i32
  }
  func.func @transform_4(%arg0: i32) -> (i32, i32) {
    %c0_i32 = arith.constant 0 : i32
    %c0_i32_0 = arith.constant 0 : i32
    %c0_i32_1 = arith.constant 0 : i32
    return %c0_i32, %c0_i32_0 : i32, i32
  }
  func.func @transform_5(%arg0: i32) -> (i32, i32) {
    %c0_i32 = arith.constant 0 : i32
    %c0_i32_0 = arith.constant 0 : i32
    %c0_i32_1 = arith.constant 0 : i32
    return %c0_i32, %c0_i32_0 : i32, i32
  }
  func.func @transform_6(%arg0: i32) -> (i32, i32) {
    %c0_i32 = arith.constant 0 : i32
    %c0_i32_0 = arith.constant 0 : i32
    %c0_i32_1 = arith.constant 0 : i32
    return %c0_i32, %c0_i32_0 : i32, i32
  }
  func.func @transform_7(%arg0: i32) -> (i32, i32) {
    %c0_i32 = arith.constant 0 : i32
    %c0_i32_0 = arith.constant 0 : i32
    %c0_i32_1 = arith.constant 0 : i32
    return %c0_i32, %c0_i32_0 : i32, i32
  }
  func.func @transform_8(%arg0: i32) -> (i32, i32) {
    %c0_i32 = arith.constant 0 : i32
    %c0_i32_0 = arith.constant 0 : i32
    %c0_i32_1 = arith.constant 0 : i32
    return %c0_i32, %c0_i32_0 : i32, i32
  }
  func.func @transform_9(%arg0: i32) -> (i32, i32) {
    %c0_i32 = arith.constant 0 : i32
    %c0_i32_0 = arith.constant 0 : i32
    %c0_i32_1 = arith.constant 0 : i32
    return %c0_i32, %c0_i32_0 : i32, i32
  }
  func.func @transform_10(%arg0: i32) -> (i32, i32) {
    %c0_i32 = arith.constant 0 : i32
    %c0_i32_0 = arith.constant 0 : i32
    %c0_i32_1 = arith.constant 0 : i32
    return %c0_i32, %c0_i32_0 : i32, i32
  }
  func.func @transform_11(%arg0: i32) -> (i32, i32) {
    %c0_i32 = arith.constant 0 : i32
    %c0_i32_0 = arith.constant 0 : i32
    %c0_i32_1 = arith.constant 0 : i32
    return %c0_i32, %c0_i32_0 : i32, i32
  }
}

</mosaic_0001>

<bundles_post_ra>
// kernel: forward.1
= control target key start
LH: loop header
LB: loop body
LE: loop exit
PB: predicated region body
PF: predicated region fallthrough
CT: control target
= control target key end

     0   :  { %16 = vsyncpa [#allocation3], 0  ;;  %s3863_s0 = inlined_call_operand.vmem [shape: f32[8,2,128], index: 0, kind: input, shape index: {}]   ;;  %s3864_s1 = inlined_call_operand.hbm [shape: f32[128,256], index: 1, kind: input, shape index: {}]   ;;  %s3865_s2 = inlined_call_operand.vmem [shape: f32[32,128], index: 2, kind: input, shape index: {}]   ;;  %s3866_s3 = inlined_call_operand.vmem [shape: f32[32,128], index: 3, kind: input, shape index: {}]   ;;  %s3867_s4 = inlined_call_operand.vmem [shape: f32[1,256], index: 4, kind: input, shape index: {}]   ;;  %s3868_s5 = inlined_call_operand.vmem [shape: f32[64,256], index: 5, kind: input, shape index: {}]   ;;  %s3869_s6 = inlined_call_operand.vmem [shape: f32[32,128], index: 6, kind: input, shape index: {}]   ;;  %s3870_s7 = inlined_call_operand.vmem [shape: f32[32,128], index: 7, kind: input, shape index: {}]   ;;  %s3871_s8 = inlined_call_operand.vmem [shape: f32[1,256], index: 8, kind: input, shape index: {}]   ;;  %s3872_s9 = inlined_call_operand.vmem [shape: f32[64,2], index: 9, kind: input, shape index: {}]   ;;  %s3873_s10 = inlined_call_operand.vmem [shape: f32[1,2], index: 10, kind: input, shape index: {}]   ;;  %s3874_s11 = inlined_call_operand.hbm [shape: f32[2,2], index: 11, kind: output, shape index: {}]  }
   0x1   :  { %17 = vsyncpa [#allocation4], 0  ;;  %s24_s19 = sshll.u32 %s3864_s1, 4  ;;  %s2994_s20 = smov [#allocation2]   ;;  %s25_s19 = int_to_ptr.hbm [resolvable:$true] %s24_s19 }
   0x2   :  { %s26_s21 = sshll.u32 %s2994_s20, 4  ;;  %s2995_s22 = smov 256   ;;  %s27_s21 = int_to_ptr.vmem [resolvable:$true] %s26_s21 }
   0x3   :  { %s2996_s23 = smov 16  }
   0x4   :  { %32 = dma.hbm_to_vmem [thread:$0]  %s25_s19, 4096, %s27_s21, [#allocation3], %s2995_s22, %s2995_s22, %s2996_s23  }
   0x5   :  { %2990 = dma.done.wait [#allocation3], 4096  }
   0x6   :  { %2991 = vsyncadd [#allocation3], 4294963200  ;;  %v94_v0 = vld [vmem:[#allocation2 + $0xf8] sm:$0xff]  ;;  %v93_v1 = vld [vmem:[#allocation2 + $0xf0] sm:$0xff]  ;;  %v2997_v33 = vmov 0.0   ;;  %vm188_vm0 = vcmask 1041408  }
   0x7   :  { %v92_v2 = vld [vmem:[#allocation2 + $0xe8] sm:$0xff]  ;;  %159 = vmatpush.msra.mxu1 %v94_v0  ;;  %136 = vmatpush.msra.mxu0 %v93_v1  ;;  %v91_v3 = vld [vmem:[#allocation2 + $0xe0] sm:$0xff]  ;;  %v90_v4 = vld [vmem:[#allocation2 + $0xd8] sm:$0xff]  ;;  %vm196_vm1 = vcmask 1045504   ;;  %vm190_vm2 = vcmask 1043458   ;;  %vm193_vm3 = vcmask 1045508  }
   0x8   :  { %v89_v5 = vld [vmem:[#allocation2 + $0xd0] sm:$0xff]  ;;  %v88_v6 = vld [vmem:[#allocation2 + $0xc8] sm:$0xff]  ;;  %v87_v7 = vld [vmem:[#allocation2 + $0xc0] sm:$0xff]  ;;  %s2999_s16 = smov 32   ;;  %vm214_vm12 = vcmask 261120   ;;  %s2595_s20 = sshll.u32 %s3874_s11, 4  ;;  %s2596_s20 = int_to_ptr.hbm [resolvable:$true] %s2595_s20 }
   0x9   :  { %160 = vmatpush.msra.mxu1 %v92_v2  ;;  %137 = vmatpush.msra.mxu0 %v91_v3  ;;  %v86_v8 = vld [vmem:[#allocation2 + $0xb8] sm:$0xff]  ;;  %v85_v9 = vld [vmem:[#allocation2 + $0xb0] sm:$0xff]  ;;  %v84_v11 = vld [vmem:[#allocation2 + $0xa8] sm:$0xff] }
   0xa   :  { %v3067_v10 = vld [vmem:[%s3865_s2 + $0x18] sm:$0xff]  ;;  %v83_v12 = vld [vmem:[#allocation2 + $0xa0] sm:$0xff]  ;;  %v3073_v13 = vld [vmem:[%s3865_s2 + $0x10] sm:$0xff] }
   0xb   :  { %161 = vmatpush.msra.mxu1 %v90_v4  ;;  %138 = vmatpush.msra.mxu0 %v89_v5  ;;  %v3078_v14 = vld [vmem:[%s3865_s2 + $0x8] sm:$0xff]  ;;  %v82_v15 = vld [vmem:[#allocation2 + $0x98] sm:$0xff]  ;;  %v81_v16 = vld [vmem:[#allocation2 + $0x90] sm:$0xff] }
   0xc   :  { %230 = vmatpush.msra.mxu2 %v3067_v10  ;;  %v80_v17 = vld [vmem:[#allocation2 + $0x88] sm:$0xff]  ;;  %v79_v18 = vld [vmem:[#allocation2 + $0x80] sm:$0xff]  ;;  %v3084_v19 = vld [vmem:[%s3865_s2] sm:$0xff] }
   0xd   :  { %162 = vmatpush.msra.mxu1 %v88_v6  ;;  %139 = vmatpush.msra.mxu0 %v87_v7  ;;  %v55_v20 = vld [vmem:[%s3863_s0] sm:$0x3]  ;;  %v56_v22 = vld [vmem:[%s3863_s0 + $0x2] sm:$0x3]  ;;  %v57_v23 = vld [vmem:[%s3863_s0 + $0x4] sm:$0x3] }
   0xe   :  { %231 = vmatpush.msra.mxu2 %v3073_v13  ;;  %v78_v21 = vld [vmem:[#allocation2 + $0x78] sm:$0xff]  ;;  %117 = vst [vmem:[#allocation1] ss:$4 sm:$0xff] %v55_v20  ;;  %v3102_v25 = vld [vmem:[%s3866_s3 + $0x18] sm:$0xff]  ;;  %v3107_v26 = vld [vmem:[%s3866_s3 + $0x10] sm:$0xff] }
   0xf   :  { %163 = vmatpush.msra.mxu1 %v86_v8  ;;  %140 = vmatpush.msra.mxu0 %v85_v9  ;;  %v58_v24 = vld [vmem:[%s3863_s0 + $0x6] sm:$0x3]  ;;  %v77_v27 = vld [vmem:[#allocation2 + $0x70] sm:$0xff]  ;;  %v76_v28 = vld [vmem:[#allocation2 + $0x68] sm:$0xff]  ;;  %119 = vst [vmem:[#allocation1 + $0x1] ss:$4 sm:$0xff] %v56_v22 }
  0x10   :  { %232 = vmatpush.msra.mxu2 %v3078_v14  ;;  %290 = vmatpush.msra.mxu3 %v3102_v25  ;;  %v59_v29 = vld [vmem:[%s3863_s0 + $0x8] sm:$0x3]  ;;  %121 = vst [vmem:[#allocation1 + $0x2] ss:$4 sm:$0xff] %v57_v23  ;;  %v60_v30 = vld [vmem:[%s3863_s0 + $0xa] sm:$0x3] }
  0x11   :  { %164 = vmatpush.msra.mxu1 %v84_v11  ;;  %141 = vmatpush.msra.mxu0 %v83_v12  ;;  %v61_v31 = vld [vmem:[%s3863_s0 + $0xc] sm:$0x3]  ;;  %123 = vst [vmem:[#allocation1 + $0x3] ss:$4 sm:$0xff] %v58_v24  ;;  %v62_v34 = vld [vmem:[%s3863_s0 + $0xe] sm:$0x3] }
  0x12   :  { %233 = vmatpush.msra.mxu2 %v3084_v19  ;;  %v75_v32 = vld [vmem:[#allocation2 + $0x60] sm:$0xff]  ;;  %291 = vmatpush.msra.mxu3 %v3107_v26  ;;  %125 = vst [vmem:[#allocation1 + $0x20] ss:$4 sm:$0xff] %v59_v29  ;;  %v3133_v36 = vld [vmem:[%s3866_s3] sm:$0xff]  ;;  %v73_v38 = vld [vmem:[#allocation2 + $0x50] sm:$0xff] }
  0x13   :  { %165 = vmatpush.msra.mxu1 %v82_v15  ;;  %142 = vmatpush.msra.mxu0 %v81_v16  ;;  %v3128_v35 = vld [vmem:[%s3866_s3 + $0x8] sm:$0xff]  ;;  %v74_v37 = vld [vmem:[#allocation2 + $0x58] sm:$0xff]  ;;  %127 = vst [vmem:[#allocation1 + $0x21] ss:$4 sm:$0xff] %v60_v30  ;;  %v72_v39 = vld [vmem:[#allocation2 + $0x48] sm:$0xff] }
  0x14   :  { %234 = vmatmul.f32.vlgmr.msra.gmra.mxu2 %v2997_v33  ;;  %292 = vmatpush.msra.mxu3 %v3128_v35  ;;  %129 = vst [vmem:[#allocation1 + $0x22] ss:$4 sm:$0xff] %v61_v31  ;;  %v71_v40 = vld [vmem:[#allocation2 + $0x40] sm:$0xff]  ;;  %v70_v41 = vld [vmem:[#allocation2 + $0x38] sm:$0xff]  ;;  %v69_v42 = vld [vmem:[#allocation2 + $0x30] sm:$0xff] }
  0x15   :  { %166 = vmatpush.msra.mxu1 %v80_v17  ;;  %143 = vmatpush.msra.mxu0 %v79_v18  ;;  %131 = vst [vmem:[#allocation1 + $0x23] ss:$4 sm:$0xff] %v62_v34  ;;  %v68_v43 = vld [vmem:[#allocation2 + $0x28] sm:$0xff]  ;;  %v67_v44 = vld [vmem:[#allocation2 + $0x20] sm:$0xff]  ;;  %v66_v45 = vld [vmem:[#allocation2 + $0x18] sm:$0xff] }
  0x16   :  { %355 = vmatpush.msrb.mxu2 %v3067_v10  ;;  %293 = vmatpush.msra.mxu3 %v3133_v36  ;;  %v65_v46 = vld [vmem:[#allocation2 + $0x10] sm:$0xff]  ;;  %v64_v47 = vld [vmem:[#allocation2 + $0x8] sm:$0xff]  ;;  %v63_v48 = vld [vmem:[#allocation2] sm:$0xff] }
  0x17   :  { %167 = vmatpush.msra.mxu1 %v78_v21  ;;  %144 = vmatpush.msra.mxu0 %v77_v27  ;;  %v103_v51 = vld [vmem:[%s3867_s4] sm:$0x3]  ;;  %s2998_s4 = smov 64  }
  0x18   :  { %356 = vmatpush.msrb.mxu2 %v3073_v13  ;;  %294 = vmatmul.f32.vlgmr.msra.gmra.mxu3 %v2997_v33  ;;  %v132_v49 = vld.sshfl [vmem:[#allocation1] sm:$0xff pattern:$0x73625140]  ;;  %v106_v52 = vperm.slane %v103_v51, 1  ;;  %v105_v53 = vperm.slane %v103_v51, 0 }
  0x19   :  { %168 = vmatpush.msra.mxu1 %v76_v28  ;;  %145 = vmatpush.msra.mxu0 %v75_v32 }
  0x1a   :  { %357 = vmatpush.msrb.mxu2 %v3078_v14  ;;  %422 = vmatpush.msrb.mxu3 %v3102_v25 }
  0x1b   :  { %169 = vmatpush.msra.mxu1 %v74_v37  ;;  %146 = vmatpush.msra.mxu0 %v73_v38 }
  0x1c   :  { %358 = vmatpush.msrb.mxu2 %v3084_v19  ;;  %423 = vmatpush.msrb.mxu3 %v3107_v26  ;;  %v133_v50 = vld.sshfl [vmem:[#allocation1 + $0x20] sm:$0xff pattern:$0x73625140] }
  0x1d   :  { %170 = vmatpush.msra.mxu1 %v72_v39  ;;  %147 = vmatpush.msra.mxu0 %v71_v40 }
  0x1e   :  { %487 = vmatpush.msra.mxu2 %v3067_v10  ;;  %424 = vmatpush.msrb.mxu3 %v3128_v35 }
  0x1f   :  { %171 = vmatpush.msra.mxu1 %v70_v41  ;;  %148 = vmatpush.msra.mxu0 %v69_v42 }
  0x20   :  { %488 = vmatpush.msra.mxu2 %v3073_v13  ;;  %425 = vmatpush.msrb.mxu3 %v3133_v36 }
  0x21   :  { %172 = vmatpush.msra.mxu1 %v68_v43  ;;  %149 = vmatpush.msra.mxu0 %v67_v44 }
  0x22   :  { %489 = vmatpush.msra.mxu2 %v3078_v14  ;;  %554 = vmatpush.msra.mxu3 %v3102_v25 }
  0x23   :  { %173 = vmatpush.msra.mxu1 %v66_v45  ;;  %150 = vmatpush.msra.mxu0 %v65_v46 }
  0x24   :  { %490 = vmatpush.msra.mxu2 %v3084_v19  ;;  %555 = vmatpush.msra.mxu3 %v3107_v26 }
  0x25   :  { %174 = vmatpush.msra.mxu1 %v64_v47  ;;  %151 = vmatpush.msra.mxu0 %v63_v48 }
  0x26   :  { %175 = vmatmul.f32.vlgmr.msra.gmra.mxu1 %v132_v49  ;;  %152 = vmatmul.f32.vlgmr.msra.gmra.mxu0 %v132_v49 }
  0x27   :  { %883 = vmatpush.msrb.mxu1 %v3067_v10  ;;  %1147 = vmatpush.msrb.mxu0 %v3067_v10 }
  0x28   :  { %556 = vmatpush.msra.mxu3 %v3128_v35 }
  0x29   :  { %884 = vmatpush.msrb.mxu1 %v3073_v13  ;;  %1148 = vmatpush.msrb.mxu0 %v3073_v13 }
  0x2a   :  { %557 = vmatpush.msra.mxu3 %v3133_v36 }
  0x2b   :  { %885 = vmatpush.msrb.mxu1 %v3078_v14  ;;  %1149 = vmatpush.msrb.mxu0 %v3078_v14 }
  0x2d   :  { %886 = vmatpush.msrb.mxu1 %v3084_v19  ;;  %1150 = vmatpush.msrb.mxu0 %v3084_v19 }
  0x2e   :  { %178 = vmatmul.f32.gmra.mxu1 %v133_v50  ;;  %155 = vmatmul.f32.gmra.mxu0 %v133_v50 }
  0x2f   :  { %950 = vmatpush.msra.mxu1 %v3102_v25 }
  0x31   :  { %951 = vmatpush.msra.mxu1 %v3107_v26 }
  0x33   :  { %952 = vmatpush.msra.mxu1 %v3128_v35 }
  0x35   :  { %953 = vmatpush.msra.mxu1 %v3133_v36 }
  0x97   :  { %v235_v59 = vpop.f32.mrf.mxu2 }
  0x9b   :  { %v295_v15 = vpop.f32.mrf.mxu3 }
  0xa3   :  { %v176_v54 = vpop.f32.mrf.mxu1  ;;  %v153_v55 = vpop.f32.mrf.mxu0 }
  0xa4   :  { %v177_v56 = vadd.f32 %v176_v54, %v106_v52  ;;  %v154_v57 = vadd.f32 %v153_v55, %v105_v53 }
  0xa6   :  { %v186_v58 = vrot.slane %v177_v56, 6 }
  0xa8   :  { %v3170_v60 = vsel %vm188_vm0, %v154_v57, %v186_v58  ;;  %v3173_v61 = vsel %vm190_vm2, %v154_v57, %v186_v58  ;;  %v3176_v62 = vsel %vm193_vm3, %v154_v57, %v186_v58  ;;  %v3179_v63 = vsel %vm196_vm1, %v186_v58, %v154_v57 }
  0xa9   :  { %v238_v0 = vadd.f32 %v235_v59, %v3170_v60 }
  0xab   :  { %2678 = vtanh.f32 %v238_v0  ;;  %v179_v1 = vpop.f32.mrf.mxu1  ;;  %v156_v2 = vpop.f32.mrf.mxu0  ;;  %v2605_v20 = vmul.f32 -1.442695, %v238_v0 }
  0xac   :  { %v180_v3 = vadd.f32 %v179_v1, %v106_v52  ;;  %v157_v4 = vadd.f32 %v156_v2, %v105_v53 }
  0xae   :  { %v187_v5 = vrot.slane %v180_v3, 6 }
  0xb0   :  { %v3183_v6 = vsel %vm196_vm1, %v187_v5, %v157_v4  ;;  %v3186_v7 = vsel %vm193_vm3, %v157_v4, %v187_v5  ;;  %v3189_v8 = vsel %vm190_vm2, %v157_v4, %v187_v5  ;;  %v3192_v9 = vsel %vm188_vm0, %v157_v4, %v187_v5 }
  0xb1   :  { %v2679_v11 = vpop.eup %2678  ;;  %v205_v12 = vrot.slane %v3183_v6, 6 }
  0xb2   :  { %261 = vrot.lane.b32.xlu0 %v2679_v11, %s2998_s4 }
  0xb3   :  { %v276_v16 = vrot.slane %v205_v12, 2 }
  0xb5   :  { %v298_v17 = vadd.f32 %v295_v15, %v276_v16 }
  0xb7   :  { %2680 = vtanh.f32 %v298_v17  ;;  %v2606_v22 = vmul.f32 -1.442695, %v298_v17 }
  0xb8   :  { %2682 = vpow2.f32 %v2605_v20  ;;  %v192_v20 = vrot.slane %v3173_v61, 2 }
  0xb9   :  { %2684 = vpow2.f32 %v2606_v22 }
  0xbd   :  { %v2681_v18 = vpop.eup %2680 }
  0xbe   :  { %321 = vrot.lane.b32.xlu0 %v2681_v18, %s2998_s4  ;;  %v2683_v21 = vpop.eup %2682 }
  0xbf   :  { %v242_v23 = vadd.f32 1.0, %v2683_v21  ;;  %v2685_v24 = vpop.eup %2684 }
  0xc0   :  { %v302_v28 = vadd.f32 1.0, %v2685_v24 }
  0xc1   :  { %2686 = vrcp.f32 %v242_v23  ;;  %v254_v38 = vand.u32 2147483648, %v242_v23  ;;  %vm248_vm5 = vweird.f32 %v242_v23  ;;  %v252_v39 = vand.u32 2147483647, %v242_v23 }
  0xc2   :  { %2688 = vrcp.f32 %v302_v28  ;;  %v314_v48 = vand.u32 2147483648, %v302_v28  ;;  %vm308_vm9 = vweird.f32 %v302_v28  ;;  %v312_v49 = vand.u32 2147483647, %v302_v28 }
  0xc3   :  { %v255_v42 = vor.u32 1.1754944e-38, %v254_v38  ;;  %vm253_vm7 = vcmp.eq.f32.partialorder %v252_v39, 8.507059e+37 }
  0xc4   :  { %v315_v51 = vor.u32 1.1754944e-38, %v314_v48  ;;  %vm313_vm11 = vcmp.eq.f32.partialorder %v312_v49, 8.507059e+37 }
  0xc7   :  { %v2687_v27 = vpop.eup %2686 }
  0xc8   :  { %v244_v29 = vmul.f32 %v2687_v27, %v242_v23  ;;  %v2689_v32 = vpop.eup %2688  ;;  %vm249_vm4 = vweird.f32 %v2687_v27  ;;  %v203_v23 = vrot.slane %v3186_v7, 4 }
  0xc9   :  { %v304_v37 = vmul.f32 %v2689_v32, %v302_v28  ;;  %vm250_vm6 = vmor %vm248_vm5, %vm249_vm4  ;;  %vm309_vm8 = vweird.f32 %v2689_v32 }
  0xca   :  { %v245_v30 = vsub.f32 1.0, %v244_v29  ;;  %vm310_vm10 = vmor %vm308_vm9, %vm309_vm8 }
  0xcb   :  { %v305_v41 = vsub.f32 1.0, %v304_v37 }
  0xcc   :  { %v246_v31 = vmul.f32 %v2687_v27, %v245_v30 }
  0xcd   :  { %v306_v46 = vmul.f32 %v2689_v32, %v305_v41 }
  0xce   :  { %v247_v34 = vadd.f32 %v2687_v27, %v246_v31 }
  0xcf   :  { %v307_v47 = vadd.f32 %v2689_v32, %v306_v46 }
  0xd0   :  { %v251_v40 = vsel %vm250_vm6, %v2687_v27, %v247_v34  ;;  %v401_v27 = vrot.slane %v203_v23, 2 }
  0xd1   :  { %v256_v44 = vsel %vm253_vm7, %v255_v42, %v251_v40  ;;  %v311_v50 = vsel %vm310_vm10, %v2689_v32, %v307_v47 }
  0xd2   :  { %v316_v52 = vsel %vm313_vm11, %v315_v51, %v311_v50  ;;  %v259_v55 = vmul.f32 0.0, %v256_v44 }
  0xd3   :  { %v319_v59 = vmul.f32 0.0, %v316_v52 }
 0x124   :  { %v262_v43 = vpop.permute.xlu0 %261 }
 0x125   :  { %v264_v45 = vmul.f32 %v262_v43, %v256_v44 }
 0x127   :  { %266 = vrot.lane.b32.xlu1 %v264_v45, %s2999_s16 }
 0x130   :  { %v322_v53 = vpop.permute.xlu0 %321 }
 0x131   :  { %v324_v54 = vmul.f32 %v322_v53, %v316_v52 }
 0x133   :  { %326 = vrot.lane.b32.xlu1 %v324_v54, %s2999_s16 }
 0x199   :  { %v267_v56 = vpop.permute.xlu1 %266 }
 0x19a   :  { %v3201_v57 = vadd.f32 %v267_v56, %v259_v55 }
 0x19c   :  { %2690 = vtanh.f32 %v3201_v57 }
 0x1a2   :  { %v2691_v58 = vpop.eup %2690 }
 0x1a3   :  { %272 = vrot.lane.b32.xlu2 %v2691_v58, %s2998_s4 }
 0x1a5   :  { %v327_v0 = vpop.permute.xlu1 %326 }
 0x1a6   :  { %v3205_v1 = vadd.f32 %v327_v0, %v319_v59 }
 0x1a8   :  { %2692 = vtanh.f32 %v3205_v1 }
 0x1ae   :  { %v2693_v2 = vpop.eup %2692 }
 0x1af   :  { %332 = vrot.lane.b32.xlu2 %v2693_v2, %s2998_s4 }
 0x1fd   :  { %v273_v3 = vpop.permute.xlu2 %272 }
 0x1fe   :  { %v3209_v4 = vmul.f32 %v273_v3, %v256_v44 }
 0x200   :  { %337 = vst [vmem:[#allocation1] ss:$4 sm:$0xff] %v3209_v4 }
 0x207   :  { %v338_v5 = vld.sshfl [vmem:[#allocation1] sm:$0xff pattern:$0x73625140] }
 0x208   :  { %339 = vrot.lane.b32.xlu0 %v338_v5, %s2999_s16 }
 0x209   :  { %v333_v11 = vpop.permute.xlu2 %332 }
 0x20a   :  { %v3213_v15 = vmul.f32 %v333_v11, %v316_v52 }
 0x20c   :  { %404 = vst [vmem:[#allocation1] ss:$4 sm:$0xff] %v3213_v15 }
 0x213   :  { %v405_v16 = vld.sshfl [vmem:[#allocation1] sm:$0xff pattern:$0x73625140] }
 0x214   :  { %406 = vrot.lane.b32.xlu1 %v405_v16, %s2999_s16 }
 0x27a   :  { %v340_v17 = vpop.permute.xlu0 %339 }
 0x27b   :  { %2607 = vmatmul.msk.f32.vlgmr.msrb.gmra.mxu2 %vm214_vm12, %v340_v17 }
 0x27c   :  { %619 = vmatpush.msrb.mxu2 %v3067_v10 }
 0x27e   :  { %620 = vmatpush.msrb.mxu2 %v3073_v13 }
 0x280   :  { %621 = vmatpush.msrb.mxu2 %v3078_v14 }
 0x282   :  { %622 = vmatpush.msrb.mxu2 %v3084_v19 }
 0x286   :  { %v407_v18 = vpop.permute.xlu1 %406 }
 0x287   :  { %2609 = vmatmul.msk.f32.vlgmr.msrb.gmra.mxu3 %vm214_vm12, %v407_v18 }
 0x288   :  { %686 = vmatpush.msrb.mxu3 %v3102_v25 }
 0x28a   :  { %687 = vmatpush.msrb.mxu3 %v3107_v26 }
 0x28c   :  { %688 = vmatpush.msrb.mxu3 %v3128_v35 }
 0x28e   :  { %689 = vmatpush.msrb.mxu3 %v3133_v36 }
 0x2fe   :  { %v360_v21 = vpop.f32.mrf.mxu2 }
 0x2ff   :  { %v363_v22 = vadd.f32 %v360_v21, %v192_v20 }
 0x301   :  { %2694 = vtanh.f32 %v363_v22  ;;  %v2608_v31 = vmul.f32 -1.442695, %v363_v22 }
 0x307   :  { %v2695_v24 = vpop.eup %2694 }
 0x308   :  { %386 = vrot.lane.b32.xlu2 %v2695_v24, %s2998_s4 }
 0x30a   :  { %v427_v28 = vpop.f32.mrf.mxu3 }
 0x30b   :  { %v430_v29 = vadd.f32 %v427_v28, %v401_v27 }
 0x30d   :  { %2696 = vtanh.f32 %v430_v29  ;;  %v2610_v41 = vmul.f32 -1.442695, %v430_v29 }
 0x30e   :  { %2698 = vpow2.f32 %v2608_v31 }
 0x313   :  { %v2697_v30 = vpop.eup %2696 }
 0x314   :  { %453 = vrot.lane.b32.xlu0 %v2697_v30, %s2998_s4  ;;  %v2699_v32 = vpop.eup %2698 }
 0x315   :  { %v367_v34 = vadd.f32 1.0, %v2699_v32 }
 0x317   :  { %2700 = vrcp.f32 %v367_v34  ;;  %v379_v43 = vand.u32 2147483648, %v367_v34  ;;  %vm373_vm14 = vweird.f32 %v367_v34  ;;  %v377_v44 = vand.u32 2147483647, %v367_v34 }
 0x318   :  { %2702 = vpow2.f32 %v2610_v41 }
 0x319   :  { %v380_v46 = vor.u32 1.1754944e-38, %v379_v43  ;;  %vm378_vm4 = vcmp.eq.f32.partialorder %v377_v44, 8.507059e+37 }
 0x31d   :  { %v2701_v37 = vpop.eup %2700 }
 0x31e   :  { %v369_v38 = vmul.f32 %v2701_v37, %v367_v34  ;;  %vm374_vm13 = vweird.f32 %v2701_v37  ;;  %v2703_v49 = vpop.eup %2702 }
 0x31f   :  { %vm375_vm15 = vmor %vm373_vm14, %vm374_vm13  ;;  %v434_v51 = vadd.f32 1.0, %v2703_v49 }
 0x320   :  { %v370_v39 = vsub.f32 1.0, %v369_v38  ;;  %v195_v38 = vrot.slane %v3176_v62, 4 }
 0x321   :  { %2704 = vrcp.f32 %v434_v51  ;;  %v446_v58 = vand.u32 2147483648, %v434_v51  ;;  %vm440_vm6 = vweird.f32 %v434_v51  ;;  %v444_v59 = vand.u32 2147483647, %v434_v51 }
 0x322   :  { %v371_v40 = vmul.f32 %v2701_v37, %v370_v39 }
 0x323   :  { %v447_v2 = vor.u32 1.1754944e-38, %v446_v58  ;;  %vm445_vm8 = vcmp.eq.f32.partialorder %v444_v59, 8.507059e+37 }
 0x324   :  { %v372_v42 = vadd.f32 %v2701_v37, %v371_v40 }
 0x326   :  { %v376_v45 = vsel %vm375_vm15, %v2701_v37, %v372_v42  ;;  %v201_v42 = vrot.slane %v3189_v8, 2 }
 0x327   :  { %v381_v47 = vsel %vm378_vm4, %v380_v46, %v376_v45  ;;  %v2705_v52 = vpop.eup %2704 }
 0x328   :  { %v436_v53 = vmul.f32 %v2705_v52, %v434_v51  ;;  %vm441_vm5 = vweird.f32 %v2705_v52  ;;  %v384_v16 = vmul.f32 %v381_v47, %v3201_v57  ;;  %v533_v43 = vrot.slane %v201_v42, 2 }
 0x329   :  { %vm442_vm7 = vmor %vm440_vm6, %vm441_vm5 }
 0x32a   :  { %v437_v54 = vsub.f32 1.0, %v436_v53 }
 0x32c   :  { %v438_v55 = vmul.f32 %v2705_v52, %v437_v54 }
 0x32e   :  { %v439_v56 = vadd.f32 %v2705_v52, %v438_v55 }
 0x330   :  { %v443_v0 = vsel %vm442_vm7, %v2705_v52, %v439_v56 }
 0x331   :  { %v448_v5 = vsel %vm445_vm8, %v447_v2, %v443_v0 }
 0x332   :  { %v451_v22 = vmul.f32 %v448_v5, %v3205_v1 }
 0x362   :  { %v387_v48 = vpop.permute.xlu2 %386 }
 0x363   :  { %v389_v50 = vmul.f32 %v387_v48, %v381_v47 }
 0x365   :  { %391 = vrot.lane.b32.xlu1 %v389_v50, %s2999_s16 }
 0x386   :  { %v454_v3 = vpop.permute.xlu0 %453 }
 0x387   :  { %v456_v11 = vmul.f32 %v454_v3, %v448_v5 }
 0x389   :  { %458 = vrot.lane.b32.xlu2 %v456_v11, %s2999_s16 }
 0x3d7   :  { %v392_v17 = vpop.permute.xlu1 %391 }
 0x3d8   :  { %v3238_v18 = vadd.f32 %v392_v17, %v384_v16 }
 0x3da   :  { %2706 = vtanh.f32 %v3238_v18 }
 0x3e0   :  { %v2707_v21 = vpop.eup %2706 }
 0x3e1   :  { %397 = vrot.lane.b32.xlu0 %v2707_v21, %s2998_s4 }
 0x3e3   :  { %v459_v24 = vpop.permute.xlu2 %458 }
 0x3e4   :  { %v3243_v27 = vadd.f32 %v459_v24, %v451_v22 }
 0x3e6   :  { %2708 = vtanh.f32 %v3243_v27 }
 0x3ec   :  { %v2709_v28 = vpop.eup %2708 }
 0x3ed   :  { %464 = vrot.lane.b32.xlu1 %v2709_v28, %s2998_s4 }
 0x453   :  { %v398_v29 = vpop.permute.xlu0 %397 }
 0x454   :  { %v3247_v57 = vmul.f32 %v398_v29, %v381_v47 }
 0x456   :  { %469 = vst [vmem:[#allocation1] ss:$4 sm:$0xff] %v3247_v57 }
 0x45d   :  { %v470_v30 = vld.sshfl [vmem:[#allocation1] sm:$0xff pattern:$0x73625140] }
 0x45e   :  { %471 = vrot.lane.b32.xlu2 %v470_v30, %s2999_s16 }
 0x45f   :  { %v465_v31 = vpop.permute.xlu1 %464 }
 0x460   :  { %v3251_v32 = vmul.f32 %v465_v31, %v448_v5 }
 0x462   :  { %536 = vst [vmem:[#allocation1] ss:$4 sm:$0xff] %v3251_v32 }
 0x469   :  { %v537_v1 = vld.sshfl [vmem:[#allocation1] sm:$0xff pattern:$0x73625140] }
 0x46a   :  { %538 = vrot.lane.b32.xlu0 %v537_v1, %s2999_s16 }
 0x4b8   :  { %v472_v34 = vpop.permute.xlu2 %471 }
 0x4b9   :  { %2611 = vmatmul.msk.f32.vlgmr.msra.gmra.mxu2 %vm214_vm12, %v472_v34 }
 0x4ba   :  { %751 = vmatpush.msra.mxu2 %v3067_v10 }
 0x4bc   :  { %752 = vmatpush.msra.mxu2 %v3073_v13 }
 0x4be   :  { %753 = vmatpush.msra.mxu2 %v3078_v14 }
 0x4c0   :  { %754 = vmatpush.msra.mxu2 %v3084_v19 }
 0x4dc   :  { %v539_v37 = vpop.permute.xlu0 %538 }
 0x4dd   :  { %2613 = vmatmul.msk.f32.vlgmr.msra.gmra.mxu3 %vm214_vm12, %v539_v37 }
 0x4de   :  { %818 = vmatpush.msra.mxu3 %v3102_v25 }
 0x4e0   :  { %819 = vmatpush.msra.mxu3 %v3107_v26 }
 0x4e2   :  { %820 = vmatpush.msra.mxu3 %v3128_v35 }
 0x4e4   :  { %821 = vmatpush.msra.mxu3 %v3133_v36 }
 0x53c   :  { %v492_v39 = vpop.f32.mrf.mxu2 }
 0x53d   :  { %v495_v40 = vadd.f32 %v492_v39, %v195_v38 }
 0x53f   :  { %2710 = vtanh.f32 %v495_v40  ;;  %v2612_v47 = vmul.f32 -1.442695, %v495_v40 }
 0x545   :  { %v2711_v41 = vpop.eup %2710 }
 0x546   :  { %518 = vrot.lane.b32.xlu1 %v2711_v41, %s2998_s4 }
 0x560   :  { %v559_v44 = vpop.f32.mrf.mxu3 }
 0x561   :  { %v562_v45 = vadd.f32 %v559_v44, %v533_v43 }
 0x563   :  { %2712 = vtanh.f32 %v562_v45  ;;  %v2614_v49 = vmul.f32 -1.442695, %v562_v45 }
 0x564   :  { %2714 = vpow2.f32 %v2612_v47 }
 0x565   :  { %2716 = vpow2.f32 %v2614_v49 }
 0x569   :  { %v2713_v46 = vpop.eup %2712 }
 0x56a   :  { %585 = vrot.lane.b32.xlu2 %v2713_v46, %s2998_s4  ;;  %v2715_v48 = vpop.eup %2714 }
 0x56b   :  { %v499_v50 = vadd.f32 1.0, %v2715_v48  ;;  %v2717_v51 = vpop.eup %2716 }
 0x56c   :  { %v566_v53 = vadd.f32 1.0, %v2717_v51 }
 0x56d   :  { %2718 = vrcp.f32 %v499_v50  ;;  %v511_v2 = vand.u32 2147483648, %v499_v50  ;;  %vm505_vm10 = vweird.f32 %v499_v50  ;;  %v509_v3 = vand.u32 2147483647, %v499_v50 }
 0x56e   :  { %2720 = vrcp.f32 %v566_v53  ;;  %v578_v29 = vand.u32 2147483648, %v566_v53  ;;  %vm572_vm15 = vweird.f32 %v566_v53  ;;  %v576_v30 = vand.u32 2147483647, %v566_v53 }
 0x56f   :  { %v512_v16 = vor.u32 1.1754944e-38, %v511_v2  ;;  %vm510_vm13 = vcmp.eq.f32.partialorder %v509_v3, 8.507059e+37 }
 0x570   :  { %v579_v1 = vor.u32 1.1754944e-38, %v578_v29  ;;  %vm577_vm5 = vcmp.eq.f32.partialorder %v576_v30, 8.507059e+37 }
 0x573   :  { %v2719_v52 = vpop.eup %2718 }
 0x574   :  { %v501_v54 = vmul.f32 %v2719_v52, %v499_v50  ;;  %v2721_v58 = vpop.eup %2720  ;;  %vm506_vm9 = vweird.f32 %v2719_v52 }
 0x575   :  { %v568_v0 = vmul.f32 %v2721_v58, %v566_v53  ;;  %vm507_vm11 = vmor %vm505_vm10, %vm506_vm9  ;;  %vm573_vm14 = vweird.f32 %v2721_v58 }
 0x576   :  { %v502_v55 = vsub.f32 1.0, %v501_v54  ;;  %vm574_vm4 = vmor %vm572_vm15, %vm573_vm14 }
 0x577   :  { %v569_v11 = vsub.f32 1.0, %v568_v0 }
 0x578   :  { %v503_v56 = vmul.f32 %v2719_v52, %v502_v55  ;;  %v198_v55 = vrot.slane %v3179_v63, 6 }
 0x579   :  { %v570_v24 = vmul.f32 %v2721_v58, %v569_v11 }
 0x57a   :  { %v504_v59 = vadd.f32 %v2719_v52, %v503_v56 }
 0x57b   :  { %v571_v28 = vadd.f32 %v2721_v58, %v570_v24 }
 0x57c   :  { %v508_v5 = vsel %vm507_vm11, %v2719_v52, %v504_v59 }
 0x57d   :  { %v513_v21 = vsel %vm510_vm13, %v512_v16, %v508_v5  ;;  %v575_v31 = vsel %vm574_vm4, %v2721_v58, %v571_v28 }
 0x57e   :  { %v580_v34 = vsel %vm577_vm5, %v579_v1, %v575_v31  ;;  %v516_v40 = vmul.f32 %v513_v21, %v3238_v18 }
 0x57f   :  { %v583_v45 = vmul.f32 %v580_v34, %v3243_v27 }
 0x5b8   :  { %v519_v17 = vpop.permute.xlu1 %518 }
 0x5b9   :  { %v521_v22 = vmul.f32 %v519_v17, %v513_v21 }
 0x5bb   :  { %523 = vrot.lane.b32.xlu0 %v521_v22, %s2999_s16 }
 0x5c4   :  { %v586_v37 = vpop.permute.xlu2 %585 }
 0x5c5   :  { %v588_v39 = vmul.f32 %v586_v37, %v580_v34 }
 0x5c7   :  { %590 = vrot.lane.b32.xlu1 %v588_v39, %s2999_s16 }
 0x62d   :  { %v524_v41 = vpop.permute.xlu0 %523 }
 0x62e   :  { %v3276_v43 = vadd.f32 %v524_v41, %v516_v40 }
 0x630   :  { %2722 = vtanh.f32 %v3276_v43 }
 0x636   :  { %v2723_v44 = vpop.eup %2722 }
 0x637   :  { %529 = vrot.lane.b32.xlu2 %v2723_v44, %s2998_s4 }
 0x639   :  { %v591_v46 = vpop.permute.xlu1 %590 }
 0x63a   :  { %v3281_v47 = vadd.f32 %v591_v46, %v583_v45 }
 0x63c   :  { %2724 = vtanh.f32 %v3281_v47 }
 0x642   :  { %v2725_v48 = vpop.eup %2724 }
 0x643   :  { %596 = vrot.lane.b32.xlu0 %v2725_v48, %s2998_s4 }
 0x691   :  { %v530_v49 = vpop.permute.xlu2 %529 }
 0x692   :  { %v3285_v18 = vmul.f32 %v530_v49, %v513_v21 }
 0x694   :  { %601 = vst [vmem:[#allocation1] ss:$4 sm:$0xff] %v3285_v18 }
 0x69b   :  { %v602_v50 = vld.sshfl [vmem:[#allocation1] sm:$0xff pattern:$0x73625140] }
 0x69c   :  { %603 = vrot.lane.b32.xlu1 %v602_v50, %s2999_s16 }
 0x6b5   :  { %v597_v51 = vpop.permute.xlu0 %596 }
 0x6b6   :  { %v3289_v52 = vmul.f32 %v597_v51, %v580_v34 }
 0x6b8   :  { %668 = vst [vmem:[#allocation1] ss:$4 sm:$0xff] %v3289_v52 }
 0x6bf   :  { %v669_v27 = vld.sshfl [vmem:[#allocation1] sm:$0xff pattern:$0x73625140] }
 0x6c0   :  { %670 = vrot.lane.b32.xlu2 %v669_v27, %s2999_s16 }
 0x70e   :  { %v604_v53 = vpop.permute.xlu1 %603 }
 0x70f   :  { %2615 = vmatmul.msk.f32.vlgmr.msrb.gmra.mxu2 %vm214_vm12, %v604_v53 }
 0x710   :  { %1015 = vmatpush.msrb.mxu2 %v3067_v10 }
 0x712   :  { %1016 = vmatpush.msrb.mxu2 %v3073_v13 }
 0x714   :  { %1017 = vmatpush.msrb.mxu2 %v3078_v14 }
 0x716   :  { %1018 = vmatpush.msrb.mxu2 %v3084_v19  ;;  %v665_v19 = vrot.slane %v3192_v9, 2 }
 0x71a   :  { %v671_v54 = vpop.permute.xlu2 %670 }
 0x71b   :  { %2617 = vmatmul.msk.f32.vlgmr.msrb.gmra.mxu3 %vm214_vm12, %v671_v54 }
 0x71c   :  { %1082 = vmatpush.msrb.mxu3 %v3102_v25 }
 0x71e   :  { %1083 = vmatpush.msrb.mxu3 %v3107_v26 }
 0x720   :  { %1084 = vmatpush.msrb.mxu3 %v3128_v35 }
 0x722   :  { %1085 = vmatpush.msrb.mxu3 %v3133_v36 }
 0x792   :  { %v624_v10 = vpop.f32.mrf.mxu2 }
 0x793   :  { %v627_v13 = vadd.f32 %v624_v10, %v198_v55 }
 0x795   :  { %2726 = vtanh.f32 %v627_v13  ;;  %v2616_v35 = vmul.f32 -1.442695, %v627_v13 }
 0x79b   :  { %v2727_v14 = vpop.eup %2726 }
 0x79c   :  { %650 = vrot.lane.b32.xlu0 %v2727_v14, %s2998_s4 }
 0x79e   :  { %v691_v56 = vpop.f32.mrf.mxu3 }
 0x79f   :  { %v694_v25 = vadd.f32 %v691_v56, %v665_v19 }
 0x7a1   :  { %2728 = vtanh.f32 %v694_v25  ;;  %v2618_v58 = vmul.f32 -1.442695, %v694_v25 }
 0x7a2   :  { %2730 = vpow2.f32 %v2616_v35 }
 0x7a3   :  { %2732 = vpow2.f32 %v2618_v58 }
 0x7a7   :  { %v2729_v26 = vpop.eup %2728 }
 0x7a8   :  { %717 = vrot.lane.b32.xlu1 %v2729_v26, %s2998_s4  ;;  %v2731_v36 = vpop.eup %2730 }
 0x7a9   :  { %v631_v59 = vadd.f32 1.0, %v2731_v36  ;;  %v2733_v0 = vpop.eup %2732 }
 0x7aa   :  { %v698_v3 = vadd.f32 1.0, %v2733_v0 }
 0x7ab   :  { %2734 = vrcp.f32 %v631_v59  ;;  %v643_v24 = vand.u32 2147483648, %v631_v59  ;;  %vm637_vm7 = vweird.f32 %v631_v59  ;;  %v641_v28 = vand.u32 2147483647, %v631_v59 }
 0x7ac   :  { %2736 = vrcp.f32 %v698_v3  ;;  %v710_v41 = vand.u32 2147483648, %v698_v3  ;;  %vm704_vm11 = vweird.f32 %v698_v3  ;;  %v708_v44 = vand.u32 2147483647, %v698_v3 }
 0x7ad   :  { %v644_v31 = vor.u32 1.1754944e-38, %v643_v24  ;;  %vm642_vm9 = vcmp.eq.f32.partialorder %v641_v28, 8.507059e+37 }
 0x7ae   :  { %v711_v46 = vor.u32 1.1754944e-38, %v710_v41  ;;  %vm709_vm14 = vcmp.eq.f32.partialorder %v708_v44, 8.507059e+37 }
 0x7b1   :  { %v2735_v2 = vpop.eup %2734 }
 0x7b2   :  { %v633_v5 = vmul.f32 %v2735_v2, %v631_v59  ;;  %v2737_v17 = vpop.eup %2736  ;;  %vm638_vm6 = vweird.f32 %v2735_v2 }
 0x7b3   :  { %v700_v22 = vmul.f32 %v2737_v17, %v698_v3  ;;  %vm639_vm8 = vmor %vm637_vm7, %vm638_vm6  ;;  %vm705_vm10 = vweird.f32 %v2737_v17  ;;  %v797_v3 = vrot.slane %v198_v55, 2 }
 0x7b4   :  { %v634_v11 = vsub.f32 1.0, %v633_v5  ;;  %vm706_vm13 = vmor %vm704_vm11, %vm705_vm10 }
 0x7b5   :  { %v701_v30 = vsub.f32 1.0, %v700_v22 }
 0x7b6   :  { %v635_v16 = vmul.f32 %v2735_v2, %v634_v11 }
 0x7b7   :  { %v702_v39 = vmul.f32 %v2737_v17, %v701_v30 }
 0x7b8   :  { %v636_v21 = vadd.f32 %v2735_v2, %v635_v16 }
 0x7b9   :  { %v703_v40 = vadd.f32 %v2737_v17, %v702_v39 }
 0x7ba   :  { %v640_v29 = vsel %vm639_vm8, %v2735_v2, %v636_v21 }
 0x7bb   :  { %v645_v34 = vsel %vm642_vm9, %v644_v31, %v640_v29  ;;  %v707_v45 = vsel %vm706_vm13, %v2737_v17, %v703_v40 }
 0x7bc   :  { %v712_v49 = vsel %vm709_vm14, %v711_v46, %v707_v45  ;;  %v648_v51 = vmul.f32 %v645_v34, %v3276_v43 }
 0x7bd   :  { %v715_v10 = vmul.f32 %v712_v49, %v3281_v47 }
 0x80e   :  { %v651_v1 = vpop.permute.xlu0 %650 }
 0x80f   :  { %v653_v37 = vmul.f32 %v651_v1, %v645_v34 }
 0x811   :  { %655 = vrot.lane.b32.xlu2 %v653_v37, %s2999_s16 }
 0x81a   :  { %v718_v48 = vpop.permute.xlu1 %717 }
 0x81b   :  { %v720_v50 = vmul.f32 %v718_v48, %v712_v49 }
 0x81d   :  { %722 = vrot.lane.b32.xlu0 %v720_v50, %s2999_s16 }
 0x86b   :  { %v656_v27 = vpop.permute.xlu2 %655 }
 0x86c   :  { %v3312_v53 = vadd.f32 %v656_v27, %v648_v51 }
 0x86e   :  { %2738 = vtanh.f32 %v3312_v53 }
 0x874   :  { %v2739_v54 = vpop.eup %2738 }
 0x875   :  { %661 = vrot.lane.b32.xlu1 %v2739_v54, %s2998_s4 }
 0x88f   :  { %v723_v13 = vpop.permute.xlu0 %722 }
 0x890   :  { %v3317_v14 = vadd.f32 %v723_v13, %v715_v10 }
 0x892   :  { %2740 = vtanh.f32 %v3317_v14 }
 0x898   :  { %v2741_v19 = vpop.eup %2740 }
 0x899   :  { %728 = vrot.lane.b32.xlu2 %v2741_v19, %s2998_s4 }
 0x8e7   :  { %v662_v56 = vpop.permute.xlu1 %661 }
 0x8e8   :  { %v3321_v43 = vmul.f32 %v662_v56, %v645_v34 }
 0x8ea   :  { %733 = vst [vmem:[#allocation1] ss:$4 sm:$0xff] %v3321_v43 }
 0x8f1   :  { %v734_v25 = vld.sshfl [vmem:[#allocation1] sm:$0xff pattern:$0x73625140] }
 0x8f2   :  { %735 = vrot.lane.b32.xlu0 %v734_v25, %s2999_s16 }
 0x8f3   :  { %v729_v26 = vpop.permute.xlu2 %728 }
 0x8f4   :  { %v3325_v35 = vmul.f32 %v729_v26, %v712_v49 }
 0x8f6   :  { %800 = vst [vmem:[#allocation1] ss:$4 sm:$0xff] %v3325_v35 }
 0x8fd   :  { %v801_v47 = vld.sshfl [vmem:[#allocation1] sm:$0xff pattern:$0x73625140] }
 0x8fe   :  { %802 = vrot.lane.b32.xlu1 %v801_v47, %s2999_s16 }
 0x964   :  { %v736_v36 = vpop.permute.xlu0 %735 }
 0x965   :  { %2619 = vmatmul.msk.f32.vlgmr.msra.gmra.mxu2 %vm214_vm12, %v736_v36 }
 0x970   :  { %v803_v58 = vpop.permute.xlu1 %802 }
 0x971   :  { %2621 = vmatmul.msk.f32.vlgmr.msra.gmra.mxu3 %vm214_vm12, %v803_v58 }
 0x9e8   :  { %v756_v59 = vpop.f32.mrf.mxu2 }
 0x9e9   :  { %v759_v0 = vadd.f32 %v756_v59, %v3192_v9 }
 0x9eb   :  { %2742 = vtanh.f32 %v759_v0  ;;  %v2620_v17 = vmul.f32 -1.442695, %v759_v0 }
 0x9f1   :  { %v2743_v2 = vpop.eup %2742 }
 0x9f2   :  { %782 = vrot.lane.b32.xlu2 %v2743_v2, %s2998_s4 }
 0x9f4   :  { %v823_v5 = vpop.f32.mrf.mxu3 }
 0x9f5   :  { %v826_v11 = vadd.f32 %v823_v5, %v797_v3 }
 0x9f7   :  { %2744 = vtanh.f32 %v826_v11  ;;  %v2622_v30 = vmul.f32 -1.442695, %v826_v11 }
 0x9f8   :  { %2746 = vpow2.f32 %v2620_v17 }
 0x9fd   :  { %v2745_v16 = vpop.eup %2744 }
 0x9fe   :  { %849 = vrot.lane.b32.xlu0 %v2745_v16, %s2998_s4  ;;  %v2747_v21 = vpop.eup %2746 }
 0x9ff   :  { %v763_v22 = vadd.f32 1.0, %v2747_v21  ;;  %v2938_v21 = vld [vmem:[%s3866_s3 + $0x18] sm:$0xff] }
 0xa01   :  { %2748 = vrcp.f32 %v763_v22  ;;  %v775_v63 = vand.u32 2147483648, %v763_v22  ;;  %vm769_vm4 = vweird.f32 %v763_v22  ;;  %v773_v55 = vand.u32 2147483647, %v763_v22 }
 0xa02   :  { %2750 = vpow2.f32 %v2622_v30 }
 0xa03   :  { %v776_v34 = vor.u32 1.1754944e-38, %v775_v63  ;;  %vm774_vm6 = vcmp.eq.f32.partialorder %v773_v55, 8.507059e+37  ;;  %v929_v63 = vrot.slane %v195_v38, 2 }
 0xa07   :  { %v2749_v24 = vpop.eup %2748 }
 0xa08   :  { %v765_v9 = vmul.f32 %v2749_v24, %v763_v22  ;;  %vm770_vm15 = vweird.f32 %v2749_v24  ;;  %v2751_v40 = vpop.eup %2750  ;;  %v2939_v22 = vld [vmem:[%s3866_s3 + $0x10] sm:$0xff] }
 0xa09   :  { %vm771_vm5 = vmor %vm769_vm4, %vm770_vm15  ;;  %v830_v44 = vadd.f32 1.0, %v2751_v40 }
 0xa0a   :  { %v766_v28 = vsub.f32 1.0, %v765_v9  ;;  %v2941_v9 = vld [vmem:[%s3866_s3] sm:$0xff] }
 0xa0b   :  { %2752 = vrcp.f32 %v830_v44  ;;  %v842_v51 = vand.u32 2147483648, %v830_v44  ;;  %vm836_vm8 = vweird.f32 %v830_v44  ;;  %v840_v27 = vand.u32 2147483647, %v830_v44 }
 0xa0c   :  { %v767_v29 = vmul.f32 %v2749_v24, %v766_v28 }
 0xa0d   :  { %v843_v10 = vor.u32 1.1754944e-38, %v842_v51  ;;  %vm841_vm10 = vcmp.eq.f32.partialorder %v840_v27, 8.507059e+37 }
 0xa0e   :  { %v768_v31 = vadd.f32 %v2749_v24, %v767_v29 }
 0xa10   :  { %v772_v1 = vsel %vm771_vm5, %v2749_v24, %v768_v31  ;;  %v2940_v24 = vld [vmem:[%s3866_s3 + $0x8] sm:$0xff] }
 0xa11   :  { %v777_v37 = vsel %vm774_vm6, %v776_v34, %v772_v1  ;;  %v2753_v45 = vpop.eup %2752 }
 0xa12   :  { %v832_v46 = vmul.f32 %v2753_v45, %v830_v44  ;;  %vm837_vm7 = vweird.f32 %v2753_v45  ;;  %v780_v25 = vmul.f32 %v777_v37, %v3312_v53 }
 0xa13   :  { %vm838_vm9 = vmor %vm836_vm8, %vm837_vm7 }
 0xa14   :  { %v833_v48 = vsub.f32 1.0, %v832_v46 }
 0xa16   :  { %v834_v49 = vmul.f32 %v2753_v45, %v833_v48 }
 0xa18   :  { %v835_v50 = vadd.f32 %v2753_v45, %v834_v49 }
 0xa1a   :  { %v839_v54 = vsel %vm838_vm9, %v2753_v45, %v835_v50 }
 0xa1b   :  { %v844_v19 = vsel %vm841_vm10, %v843_v10, %v839_v54 }
 0xa1c   :  { %v847_v58 = vmul.f32 %v844_v19, %v3317_v14 }
 0xa4c   :  { %v783_v39 = vpop.permute.xlu2 %782 }
 0xa4d   :  { %v785_v41 = vmul.f32 %v783_v39, %v777_v37 }
 0xa4f   :  { %787 = vrot.lane.b32.xlu1 %v785_v41, %s2999_s16 }
 0xa70   :  { %v850_v13 = vpop.permute.xlu0 %849 }
 0xa71   :  { %v852_v56 = vmul.f32 %v850_v13, %v844_v19 }
 0xa73   :  { %854 = vrot.lane.b32.xlu2 %v852_v56, %s2999_s16 }
 0xac1   :  { %v788_v26 = vpop.permute.xlu1 %787 }
 0xac2   :  { %v3339_v47 = vadd.f32 %v788_v26, %v780_v25 }
 0xac4   :  { %2754 = vtanh.f32 %v3339_v47 }
 0xaca   :  { %v2755_v36 = vpop.eup %2754 }
 0xacb   :  { %793 = vrot.lane.b32.xlu0 %v2755_v36, %s2998_s4 }
 0xacd   :  { %v855_v59 = vpop.permute.xlu2 %854 }
 0xace   :  { %v3344_v0 = vadd.f32 %v855_v59, %v847_v58 }
 0xad0   :  { %2756 = vtanh.f32 %v3344_v0 }
 0xad6   :  { %v2757_v2 = vpop.eup %2756 }
 0xad7   :  { %860 = vrot.lane.b32.xlu1 %v2757_v2, %s2998_s4 }
 0xb3d   :  { %v794_v3 = vpop.permute.xlu0 %793 }
 0xb3e   :  { %v3348_v53 = vmul.f32 %v794_v3, %v777_v37 }
 0xb40   :  { %865 = vst [vmem:[#allocation1] ss:$4 sm:$0xff] %v3348_v53 }
 0xb47   :  { %v866_v5 = vld.sshfl [vmem:[#allocation1] sm:$0xff pattern:$0x73625140] }
 0xb48   :  { %867 = vrot.lane.b32.xlu2 %v866_v5, %s2999_s16 }
 0xb49   :  { %v861_v11 = vpop.permute.xlu1 %860 }
 0xb4a   :  { %v3352_v16 = vmul.f32 %v861_v11, %v844_v19 }
 0xb4c   :  { %932 = vst [vmem:[#allocation1] ss:$4 sm:$0xff] %v3352_v16 }
 0xb53   :  { %v933_v14 = vld.sshfl [vmem:[#allocation1] sm:$0xff pattern:$0x73625140] }
 0xb54   :  { %934 = vrot.lane.b32.xlu0 %v933_v14, %s2999_s16 }
 0xba2   :  { %v868_v17 = vpop.permute.xlu2 %867 }
 0xba3   :  { %2623 = vmatmul.msk.f32.vlgmr.msrb.gmra.mxu1 %vm214_vm12, %v868_v17 }
 0xba4   :  { %1214 = vmatpush.msrb.mxu1 %v2938_v21 }
 0xba6   :  { %1215 = vmatpush.msrb.mxu1 %v2939_v22 }
 0xba8   :  { %1216 = vmatpush.msrb.mxu1 %v2940_v24 }
 0xbaa   :  { %1217 = vmatpush.msrb.mxu1 %v2941_v9 }
 0xbc6   :  { %v935_v28 = vpop.permute.xlu0 %934 }
 0xbc7   :  { %2625 = vmatmul.msk.f32.vlgmr.msra.gmra.mxu1 %vm214_vm12, %v935_v28 }
 0xc20   :  { %v888_v29 = vpop.f32.mrf.mxu1 }
 0xc21   :  { %v891_v30 = vadd.f32 %v888_v29, %v201_v42 }
 0xc23   :  { %2758 = vtanh.f32 %v891_v30  ;;  %v2624_v37 = vmul.f32 -1.442695, %v891_v30 }
 0xc29   :  { %v2759_v31 = vpop.eup %2758 }
 0xc2a   :  { %914 = vrot.lane.b32.xlu1 %v2759_v31, %s2998_s4 }
 0xc44   :  { %v955_v55 = vpop.f32.mrf.mxu1 }
 0xc45   :  { %v958_v1 = vadd.f32 %v955_v55, %v929_v63 }
 0xc47   :  { %2760 = vtanh.f32 %v958_v1  ;;  %v2626_v40 = vmul.f32 -1.442695, %v958_v1 }
 0xc48   :  { %2762 = vpow2.f32 %v2624_v37 }
 0xc49   :  { %2764 = vpow2.f32 %v2626_v40 }
 0xc4d   :  { %v2761_v34 = vpop.eup %2760 }
 0xc4e   :  { %981 = vrot.lane.b32.xlu2 %v2761_v34, %s2998_s4  ;;  %v2763_v39 = vpop.eup %2762 }
 0xc4f   :  { %v895_v41 = vadd.f32 1.0, %v2763_v39  ;;  %v2765_v8 = vpop.eup %2764 }
 0xc50   :  { %v962_v44 = vadd.f32 1.0, %v2765_v8 }
 0xc51   :  { %2766 = vrcp.f32 %v895_v41  ;;  %v907_v50 = vand.u32 2147483648, %v895_v41  ;;  %vm901_vm13 = vweird.f32 %v895_v41  ;;  %v905_v51 = vand.u32 2147483647, %v895_v41 }
 0xc52   :  { %2768 = vrcp.f32 %v962_v44  ;;  %v974_v36 = vand.u32 2147483648, %v962_v44  ;;  %vm968_vm5 = vweird.f32 %v962_v44  ;;  %v972_v58 = vand.u32 2147483647, %v962_v44 }
 0xc53   :  { %v908_v10 = vor.u32 1.1754944e-38, %v907_v50  ;;  %vm906_vm15 = vcmp.eq.f32.partialorder %v905_v51, 8.507059e+37 }
 0xc54   :  { %v975_v2 = vor.u32 1.1754944e-38, %v974_v36  ;;  %vm973_vm7 = vcmp.eq.f32.partialorder %v972_v58, 8.507059e+37 }
 0xc57   :  { %v2767_v42 = vpop.eup %2766 }
 0xc58   :  { %v897_v45 = vmul.f32 %v2767_v42, %v895_v41  ;;  %v2769_v46 = vpop.eup %2768  ;;  %vm902_vm11 = vweird.f32 %v2767_v42  ;;  %v1061_v41 = vrot.slane %v192_v20, 2 }
 0xc59   :  { %v964_v49 = vmul.f32 %v2769_v46, %v962_v44  ;;  %vm903_vm14 = vmor %vm901_vm13, %vm902_vm11  ;;  %vm969_vm4 = vweird.f32 %v2769_v46 }
 0xc5a   :  { %v898_v62 = vsub.f32 1.0, %v897_v45  ;;  %vm970_vm6 = vmor %vm968_vm5, %vm969_vm4 }
 0xc5b   :  { %v965_v54 = vsub.f32 1.0, %v964_v49 }
 0xc5c   :  { %v899_v38 = vmul.f32 %v2767_v42, %v898_v62 }
 0xc5d   :  { %v966_v25 = vmul.f32 %v2769_v46, %v965_v54 }
 0xc5e   :  { %v900_v48 = vadd.f32 %v2767_v42, %v899_v38 }
 0xc5f   :  { %v967_v26 = vadd.f32 %v2769_v46, %v966_v25 }
 0xc60   :  { %v904_v27 = vsel %vm903_vm14, %v2767_v42, %v900_v48 }
 0xc61   :  { %v909_v19 = vsel %vm906_vm15, %v908_v10, %v904_v27  ;;  %v971_v59 = vsel %vm970_vm6, %v2769_v46, %v967_v26 }
 0xc62   :  { %v976_v5 = vsel %vm973_vm7, %v975_v2, %v971_v59  ;;  %v912_v14 = vmul.f32 %v909_v19, %v3339_v47 }
 0xc63   :  { %v979_v24 = vmul.f32 %v976_v5, %v3344_v0 }
 0xc9c   :  { %v915_v13 = vpop.permute.xlu1 %914 }
 0xc9d   :  { %v917_v56 = vmul.f32 %v915_v13, %v909_v19 }
 0xc9f   :  { %919 = vrot.lane.b32.xlu0 %v917_v56, %s2999_s16 }
 0xca8   :  { %v982_v3 = vpop.permute.xlu2 %981 }
 0xca9   :  { %v984_v11 = vmul.f32 %v982_v3, %v976_v5 }
 0xcab   :  { %986 = vrot.lane.b32.xlu1 %v984_v11, %s2999_s16 }
 0xd11   :  { %v920_v17 = vpop.permute.xlu0 %919 }
 0xd12   :  { %v3379_v21 = vadd.f32 %v920_v17, %v912_v14 }
 0xd14   :  { %2770 = vtanh.f32 %v3379_v21 }
 0xd1a   :  { %v2771_v22 = vpop.eup %2770 }
 0xd1b   :  { %925 = vrot.lane.b32.xlu2 %v2771_v22, %s2998_s4 }
 0xd1d   :  { %v987_v9 = vpop.permute.xlu1 %986 }
 0xd1e   :  { %v3384_v28 = vadd.f32 %v987_v9, %v979_v24 }
 0xd20   :  { %2772 = vtanh.f32 %v3384_v28 }
 0xd26   :  { %v2773_v29 = vpop.eup %2772 }
 0xd27   :  { %992 = vrot.lane.b32.xlu0 %v2773_v29, %s2998_s4 }
 0xd75   :  { %v926_v30 = vpop.permute.xlu2 %925 }
 0xd76   :  { %v3388_v47 = vmul.f32 %v926_v30, %v909_v19 }
 0xd78   :  { %997 = vst [vmem:[#allocation1] ss:$4 sm:$0xff] %v3388_v47 }
 0xd7f   :  { %v998_v31 = vld.sshfl [vmem:[#allocation1] sm:$0xff pattern:$0x73625140] }
 0xd80   :  { %999 = vrot.lane.b32.xlu1 %v998_v31, %s2999_s16 }
 0xd99   :  { %v993_v63 = vpop.permute.xlu0 %992 }
 0xd9a   :  { %v3392_v55 = vmul.f32 %v993_v63, %v976_v5 }
 0xd9c   :  { %1064 = vst [vmem:[#allocation1] ss:$4 sm:$0xff] %v3392_v55 }
 0xda3   :  { %v1065_v0 = vld.sshfl [vmem:[#allocation1] sm:$0xff pattern:$0x73625140] }
 0xda4   :  { %1066 = vrot.lane.b32.xlu2 %v1065_v0, %s2999_s16 }
 0xdf2   :  { %v1000_v1 = vpop.permute.xlu1 %999 }
 0xdf3   :  { %2627 = vmatmul.msk.f32.vlgmr.msrb.gmra.mxu2 %vm214_vm12, %v1000_v1 }
 0xdfe   :  { %v1067_v34 = vpop.permute.xlu2 %1066 }
 0xdff   :  { %2629 = vmatmul.msk.f32.vlgmr.msrb.gmra.mxu3 %vm214_vm12, %v1067_v34 }
 0xe76   :  { %v1020_v37 = vpop.f32.mrf.mxu2 }
 0xe77   :  { %v1023_v39 = vadd.f32 %v1020_v37, %v203_v23 }
 0xe79   :  { %2774 = vtanh.f32 %v1023_v39  ;;  %v2628_v45 = vmul.f32 -1.442695, %v1023_v39 }
 0xe7f   :  { %v2775_v40 = vpop.eup %2774 }
 0xe80   :  { %1046 = vrot.lane.b32.xlu0 %v2775_v40, %s2998_s4 }
 0xe82   :  { %v1087_v8 = vpop.f32.mrf.mxu3 }
 0xe83   :  { %v1090_v42 = vadd.f32 %v1087_v8, %v1061_v41 }
 0xe85   :  { %2776 = vtanh.f32 %v1090_v42  ;;  %v2630_v38 = vmul.f32 -1.442695, %v1090_v42  ;;  %v1193_v42 = vrot.slane %v3170_v60, 2 }
 0xe86   :  { %2778 = vpow2.f32 %v2628_v45 }
 0xe87   :  { %2780 = vpow2.f32 %v2630_v38 }
 0xe8b   :  { %v2777_v44 = vpop.eup %2776 }
 0xe8c   :  { %1113 = vrot.lane.b32.xlu1 %v2777_v44, %s2998_s4  ;;  %v2779_v62 = vpop.eup %2778 }
 0xe8d   :  { %v1027_v46 = vadd.f32 1.0, %v2779_v62  ;;  %v2781_v7 = vpop.eup %2780 }
 0xe8e   :  { %v1094_v48 = vadd.f32 1.0, %v2781_v7 }
 0xe8f   :  { %2782 = vrcp.f32 %v1027_v46  ;;  %v1039_v54 = vand.u32 2147483648, %v1027_v46  ;;  %vm1033_vm9 = vweird.f32 %v1027_v46  ;;  %v1037_v10 = vand.u32 2147483647, %v1027_v46 }
 0xe90   :  { %2784 = vrcp.f32 %v1094_v48  ;;  %v1106_v2 = vand.u32 2147483648, %v1094_v48  ;;  %vm1100_vm14 = vweird.f32 %v1094_v48  ;;  %v1104_v3 = vand.u32 2147483647, %v1094_v48 }
 0xe91   :  { %v1040_v56 = vor.u32 1.1754944e-38, %v1039_v54  ;;  %vm1038_vm11 = vcmp.eq.f32.partialorder %v1037_v10, 8.507059e+37 }
 0xe92   :  { %v1107_v11 = vor.u32 1.1754944e-38, %v1106_v2  ;;  %vm1105_vm4 = vcmp.eq.f32.partialorder %v1104_v3, 8.507059e+37 }
 0xe95   :  { %v2783_v23 = vpop.eup %2782 }
 0xe96   :  { %v1029_v49 = vmul.f32 %v2783_v23, %v1027_v46  ;;  %v2785_v50 = vpop.eup %2784  ;;  %vm1034_vm8 = vweird.f32 %v2783_v23 }
 0xe97   :  { %v1096_v27 = vmul.f32 %v2785_v50, %v1094_v48  ;;  %vm1035_vm10 = vmor %vm1033_vm9, %vm1034_vm8  ;;  %vm1101_vm13 = vweird.f32 %v2785_v50 }
 0xe98   :  { %v1030_v61 = vsub.f32 1.0, %v1029_v49  ;;  %vm1102_vm15 = vmor %vm1100_vm14, %vm1101_vm13  ;;  %vm1405_vm14 = vcmask 523264  }
 0xe99   :  { %v1097_v19 = vsub.f32 1.0, %v1096_v27 }
 0xe9a   :  { %v1031_v20 = vmul.f32 %v2783_v23, %v1030_v61 }
 0xe9b   :  { %v1098_v58 = vmul.f32 %v2785_v50, %v1097_v19 }
 0xe9c   :  { %v1032_v51 = vadd.f32 %v2783_v23, %v1031_v20 }
 0xe9d   :  { %v1099_v59 = vadd.f32 %v2785_v50, %v1098_v58 }
 0xe9e   :  { %v1036_v13 = vsel %vm1035_vm10, %v2783_v23, %v1032_v51 }
 0xe9f   :  { %v1041_v26 = vsel %vm1038_vm11, %v1040_v56, %v1036_v13  ;;  %v1103_v5 = vsel %vm1102_vm15, %v2785_v50, %v1099_v59 }
 0xea0   :  { %v1108_v17 = vsel %vm1105_vm4, %v1107_v11, %v1103_v5  ;;  %v1044_v24 = vmul.f32 %v1041_v26, %v3379_v21 }
 0xea1   :  { %v1111_v31 = vmul.f32 %v1108_v17, %v3384_v28 }
 0xef2   :  { %v1047_v25 = vpop.permute.xlu0 %1046 }
 0xef3   :  { %v1049_v36 = vmul.f32 %v1047_v25, %v1041_v26 }
 0xef5   :  { %1051 = vrot.lane.b32.xlu2 %v1049_v36, %s2999_s16 }
 0xefe   :  { %v1114_v14 = vpop.permute.xlu1 %1113 }
 0xeff   :  { %v1116_v22 = vmul.f32 %v1114_v14, %v1108_v17 }
 0xf01   :  { %1118 = vrot.lane.b32.xlu0 %v1116_v22, %s2999_s16 }
 0xf4f   :  { %v1052_v9 = vpop.permute.xlu2 %1051 }
 0xf50   :  { %v3407_v29 = vadd.f32 %v1052_v9, %v1044_v24 }
 0xf52   :  { %2786 = vtanh.f32 %v3407_v29 }
 0xf58   :  { %v2787_v30 = vpop.eup %2786 }
 0xf59   :  { %1057 = vrot.lane.b32.xlu1 %v2787_v30, %s2998_s4 }
 0xf73   :  { %v1119_v63 = vpop.permute.xlu0 %1118 }
 0xf74   :  { %v3412_v0 = vadd.f32 %v1119_v63, %v1111_v31 }
 0xf76   :  { %2788 = vtanh.f32 %v3412_v0 }
 0xf7c   :  { %v2789_v1 = vpop.eup %2788 }
 0xf7d   :  { %1124 = vrot.lane.b32.xlu2 %v2789_v1, %s2998_s4 }
 0xfcb   :  { %v1058_v34 = vpop.permute.xlu1 %1057 }
 0xfcc   :  { %v3416_v21 = vmul.f32 %v1058_v34, %v1041_v26 }
 0xfce   :  { %1129 = vst [vmem:[#allocation1] ss:$4 sm:$0xff] %v3416_v21 }
 0xfd5   :  { %v1130_v37 = vld.sshfl [vmem:[#allocation1] sm:$0xff pattern:$0x73625140] }
 0xfd6   :  { %1131 = vrot.lane.b32.xlu1 %v1130_v37, %s2999_s16 }
 0xfd7   :  { %v1125_v39 = vpop.permute.xlu2 %1124 }
 0xfd8   :  { %v3420_v40 = vmul.f32 %v1125_v39, %v1108_v17 }
 0xfda   :  { %1196 = vst [vmem:[#allocation1] ss:$4 sm:$0xff] %v3420_v40 }
 0xfe1   :  { %v1197_v28 = vld.sshfl [vmem:[#allocation1] sm:$0xff pattern:$0x73625140] }
 0xfe2   :  { %1260 = vst [vmem:[#allocation1] ss:$4 sm:$0xff] %v3209_v4  ;;  %1198 = vrot.lane.b32.xlu0 %v1197_v28, %s2999_s16 }
 0xfe9   :  { %v1261_v7 = vld.sshfl [vmem:[#allocation1] sm:$0xff pattern:$0x73625140] }
0x1048   :  { %v1132_v41 = vpop.permute.xlu1 %1131 }
0x1049   :  { %2631 = vmatmul.msk.f32.vlgmr.msrb.gmra.mxu0 %vm214_vm12, %v1132_v41 }
0x1054   :  { %v1199_v8 = vpop.permute.xlu0 %1198 }
0x1055   :  { %2633 = vmatmul.msk.f32.vlgmr.msrb.gmra.mxu1 %vm214_vm12, %v1199_v8 }
0x10c6   :  { %v1152_v62 = vpop.f32.mrf.mxu0 }
0x10c7   :  { %v1155_v38 = vadd.f32 %v1152_v62, %v205_v12 }
0x10c9   :  { %v2632_v60 = vmul.f32 -1.442695, %v1155_v38 }
0x10d2   :  { %v1219_v44 = vpop.f32.mrf.mxu1 }
0x10d3   :  { %v1222_v45 = vadd.f32 %v1219_v44, %v1193_v42 }
0x10d5   :  { %2790 = vtanh.f32 %v1222_v45  ;;  %v2634_v23 = vmul.f32 -1.442695, %v1222_v45 }
0x10d6   :  { %2792 = vtanh.f32 %v1155_v38 }
0x10d7   :  { %2794 = vpow2.f32 %v2634_v23  ;;  %v1364_v23 = vld [vmem:[%s3868_s5 + $0x70] sm:$0xff] }
0x10d8   :  { %2796 = vpow2.f32 %v2632_v60  ;;  %v1365_v60 = vld [vmem:[%s3868_s5 + $0x78] sm:$0xff]  ;;  %1418 = vmatpush.msra.mxu2 %v1364_v23 }
0x10d9   :  { %1441 = vmatpush.msra.mxu3 %v1365_v60 }
0x10db   :  { %v2791_v46 = vpop.eup %2790 }
0x10dc   :  { %1245 = vrot.lane.b32.xlu2 %v2791_v46, %s2998_s4  ;;  %v2793_v4 = vpop.eup %2792 }
0x10dd   :  { %v2795_v48 = vpop.eup %2794 }
0x10de   :  { %v1226_v49 = vadd.f32 1.0, %v2795_v48  ;;  %v2797_v61 = vpop.eup %2796 }
0x10df   :  { %v1159_v6 = vadd.f32 1.0, %v2797_v61  ;;  %v1360_v61 = vld [vmem:[%s3868_s5 + $0x50] sm:$0xff] }
0x10e0   :  { %2798 = vrcp.f32 %v1226_v49  ;;  %v1238_v19 = vand.u32 2147483648, %v1226_v49  ;;  %vm1232_vm6 = vweird.f32 %v1226_v49  ;;  %v1236_v56 = vand.u32 2147483647, %v1226_v49 }
0x10e1   :  { %2800 = vrcp.f32 %v1159_v6  ;;  %v1171_v5 = vand.u32 2147483648, %v1159_v6  ;;  %vm1165_vm10 = vweird.f32 %v1159_v6  ;;  %v1169_v11 = vand.u32 2147483647, %v1159_v6 }
0x10e2   :  { %v1239_v36 = vor.u32 1.1754944e-38, %v1238_v19  ;;  %vm1237_vm8 = vcmp.eq.f32.partialorder %v1236_v56, 8.507059e+37  ;;  %v1350_v19 = vld [vmem:[%s3868_s5] sm:$0xff]  ;;  %v1351_v56 = vld [vmem:[%s3868_s5 + $0x8] sm:$0xff] }
0x10e3   :  { %v1172_v17 = vor.u32 1.1754944e-38, %v1171_v5  ;;  %vm1170_vm13 = vcmp.eq.f32.partialorder %v1169_v11, 8.507059e+37 }
0x10e4   :  { %1178 = vrot.lane.b32.xlu2 %v2793_v4, %s2998_s4 }
0x10e6   :  { %v2799_v12 = vpop.eup %2798 }
0x10e7   :  { %v1228_v20 = vmul.f32 %v2799_v12, %v1226_v49  ;;  %v2801_v51 = vpop.eup %2800  ;;  %vm1233_vm5 = vweird.f32 %v2799_v12  ;;  %v1363_v49 = vld [vmem:[%s3868_s5 + $0x68] sm:$0xff] }
0x10e8   :  { %v1161_v54 = vmul.f32 %v2801_v51, %v1159_v6  ;;  %vm1234_vm7 = vmor %vm1232_vm6, %vm1233_vm5  ;;  %vm1166_vm9 = vweird.f32 %v2801_v51  ;;  %v1361_v6 = vld [vmem:[%s3868_s5 + $0x58] sm:$0xff]  ;;  %1442 = vmatpush.msra.mxu3 %v1363_v49 }
0x10e9   :  { %v1229_v50 = vsub.f32 1.0, %v1228_v20  ;;  %vm1167_vm11 = vmor %vm1165_vm10, %vm1166_vm9  ;;  %v1359_v20 = vld [vmem:[%s3868_s5 + $0x48] sm:$0xff] }
0x10ea   :  { %v1162_v13 = vsub.f32 1.0, %v1161_v54  ;;  %1443 = vmatpush.msra.mxu3 %v1361_v6  ;;  %v1355_v54 = vld [vmem:[%s3868_s5 + $0x28] sm:$0xff] }
0x10eb   :  { %v1230_v27 = vmul.f32 %v2799_v12, %v1229_v50  ;;  %v1356_v50 = vld [vmem:[%s3868_s5 + $0x30] sm:$0xff] }
0x10ec   :  { %1262 = vrot.lane.b32.xlu2 %v1261_v7, %s2999_s16  ;;  %v1163_v26 = vmul.f32 %v2801_v51, %v1162_v13  ;;  %1444 = vmatpush.msra.mxu3 %v1359_v20  ;;  %v1353_v13 = vld [vmem:[%s3868_s5 + $0x18] sm:$0xff] }
0x10ed   :  { %v1231_v10 = vadd.f32 %v2799_v12, %v1230_v27  ;;  %v1354_v27 = vld [vmem:[%s3868_s5 + $0x20] sm:$0xff] }
0x10ee   :  { %v1164_v3 = vadd.f32 %v2801_v51, %v1163_v26  ;;  %v3525_v26 = vld [vmem:[%s3869_s6 + $0x10] sm:$0xff] }
0x10ef   :  { %v1235_v25 = vsel %vm1234_vm7, %v2799_v12, %v1231_v10  ;;  %v1358_v12 = vld [vmem:[%s3868_s5 + $0x40] sm:$0xff]  ;;  %v1352_v10 = vld [vmem:[%s3868_s5 + $0x10] sm:$0xff] }
0x10f0   :  { %v1240_v59 = vsel %vm1237_vm8, %v1239_v36, %v1235_v25  ;;  %v1168_v14 = vsel %vm1167_vm11, %v2801_v51, %v1164_v3  ;;  %v1357_v51 = vld [vmem:[%s3868_s5 + $0x38] sm:$0xff] }
0x10f1   :  { %v1173_v22 = vsel %vm1170_vm13, %v1172_v17, %v1168_v14  ;;  %v1243_v30 = vmul.f32 %v1240_v59, %v3412_v0  ;;  %1445 = vmatpush.msra.mxu3 %v1357_v51  ;;  %v3520_v25 = vld [vmem:[%s3869_s6 + $0x18] sm:$0xff] }
0x10f2   :  { %v1176_v1 = vmul.f32 %v1173_v22, %v3407_v29  ;;  %1496 = vmatpush.msra.mxu0 %v3520_v25 }
0x10f3   :  { %1446 = vmatpush.msra.mxu3 %v1355_v54 }
0x10f4   :  { %1497 = vmatpush.msra.mxu0 %v3525_v26 }
0x10f5   :  { %1447 = vmatpush.msra.mxu3 %v1353_v13 }
0x10f7   :  { %1448 = vmatpush.msra.mxu3 %v1351_v56 }
0x1136   :  { %v1246_v58 = vpop.permute.xlu2 %1245 }
0x1137   :  { %v1248_v2 = vmul.f32 %v1246_v58, %v1240_v59 }
0x1139   :  { %1250 = vrot.lane.b32.xlu0 %v1248_v2, %s2999_s16  ;;  %v3539_v2 = vld [vmem:[%s3869_s6] sm:$0xff] }
0x113e   :  { %v1179_v24 = vpop.permute.xlu2 %1178 }
0x113f   :  { %v1181_v9 = vmul.f32 %v1179_v24, %v1173_v22 }
0x1141   :  { %1183 = vrot.lane.b32.xlu0 %v1181_v9, %s2999_s16 }
0x11ab   :  { %v1251_v31 = vpop.permute.xlu0 %1250 }
0x11ac   :  { %v1253_v63 = vadd.f32 %v1251_v31, %v1243_v30 }
0x11ae   :  { %2802 = vtanh.f32 %v1253_v63 }
0x11b3   :  { %v1184_v34 = vpop.permute.xlu0 %1183 }
0x11b4   :  { %v2803_v37 = vpop.eup %2802  ;;  %v1186_v39 = vadd.f32 %v1184_v34, %v1176_v1  ;;  %v3567_v1 = vld [vmem:[%s3870_s7 + $0x18] sm:$0xff]  ;;  %v3572_v34 = vld [vmem:[%s3870_s7 + $0x10] sm:$0xff] }
0x11b5   :  { %1256 = vrot.lane.b32.xlu1 %v2803_v37, %s2998_s4  ;;  %1556 = vmatpush.msra.mxu1 %v3567_v1  ;;  %v3579_v37 = vld [vmem:[%s3870_s7 + $0x8] sm:$0xff] }
0x11b6   :  { %2804 = vtanh.f32 %v1186_v39  ;;  %1952 = vmatpush.msrb.mxu3 %v3567_v1  ;;  %v3586_v39 = vld [vmem:[%s3870_s7] sm:$0xff] }
0x11b7   :  { %1557 = vmatpush.msra.mxu1 %v3572_v34 }
0x11b8   :  { %1953 = vmatpush.msrb.mxu3 %v3572_v34 }
0x11b9   :  { %1558 = vmatpush.msra.mxu1 %v3579_v37 }
0x11ba   :  { %1954 = vmatpush.msrb.mxu3 %v3579_v37 }
0x11bb   :  { %1559 = vmatpush.msra.mxu1 %v3586_v39 }
0x11bc   :  { %v2805_v28 = vpop.eup %2804  ;;  %1955 = vmatpush.msrb.mxu3 %v3586_v39  ;;  %1560 = vmatmul.f32.vlgmr.msra.gmra.mxu1 %v2997_v33 }
0x11bd   :  { %1189 = vrot.lane.b32.xlu1 %v2805_v28, %s2998_s4  ;;  %1688 = vmatpush.msrb.mxu1 %v3567_v1 }
0x11bf   :  { %1689 = vmatpush.msrb.mxu1 %v3572_v34 }
0x11c1   :  { %1690 = vmatpush.msrb.mxu1 %v3579_v37 }
0x11c3   :  { %1691 = vmatpush.msrb.mxu1 %v3586_v39 }
0x11c5   :  { %1820 = vmatpush.msra.mxu1 %v3567_v1 }
0x11c7   :  { %1821 = vmatpush.msra.mxu1 %v3572_v34 }
0x11c9   :  { %1822 = vmatpush.msra.mxu1 %v3579_v37 }
0x11cb   :  { %1823 = vmatpush.msra.mxu1 %v3586_v39 }
0x1227   :  { %v1257_v41 = vpop.permute.xlu1 %1256 }
0x1228   :  { %v1259_v8 = vmul.f32 %v1257_v41, %v1240_v59  ;;  %v3534_v59 = vld [vmem:[%s3869_s6 + $0x8] sm:$0xff] }
0x1229   :  { %1498 = vmatpush.msra.mxu0 %v3534_v59 }
0x122a   :  { %1266 = vst [vmem:[#allocation1] ss:$4 sm:$0xff] %v1259_v8 }
0x122b   :  { %1499 = vmatpush.msra.mxu0 %v3539_v2 }
0x122c   :  { %1500 = vmatmul.f32.vlgmr.msra.gmra.mxu0 %v2997_v33 }
0x122d   :  { %1621 = vmatpush.msrb.mxu0 %v3520_v25 }
0x122f   :  { %1622 = vmatpush.msrb.mxu0 %v3525_v26 }
0x1231   :  { %v1267_v42 = vld.sshfl [vmem:[#allocation1] sm:$0xff pattern:$0x73625140]  ;;  %1623 = vmatpush.msrb.mxu0 %v3534_v59 }
0x1232   :  { %1272 = vst [vmem:[#allocation1] ss:$4 sm:$0xff] %v3247_v57  ;;  %1268 = vrot.lane.b32.xlu0 %v1267_v42, %s2998_s4 }
0x1233   :  { %1624 = vmatpush.msrb.mxu0 %v3539_v2 }
0x1235   :  { %1753 = vmatpush.msra.mxu0 %v3520_v25 }
0x1237   :  { %1754 = vmatpush.msra.mxu0 %v3525_v26 }
0x1239   :  { %v1273_v0 = vld.sshfl [vmem:[#allocation1] sm:$0xff pattern:$0x73625140]  ;;  %1755 = vmatpush.msra.mxu0 %v3534_v59  ;;  %v1561_v6 = vpop.f32.mrf.mxu1 }
0x123a   :  { %1274 = vrot.lane.b32.xlu1 %v1273_v0, %s2999_s16  ;;  %1277 = vst [vmem:[#allocation1] ss:$4 sm:$0xff] %v3420_v40 }
0x123b   :  { %1756 = vmatpush.msra.mxu0 %v3539_v2 }
0x1241   :  { %v1278_v29 = vld.sshfl [vmem:[#allocation1] sm:$0xff pattern:$0x73625140] }
0x1242   :  { %1279 = vrot.lane.b32.xlu2 %v1278_v29, %s2998_s4  ;;  %1283 = vst [vmem:[#allocation1] ss:$4 sm:$0xff] %v3285_v18 }
0x1249   :  { %v1284_v44 = vld.sshfl [vmem:[#allocation1] sm:$0xff pattern:$0x73625140] }
0x124a   :  { %1285 = vrot.lane.b32.xlu0 %v1284_v44, %s2999_s16  ;;  %1288 = vst [vmem:[#allocation1] ss:$4 sm:$0xff] %v3392_v55  ;;  %v1374_v44 = vld [vmem:[%s3871_s8] sm:$0x3] }
0x1251   :  { %v1289_v45 = vld.sshfl [vmem:[#allocation1] sm:$0xff pattern:$0x73625140] }
0x1252   :  { %1290 = vrot.lane.b32.xlu1 %v1289_v45, %s2998_s4  ;;  %1294 = vst [vmem:[#allocation1] ss:$4 sm:$0xff] %v3321_v43  ;;  %v1377_v45 = vperm.slane %v1374_v44, 1 }
0x1259   :  { %v1295_v57 = vld.sshfl [vmem:[#allocation1] sm:$0xff pattern:$0x73625140] }
0x125a   :  { %1296 = vrot.lane.b32.xlu2 %v1295_v57, %s2999_s16  ;;  %1299 = vst [vmem:[#allocation1] ss:$4 sm:$0xff] %v3352_v16  ;;  %v1376_v57 = vperm.slane %v1374_v44, 0 }
0x1261   :  { %v1300_v40 = vld.sshfl [vmem:[#allocation1] sm:$0xff pattern:$0x73625140] }
0x1262   :  { %1301 = vrot.lane.b32.xlu0 %v1300_v40, %s2998_s4  ;;  %1305 = vst [vmem:[#allocation1] ss:$4 sm:$0xff] %v3348_v53 }
0x1269   :  { %v1306_v18 = vld.sshfl [vmem:[#allocation1] sm:$0xff pattern:$0x73625140] }
0x126a   :  { %1307 = vrot.lane.b32.xlu1 %v1306_v18, %s2999_s16  ;;  %1310 = vst [vmem:[#allocation1] ss:$4 sm:$0xff] %v3325_v35  ;;  %v1190_v35 = vpop.permute.xlu1 %1189 }
0x126b   :  { %v1192_v62 = vmul.f32 %v1190_v35, %v1173_v22 }
0x1271   :  { %v1311_v55 = vld.sshfl [vmem:[#allocation1] sm:$0xff pattern:$0x73625140] }
0x1272   :  { %1312 = vrot.lane.b32.xlu2 %v1311_v55, %s2998_s4  ;;  %1316 = vst [vmem:[#allocation1] ss:$4 sm:$0xff] %v3388_v47 }
0x1279   :  { %v1317_v43 = vld.sshfl [vmem:[#allocation1] sm:$0xff pattern:$0x73625140] }
0x127a   :  { %1318 = vrot.lane.b32.xlu0 %v1317_v43, %s2999_s16  ;;  %1321 = vst [vmem:[#allocation1] ss:$4 sm:$0xff] %v3289_v52 }
0x1281   :  { %v1322_v16 = vld.sshfl [vmem:[#allocation1] sm:$0xff pattern:$0x73625140] }
0x1282   :  { %1323 = vrot.lane.b32.xlu1 %v1322_v16, %s2998_s4  ;;  %1327 = vst [vmem:[#allocation1] ss:$4 sm:$0xff] %v3416_v21  ;;  %v1263_v21 = vpop.permute.xlu2 %1262 }
0x1289   :  { %v1328_v53 = vld.sshfl [vmem:[#allocation1] sm:$0xff pattern:$0x73625140] }
0x128a   :  { %1329 = vrot.lane.b32.xlu2 %v1328_v53, %s2999_s16  ;;  %1332 = vst [vmem:[#allocation1] ss:$4 sm:$0xff] %v3251_v32 }
0x1291   :  { %v1333_v38 = vld.sshfl [vmem:[#allocation1] sm:$0xff pattern:$0x73625140] }
0x1292   :  { %1334 = vrot.lane.b32.xlu0 %v1333_v38, %s2998_s4  ;;  %1339 = vst [vmem:[#allocation1] ss:$4 sm:$0xff] %v1192_v62 }
0x1299   :  { %v1340_v47 = vld.sshfl [vmem:[#allocation1] sm:$0xff pattern:$0x73625140] }
0x129a   :  { %1341 = vrot.lane.b32.xlu1 %v1340_v47, %s2999_s16  ;;  %1344 = vst [vmem:[#allocation1] ss:$4 sm:$0xff] %v3213_v15  ;;  %v1362_v15 = vld [vmem:[%s3868_s5 + $0x60] sm:$0xff] }
0x129b   :  { %1419 = vmatpush.msra.mxu2 %v1362_v15 }
0x129c   :  { %v1280_v32 = vpop.permute.xlu2 %1279 }
0x129d   :  { %1420 = vmatpush.msra.mxu2 %v1360_v61 }
0x129f   :  { %1421 = vmatpush.msra.mxu2 %v1358_v12 }
0x12a1   :  { %v1345_v52 = vld.sshfl [vmem:[#allocation1] sm:$0xff pattern:$0x73625140]  ;;  %1422 = vmatpush.msra.mxu2 %v1356_v50 }
0x12a2   :  { %1346 = vrot.lane.b32.xlu2 %v1345_v52, %s2998_s4 }
0x12a3   :  { %1423 = vmatpush.msra.mxu2 %v1354_v27 }
0x12a4   :  { %v1269_v46 = vpop.permute.xlu0 %1268 }
0x12a5   :  { %v1271_v4 = vsel %vm214_vm12, %v1263_v21, %v1269_v46  ;;  %1424 = vmatpush.msra.mxu2 %v1352_v10 }
0x12a6   :  { %1388 = vst [vmem:[#allocation1] ss:$4 sm:$0xff] %v1271_v4 }
0x12a7   :  { %1425 = vmatpush.msra.mxu2 %v1350_v19 }
0x12a9   :  { %1885 = vmatpush.msrb.mxu2 %v3520_v25  ;;  %v1501_v53 = vpop.f32.mrf.mxu0 }
0x12ab   :  { %1886 = vmatpush.msrb.mxu2 %v3525_v26 }
0x12ac   :  { %v1275_v7 = vpop.permute.xlu1 %1274 }
0x12ad   :  { %v1282_v48 = vsel %vm214_vm12, %v1275_v7, %v1280_v32  ;;  %1887 = vmatpush.msrb.mxu2 %v3534_v59 }
0x12ae   :  { %1390 = vst [vmem:[#allocation1 + $0x1] ss:$4 sm:$0xff] %v1282_v48 }
0x12af   :  { %1888 = vmatpush.msrb.mxu2 %v3539_v2 }
0x12b4   :  { %v1297_v5 = vpop.permute.xlu2 %1296 }
0x12bc   :  { %v1286_v36 = vpop.permute.xlu0 %1285 }
0x12c4   :  { %v1291_v58 = vpop.permute.xlu1 %1290 }
0x12c5   :  { %v1293_v3 = vsel %vm214_vm12, %v1286_v36, %v1291_v58 }
0x12c6   :  { %1392 = vst [vmem:[#allocation1 + $0x2] ss:$4 sm:$0xff] %v1293_v3 }
0x12cc   :  { %v1313_v17 = vpop.permute.xlu2 %1312 }
0x12d4   :  { %v1302_v11 = vpop.permute.xlu0 %1301 }
0x12d5   :  { %v1304_v14 = vsel %vm214_vm12, %v1297_v5, %v1302_v11 }
0x12d6   :  { %1394 = vst [vmem:[#allocation1 + $0x3] ss:$4 sm:$0xff] %v1304_v14 }
0x12dc   :  { %v1308_v22 = vpop.permute.xlu1 %1307 }
0x12dd   :  { %v1315_v24 = vsel %vm214_vm12, %v1308_v22, %v1313_v17  ;;  %v1403_v9 = vld.sshfl [vmem:[#allocation1] sm:$0xff pattern:$0x73625140] }
0x12de   :  { %1396 = vst [vmem:[#allocation1 + $0x20] ss:$4 sm:$0xff] %v1315_v24  ;;  %2635 = vmatmul.msk.f32.vlgmr.msra.gmra.mxu2 %vm1405_vm14, %v1403_v9  ;;  %2637 = vmatmul.msk.f32.vlgmr.msra.gmra.mxu3 %vm1405_vm14, %v1403_v9 }
0x12df   :  { %2149 = vmatpush.msra.mxu2 %v3520_v25  ;;  %2216 = vmatpush.msra.mxu3 %v3567_v1 }
0x12e1   :  { %2150 = vmatpush.msra.mxu2 %v3525_v26  ;;  %2217 = vmatpush.msra.mxu3 %v3572_v34 }
0x12e3   :  { %2151 = vmatpush.msra.mxu2 %v3534_v59  ;;  %2218 = vmatpush.msra.mxu3 %v3579_v37 }
0x12e4   :  { %v1330_v28 = vpop.permute.xlu2 %1329 }
0x12e5   :  { %2152 = vmatpush.msra.mxu2 %v3539_v2  ;;  %2219 = vmatpush.msra.mxu3 %v3586_v39 }
0x12ec   :  { %v1319_v30 = vpop.permute.xlu0 %1318 }
0x12f4   :  { %v1324_v31 = vpop.permute.xlu1 %1323 }
0x12f5   :  { %v1326_v63 = vsel %vm214_vm12, %v1319_v30, %v1324_v31 }
0x12f6   :  { %1398 = vst [vmem:[#allocation1 + $0x21] ss:$4 sm:$0xff] %v1326_v63 }
0x12fc   :  { %v1347_v33 = vpop.permute.xlu2 %1346 }
0x1304   :  { %v1335_v41 = vpop.permute.xlu0 %1334 }
0x1305   :  { %v1337_v8 = vsel %vm214_vm12, %v1330_v28, %v1335_v41 }
0x1306   :  { %1400 = vst [vmem:[#allocation1 + $0x22] ss:$4 sm:$0xff] %v1337_v8 }
0x130c   :  { %v1342_v42 = vpop.permute.xlu1 %1341 }
0x130d   :  { %v1349_v0 = vsel %vm214_vm12, %v1342_v42, %v1347_v33 }
0x130e   :  { %1402 = vst [vmem:[#allocation1 + $0x23] ss:$4 sm:$0xff] %v1349_v0 }
0x1315   :  { %v1404_v29 = vld.sshfl [vmem:[#allocation1 + $0x20] sm:$0xff pattern:$0x73625140] }
0x1316   :  { %2636 = vmatmul.msk.f32.gmra.mxu2 %vm1405_vm14, %v1404_v29  ;;  %2638 = vmatmul.msk.f32.gmra.mxu3 %vm1405_vm14, %v1404_v29 }
0x1361   :  { %v1427_v40 = vpop.f32.mrf.mxu2  ;;  %v1450_v18 = vpop.f32.mrf.mxu3 }
0x1362   :  { %v1451_v55 = vadd.f32 %v1450_v18, %v1377_v45  ;;  %v1428_v43 = vadd.f32 %v1427_v40, %v1376_v57 }
0x1364   :  { %v1460_v16 = vrot.slane %v1451_v55, 6 }
0x1366   :  { %v3613_v35 = vsel %vm188_vm0, %v1428_v43, %v1460_v16  ;;  %v3616_v62 = vsel %vm190_vm2, %v1428_v43, %v1460_v16  ;;  %v3619_v38 = vsel %vm193_vm3, %v1428_v43, %v1460_v16  ;;  %v3622_v47 = vsel %vm196_vm1, %v1460_v16, %v1428_v43 }
0x1367   :  { %v1504_v52 = vadd.f32 %v1501_v53, %v3613_v35 }
0x1369   :  { %2806 = vtanh.f32 %v1504_v52  ;;  %v2639_v51 = vmul.f32 -1.442695, %v1504_v52 }
0x136f   :  { %v2807_v21 = vpop.eup %2806 }
0x1370   :  { %1527 = vrot.lane.b32.xlu0 %v2807_v21, %s2998_s4 }
0x1399   :  { %v1430_v46 = vpop.f32.mrf.mxu2  ;;  %v1453_v4 = vpop.f32.mrf.mxu3 }
0x139a   :  { %v1454_v32 = vadd.f32 %v1453_v4, %v1377_v45  ;;  %v1431_v7 = vadd.f32 %v1430_v46, %v1376_v57 }
0x139c   :  { %v1461_v23 = vrot.slane %v1454_v32, 6 }
0x139e   :  { %v3627_v60 = vsel %vm196_vm1, %v1461_v23, %v1431_v7  ;;  %v3630_v15 = vsel %vm193_vm3, %v1431_v7, %v1461_v23  ;;  %v3633_v48 = vsel %vm190_vm2, %v1431_v7, %v1461_v23  ;;  %v3636_v49 = vsel %vm188_vm0, %v1431_v7, %v1461_v23 }
0x139f   :  { %v1475_v61 = vrot.slane %v3627_v60, 6 }
0x13a1   :  { %v1542_v12 = vrot.slane %v1475_v61, 2 }
0x13a3   :  { %v1564_v20 = vadd.f32 %v1561_v6, %v1542_v12 }
0x13a5   :  { %2808 = vtanh.f32 %v1564_v20  ;;  %v2640_v24 = vmul.f32 -1.442695, %v1564_v20 }
0x13a6   :  { %2810 = vpow2.f32 %v2639_v51 }
0x13ab   :  { %v2809_v50 = vpop.eup %2808 }
0x13ac   :  { %1587 = vrot.lane.b32.xlu1 %v2809_v50, %s2998_s4  ;;  %v2811_v27 = vpop.eup %2810  ;;  %v1464_v50 = vrot.slane %v3616_v62, 2 }
0x13ad   :  { %v1508_v54 = vadd.f32 1.0, %v2811_v27 }
0x13af   :  { %2812 = vrcp.f32 %v1508_v54  ;;  %v1520_v58 = vand.u32 2147483648, %v1508_v54  ;;  %vm1514_vm1 = vweird.f32 %v1508_v54  ;;  %v1518_v3 = vand.u32 2147483647, %v1508_v54 }
0x13b0   :  { %2814 = vpow2.f32 %v2640_v24 }
0x13b1   :  { %v1521_v11 = vor.u32 1.1754944e-38, %v1520_v58  ;;  %vm1519_vm3 = vcmp.eq.f32.partialorder %v1518_v3, 8.507059e+37 }
0x13b5   :  { %v2813_v10 = vpop.eup %2812 }
0x13b6   :  { %v1510_v13 = vmul.f32 %v2813_v10, %v1508_v54  ;;  %vm1515_vm0 = vweird.f32 %v2813_v10  ;;  %v2815_v9 = vpop.eup %2814 }
0x13b7   :  { %vm1516_vm2 = vmor %vm1514_vm1, %vm1515_vm0  ;;  %v1568_v30 = vadd.f32 1.0, %v2815_v9 }
0x13b8   :  { %v1511_v19 = vsub.f32 1.0, %v1510_v13  ;;  %v1473_v13 = vrot.slane %v3630_v15, 4 }
0x13b9   :  { %2816 = vrcp.f32 %v1568_v30  ;;  %v1580_v33 = vand.u32 2147483648, %v1568_v30  ;;  %vm1574_vm4 = vweird.f32 %v1568_v30  ;;  %v1578_v42 = vand.u32 2147483647, %v1568_v30 }
0x13ba   :  { %v1512_v56 = vmul.f32 %v2813_v10, %v1511_v19  ;;  %v1667_v19 = vrot.slane %v1473_v13, 2 }
0x13bb   :  { %v1581_v29 = vor.u32 1.1754944e-38, %v1580_v33  ;;  %vm1579_vm6 = vcmp.eq.f32.partialorder %v1578_v42, 8.507059e+37 }
0x13bc   :  { %v1513_v36 = vadd.f32 %v2813_v10, %v1512_v56 }
0x13be   :  { %v1517_v5 = vsel %vm1516_vm2, %v2813_v10, %v1513_v36 }
0x13bf   :  { %v1522_v17 = vsel %vm1519_vm3, %v1521_v11, %v1517_v5  ;;  %v2817_v31 = vpop.eup %2816 }
0x13c0   :  { %v1570_v63 = vmul.f32 %v2817_v31, %v1568_v30  ;;  %vm1575_vm15 = vweird.f32 %v2817_v31  ;;  %v1525_v40 = vmul.f32 0.0, %v1522_v17 }
0x13c1   :  { %vm1576_vm5 = vmor %vm1574_vm4, %vm1575_vm15 }
0x13c2   :  { %v1571_v28 = vsub.f32 1.0, %v1570_v63 }
0x13c4   :  { %v1572_v41 = vmul.f32 %v2817_v31, %v1571_v28 }
0x13c6   :  { %v1573_v8 = vadd.f32 %v2817_v31, %v1572_v41 }
0x13c8   :  { %v1577_v0 = vsel %vm1576_vm5, %v2817_v31, %v1573_v8 }
0x13c9   :  { %v1582_v45 = vsel %vm1579_vm6, %v1581_v29, %v1577_v0 }
0x13ca   :  { %v1585_v16 = vmul.f32 0.0, %v1582_v45 }
0x13e2   :  { %v1528_v14 = vpop.permute.xlu0 %1527 }
0x13e3   :  { %v1530_v22 = vmul.f32 %v1528_v14, %v1522_v17 }
0x13e5   :  { %1532 = vrot.lane.b32.xlu2 %v1530_v22, %s2999_s16 }
0x141e   :  { %v1588_v44 = vpop.permute.xlu1 %1587 }
0x141f   :  { %v1590_v57 = vmul.f32 %v1588_v44, %v1582_v45 }
0x1421   :  { %1592 = vrot.lane.b32.xlu0 %v1590_v57, %s2999_s16 }
0x143f   :  { %v1533_v18 = vpop.permute.xlu2 %1532 }
0x1440   :  { %v3644_v55 = vadd.f32 %v1533_v18, %v1525_v40 }
0x1442   :  { %2818 = vtanh.f32 %v3644_v55 }
0x1448   :  { %v2819_v43 = vpop.eup %2818 }
0x1449   :  { %1538 = vrot.lane.b32.xlu1 %v2819_v43, %s2998_s4 }
0x1493   :  { %v1593_v53 = vpop.permute.xlu0 %1592 }
0x1494   :  { %v3648_v52 = vadd.f32 %v1593_v53, %v1585_v16 }
0x1496   :  { %2820 = vtanh.f32 %v3648_v52 }
0x149c   :  { %v2821_v21 = vpop.eup %2820 }
0x149d   :  { %1598 = vrot.lane.b32.xlu2 %v2821_v21, %s2998_s4 }
0x14bb   :  { %v1539_v46 = vpop.permute.xlu1 %1538 }
0x14bc   :  { %v1541_v4 = vmul.f32 %v1539_v46, %v1522_v17 }
0x14be   :  { %1603 = vst [vmem:[#allocation1] ss:$4 sm:$0xff] %v1541_v4 }
0x14c5   :  { %v1604_v32 = vld.sshfl [vmem:[#allocation1] sm:$0xff pattern:$0x73625140] }
0x14c6   :  { %1605 = vrot.lane.b32.xlu0 %v1604_v32, %s2999_s16 }
0x14f7   :  { %v1599_v7 = vpop.permute.xlu2 %1598 }
0x14f8   :  { %v1601_v23 = vmul.f32 %v1599_v7, %v1582_v45 }
0x14fa   :  { %1670 = vst [vmem:[#allocation1] ss:$4 sm:$0xff] %v1601_v23 }
0x1501   :  { %v1671_v6 = vld.sshfl [vmem:[#allocation1] sm:$0xff pattern:$0x73625140] }
0x1502   :  { %1672 = vrot.lane.b32.xlu1 %v1671_v6, %s2999_s16 }
0x1538   :  { %v1606_v12 = vpop.permute.xlu0 %1605 }
0x1539   :  { %2641 = vmatmul.msk.f32.vlgmr.msrb.gmra.mxu0 %vm214_vm12, %v1606_v12 }
0x153a   :  { %2017 = vmatpush.msrb.mxu0 %v3520_v25 }
0x153c   :  { %2018 = vmatpush.msrb.mxu0 %v3525_v26 }
0x153e   :  { %2019 = vmatpush.msrb.mxu0 %v3534_v59 }
0x1540   :  { %2020 = vmatpush.msrb.mxu0 %v3539_v2 }
0x1574   :  { %v1673_v20 = vpop.permute.xlu1 %1672 }
0x1575   :  { %2643 = vmatmul.msk.f32.vlgmr.msrb.gmra.mxu1 %vm214_vm12, %v1673_v20 }
0x1576   :  { %2084 = vmatpush.msrb.mxu1 %v3567_v1 }
0x1578   :  { %2085 = vmatpush.msrb.mxu1 %v3572_v34 }
0x157a   :  { %2086 = vmatpush.msrb.mxu1 %v3579_v37 }
0x157c   :  { %2087 = vmatpush.msrb.mxu1 %v3586_v39 }
0x15b6   :  { %v1626_v51 = vpop.f32.mrf.mxu0 }
0x15b7   :  { %v1629_v27 = vadd.f32 %v1626_v51, %v1464_v50 }
0x15b9   :  { %2822 = vtanh.f32 %v1629_v27  ;;  %v2642_v10 = vmul.f32 -1.442695, %v1629_v27 }
0x15bb   :  { %2824 = vpow2.f32 %v2642_v10 }
0x15bf   :  { %v2823_v54 = vpop.eup %2822 }
0x15c0   :  { %1652 = vrot.lane.b32.xlu2 %v2823_v54, %s2998_s4 }
0x15c1   :  { %v2825_v58 = vpop.eup %2824 }
0x15c2   :  { %v1633_v3 = vadd.f32 1.0, %v2825_v58 }
0x15c4   :  { %v1645_v9 = vand.u32 2147483648, %v1633_v3  ;;  %vm1639_vm8 = vweird.f32 %v1633_v3  ;;  %v1643_v30 = vand.u32 2147483647, %v1633_v3 }
0x15c6   :  { %v1646_v63 = vor.u32 1.1754944e-38, %v1645_v9  ;;  %vm1644_vm10 = vcmp.eq.f32.partialorder %v1643_v30, 8.507059e+37 }
0x15f2   :  { %v1693_v56 = vpop.f32.mrf.mxu1 }
0x15f3   :  { %v1696_v36 = vadd.f32 %v1693_v56, %v1667_v19 }
0x15f5   :  { %2826 = vtanh.f32 %v1696_v36  ;;  %v2644_v33 = vmul.f32 -1.442695, %v1696_v36 }
0x15f6   :  { %2828 = vrcp.f32 %v1633_v3 }
0x15f7   :  { %2830 = vpow2.f32 %v2644_v33 }
0x15fb   :  { %v2827_v5 = vpop.eup %2826 }
0x15fc   :  { %1719 = vrot.lane.b32.xlu0 %v2827_v5, %s2998_s4  ;;  %v2829_v11 = vpop.eup %2828 }
0x15fd   :  { %v1635_v14 = vmul.f32 %v2829_v11, %v1633_v3  ;;  %vm1640_vm7 = vweird.f32 %v2829_v11  ;;  %v2831_v42 = vpop.eup %2830  ;;  %v1466_v3 = vrot.slane %v3619_v38, 4 }
0x15fe   :  { %vm1641_vm9 = vmor %vm1639_vm8, %vm1640_vm7  ;;  %v1700_v0 = vadd.f32 1.0, %v2831_v42 }
0x15ff   :  { %v1636_v17 = vsub.f32 1.0, %v1635_v14 }
0x1600   :  { %2832 = vrcp.f32 %v1700_v0  ;;  %v1712_v18 = vand.u32 2147483648, %v1700_v0  ;;  %vm1706_vm13 = vweird.f32 %v1700_v0  ;;  %v1710_v43 = vand.u32 2147483647, %v1700_v0 }
0x1601   :  { %v1637_v22 = vmul.f32 %v2829_v11, %v1636_v17 }
0x1602   :  { %v1713_v53 = vor.u32 1.1754944e-38, %v1712_v18  ;;  %vm1711_vm1 = vcmp.eq.f32.partialorder %v1710_v43, 8.507059e+37 }
0x1603   :  { %v1638_v24 = vadd.f32 %v2829_v11, %v1637_v22  ;;  %v1471_v22 = vrot.slane %v3633_v48, 2 }
0x1605   :  { %v1642_v31 = vsel %vm1641_vm9, %v2829_v11, %v1638_v24  ;;  %v1799_v24 = vrot.slane %v1471_v22, 2 }
0x1606   :  { %v1647_v41 = vsel %vm1644_vm10, %v1646_v63, %v1642_v31  ;;  %v2833_v29 = vpop.eup %2832 }
0x1607   :  { %v1702_v44 = vmul.f32 %v2833_v29, %v1700_v0  ;;  %vm1707_vm11 = vweird.f32 %v2833_v29  ;;  %v1650_v32 = vmul.f32 %v1647_v41, %v3644_v55 }
0x1608   :  { %vm1708_vm0 = vmor %vm1706_vm13, %vm1707_vm11 }
0x1609   :  { %v1703_v45 = vsub.f32 1.0, %v1702_v44 }
0x160b   :  { %v1704_v57 = vmul.f32 %v2833_v29, %v1703_v45 }
0x160d   :  { %v1705_v40 = vadd.f32 %v2833_v29, %v1704_v57 }
0x160f   :  { %v1709_v16 = vsel %vm1708_vm0, %v2833_v29, %v1705_v40 }
0x1610   :  { %v1714_v46 = vsel %vm1711_vm1, %v1713_v53, %v1709_v16 }
0x1611   :  { %v1717_v12 = vmul.f32 %v1714_v46, %v3648_v52 }
0x161a   :  { %v1653_v28 = vpop.permute.xlu2 %1652 }
0x161b   :  { %v1655_v8 = vmul.f32 %v1653_v28, %v1647_v41 }
0x161d   :  { %1657 = vrot.lane.b32.xlu1 %v1655_v8, %s2999_s16 }
0x166e   :  { %v1720_v21 = vpop.permute.xlu0 %1719 }
0x166f   :  { %v1722_v4 = vmul.f32 %v1720_v21, %v1714_v46 }
0x1671   :  { %1724 = vrot.lane.b32.xlu2 %v1722_v4, %s2999_s16 }
0x168f   :  { %v1658_v7 = vpop.permute.xlu1 %1657 }
0x1690   :  { %v3675_v23 = vadd.f32 %v1658_v7, %v1650_v32 }
0x1692   :  { %2834 = vtanh.f32 %v3675_v23 }
0x1698   :  { %v2835_v6 = vpop.eup %2834 }
0x1699   :  { %1663 = vrot.lane.b32.xlu0 %v2835_v6, %s2998_s4 }
0x16cb   :  { %v1725_v20 = vpop.permute.xlu2 %1724 }
0x16cc   :  { %v3680_v51 = vadd.f32 %v1725_v20, %v1717_v12 }
0x16ce   :  { %2836 = vtanh.f32 %v3680_v51 }
0x16d4   :  { %v2837_v27 = vpop.eup %2836 }
0x16d5   :  { %1730 = vrot.lane.b32.xlu1 %v2837_v27, %s2998_s4 }
0x170b   :  { %v1664_v54 = vpop.permute.xlu0 %1663 }
0x170c   :  { %v1666_v55 = vmul.f32 %v1664_v54, %v1647_v41 }
0x170e   :  { %1735 = vst [vmem:[#allocation1] ss:$4 sm:$0xff] %v1666_v55 }
0x1715   :  { %v1736_v10 = vld.sshfl [vmem:[#allocation1] sm:$0xff pattern:$0x73625140] }
0x1716   :  { %1737 = vrot.lane.b32.xlu2 %v1736_v10, %s2999_s16 }
0x1747   :  { %v1731_v19 = vpop.permute.xlu1 %1730 }
0x1748   :  { %v1733_v56 = vmul.f32 %v1731_v19, %v1714_v46 }
0x174a   :  { %1802 = vst [vmem:[#allocation1] ss:$4 sm:$0xff] %v1733_v56 }
0x1751   :  { %v1803_v36 = vld.sshfl [vmem:[#allocation1] sm:$0xff pattern:$0x73625140] }
0x1752   :  { %1804 = vrot.lane.b32.xlu0 %v1803_v36, %s2999_s16 }
0x1770   :  { %v1738_v52 = vpop.permute.xlu2 %1737 }
0x1771   :  { %2645 = vmatmul.msk.f32.vlgmr.msra.gmra.mxu0 %vm214_vm12, %v1738_v52 }
0x1772   :  { %2281 = vmatpush.msra.mxu0 %v3520_v25 }
0x1774   :  { %2282 = vmatpush.msra.mxu0 %v3525_v26 }
0x1776   :  { %2283 = vmatpush.msra.mxu0 %v3534_v59 }
0x1778   :  { %2284 = vmatpush.msra.mxu0 %v3539_v2 }
0x17c4   :  { %v1805_v58 = vpop.permute.xlu0 %1804 }
0x17c5   :  { %2647 = vmatmul.msk.f32.vlgmr.msra.gmra.mxu1 %vm214_vm12, %v1805_v58 }
0x17c6   :  { %2348 = vmatpush.msra.mxu1 %v3567_v1 }
0x17c8   :  { %2349 = vmatpush.msra.mxu1 %v3572_v34 }
0x17ca   :  { %2350 = vmatpush.msra.mxu1 %v3579_v37 }
0x17cc   :  { %2351 = vmatpush.msra.mxu1 %v3586_v39 }
0x17ee   :  { %v1758_v5 = vpop.f32.mrf.mxu0 }
0x17ef   :  { %v1761_v11 = vadd.f32 %v1758_v5, %v1466_v3 }
0x17f1   :  { %2838 = vtanh.f32 %v1761_v11  ;;  %v2646_v17 = vmul.f32 -1.442695, %v1761_v11 }
0x17f3   :  { %2840 = vpow2.f32 %v2646_v17 }
0x17f7   :  { %v2839_v14 = vpop.eup %2838 }
0x17f8   :  { %1784 = vrot.lane.b32.xlu1 %v2839_v14, %s2998_s4 }
0x17f9   :  { %v2841_v31 = vpop.eup %2840 }
0x17fa   :  { %v1765_v63 = vadd.f32 1.0, %v2841_v31 }
0x17fc   :  { %v1777_v29 = vand.u32 2147483648, %v1765_v63  ;;  %vm1771_vm3 = vweird.f32 %v1765_v63  ;;  %v1775_v44 = vand.u32 2147483647, %v1765_v63 }
0x17fe   :  { %v1778_v57 = vor.u32 1.1754944e-38, %v1777_v29  ;;  %vm1776_vm4 = vcmp.eq.f32.partialorder %v1775_v44, 8.507059e+37 }
0x1842   :  { %v1825_v9 = vpop.f32.mrf.mxu1 }
0x1843   :  { %v1828_v30 = vadd.f32 %v1825_v9, %v1799_v24 }
0x1845   :  { %2842 = vtanh.f32 %v1828_v30  ;;  %v2648_v16 = vmul.f32 -1.442695, %v1828_v30 }
0x1846   :  { %2844 = vrcp.f32 %v1765_v63 }
0x1847   :  { %2846 = vpow2.f32 %v2648_v16 }
0x184b   :  { %v2843_v28 = vpop.eup %2842 }
0x184c   :  { %1851 = vrot.lane.b32.xlu2 %v2843_v28, %s2998_s4  ;;  %v2845_v41 = vpop.eup %2844 }
0x184d   :  { %v1767_v8 = vmul.f32 %v2845_v41, %v1765_v63  ;;  %vm1772_vm2 = vweird.f32 %v2845_v41  ;;  %v2847_v53 = vpop.eup %2846 }
0x184e   :  { %vm1773_vm15 = vmor %vm1771_vm3, %vm1772_vm2  ;;  %v1832_v21 = vadd.f32 1.0, %v2847_v53 }
0x184f   :  { %v1768_v33 = vsub.f32 1.0, %v1767_v8 }
0x1850   :  { %2848 = vrcp.f32 %v1832_v21  ;;  %v1844_v12 = vand.u32 2147483648, %v1832_v21  ;;  %vm1838_vm6 = vweird.f32 %v1832_v21  ;;  %v1842_v20 = vand.u32 2147483647, %v1832_v21 }
0x1851   :  { %v1769_v42 = vmul.f32 %v2845_v41, %v1768_v33 }
0x1852   :  { %v1845_v54 = vor.u32 1.1754944e-38, %v1844_v12  ;;  %vm1843_vm8 = vcmp.eq.f32.partialorder %v1842_v20, 8.507059e+37 }
0x1853   :  { %v1770_v0 = vadd.f32 %v2845_v41, %v1769_v42 }
0x1855   :  { %v1774_v45 = vsel %vm1773_vm15, %v2845_v41, %v1770_v0  ;;  %v1468_v41 = vrot.slane %v3622_v47, 6 }
0x1856   :  { %v1779_v40 = vsel %vm1776_vm4, %v1778_v57, %v1774_v45  ;;  %v2849_v46 = vpop.eup %2848 }
0x1857   :  { %v1834_v4 = vmul.f32 %v2849_v46, %v1832_v21  ;;  %vm1839_vm5 = vweird.f32 %v2849_v46  ;;  %v1782_v56 = vmul.f32 %v1779_v40, %v3675_v23 }
0x1858   :  { %vm1840_vm7 = vmor %vm1838_vm6, %vm1839_vm5 }
0x1859   :  { %v1835_v32 = vsub.f32 1.0, %v1834_v4 }
0x185b   :  { %v1836_v7 = vmul.f32 %v2849_v46, %v1835_v32 }
0x185d   :  { %v1837_v6 = vadd.f32 %v2849_v46, %v1836_v7 }
0x185f   :  { %v1841_v27 = vsel %vm1840_vm7, %v2849_v46, %v1837_v6 }
0x1860   :  { %v1846_v10 = vsel %vm1843_vm8, %v1845_v54, %v1841_v27 }
0x1861   :  { %v1849_v5 = vmul.f32 %v1846_v10, %v3680_v51 }
0x186a   :  { %v1785_v18 = vpop.permute.xlu1 %1784 }
0x186b   :  { %v1787_v43 = vmul.f32 %v1785_v18, %v1779_v40 }
0x186d   :  { %1789 = vrot.lane.b32.xlu0 %v1787_v43, %s2999_s16 }
0x18a6   :  { %v1852_v55 = vpop.permute.xlu2 %1851 }
0x18a7   :  { %v1854_v19 = vmul.f32 %v1852_v55, %v1846_v10 }
0x18a9   :  { %1856 = vrot.lane.b32.xlu1 %v1854_v19, %s2999_s16 }
0x18df   :  { %v1790_v36 = vpop.permute.xlu0 %1789 }
0x18e0   :  { %v3707_v52 = vadd.f32 %v1790_v36, %v1782_v56 }
0x18e2   :  { %2850 = vtanh.f32 %v3707_v52 }
0x18e8   :  { %v2851_v58 = vpop.eup %2850 }
0x18e9   :  { %1795 = vrot.lane.b32.xlu2 %v2851_v58, %s2998_s4 }
0x191b   :  { %v1857_v11 = vpop.permute.xlu1 %1856 }
0x191c   :  { %v3712_v14 = vadd.f32 %v1857_v11, %v1849_v5 }
0x191e   :  { %2852 = vtanh.f32 %v3712_v14 }
0x1924   :  { %v2853_v17 = vpop.eup %2852 }
0x1925   :  { %1862 = vrot.lane.b32.xlu0 %v2853_v17, %s2998_s4 }
0x1943   :  { %v1796_v24 = vpop.permute.xlu2 %1795 }
0x1944   :  { %v1798_v23 = vmul.f32 %v1796_v24, %v1779_v40 }
0x1946   :  { %1867 = vst [vmem:[#allocation1] ss:$4 sm:$0xff] %v1798_v23 }
0x194d   :  { %v1868_v9 = vld.sshfl [vmem:[#allocation1] sm:$0xff pattern:$0x73625140] }
0x194e   :  { %1869 = vrot.lane.b32.xlu1 %v1868_v9, %s2999_s16 }
0x1997   :  { %v1863_v30 = vpop.permute.xlu0 %1862 }
0x1998   :  { %v1865_v31 = vmul.f32 %v1863_v30, %v1846_v10 }
0x199a   :  { %1934 = vst [vmem:[#allocation1] ss:$4 sm:$0xff] %v1865_v31 }
0x19a1   :  { %v1935_v63 = vld.sshfl [vmem:[#allocation1] sm:$0xff pattern:$0x73625140] }
0x19a2   :  { %1936 = vrot.lane.b32.xlu2 %v1935_v63, %s2999_s16 }
0x19c0   :  { %v1870_v51 = vpop.permute.xlu1 %1869 }
0x19c1   :  { %2649 = vmatmul.msk.f32.vlgmr.msrb.gmra.mxu2 %vm214_vm12, %v1870_v51 }
0x19c2   :  { %2413 = vmatpush.msrb.mxu2 %v3520_v25 }
0x19c4   :  { %2414 = vmatpush.msrb.mxu2 %v3525_v26 }
0x19c6   :  { %2415 = vmatpush.msrb.mxu2 %v3534_v59 }
0x19c8   :  { %2416 = vmatpush.msrb.mxu2 %v3539_v2  ;;  %v1931_v2 = vrot.slane %v3636_v49, 2 }
0x19fc   :  { %v1937_v28 = vpop.permute.xlu2 %1936 }
0x19fd   :  { %2651 = vmatmul.msk.f32.vlgmr.msrb.gmra.mxu3 %vm214_vm12, %v1937_v28 }
0x19fe   :  { %2480 = vmatpush.msrb.mxu3 %v3567_v1 }
0x1a00   :  { %2481 = vmatpush.msrb.mxu3 %v3572_v34 }
0x1a02   :  { %2482 = vmatpush.msrb.mxu3 %v3579_v37 }
0x1a04   :  { %2483 = vmatpush.msrb.mxu3 %v3586_v39 }
0x1a44   :  { %v1890_v25 = vpop.f32.mrf.mxu2 }
0x1a45   :  { %v1893_v26 = vadd.f32 %v1890_v25, %v1468_v41 }
0x1a47   :  { %2854 = vtanh.f32 %v1893_v26  ;;  %v2650_v37 = vmul.f32 -1.442695, %v1893_v26 }
0x1a4d   :  { %v2855_v59 = vpop.eup %2854 }
0x1a4e   :  { %1916 = vrot.lane.b32.xlu0 %v2855_v59, %s2998_s4 }
0x1a80   :  { %v1957_v8 = vpop.f32.mrf.mxu3 }
0x1a81   :  { %v1960_v1 = vadd.f32 %v1957_v8, %v1931_v2 }
0x1a83   :  { %2856 = vtanh.f32 %v1960_v1  ;;  %v2652_v46 = vmul.f32 -1.442695, %v1960_v1 }
0x1a84   :  { %2858 = vpow2.f32 %v2650_v37  ;;  %v2063_v37 = vrot.slane %v1468_v41, 2 }
0x1a89   :  { %v2857_v34 = vpop.eup %2856 }
0x1a8a   :  { %1983 = vrot.lane.b32.xlu1 %v2857_v34, %s2998_s4  ;;  %v2859_v39 = vpop.eup %2858 }
0x1a8b   :  { %v1897_v33 = vadd.f32 1.0, %v2859_v39 }
0x1a8d   :  { %2860 = vrcp.f32 %v1897_v33  ;;  %v1909_v57 = vand.u32 2147483648, %v1897_v33  ;;  %vm1903_vm10 = vweird.f32 %v1897_v33  ;;  %v1907_v40 = vand.u32 2147483647, %v1897_v33 }
0x1a8e   :  { %2862 = vpow2.f32 %v2652_v46 }
0x1a8f   :  { %v1910_v43 = vor.u32 1.1754944e-38, %v1909_v57  ;;  %vm1908_vm13 = vcmp.eq.f32.partialorder %v1907_v40, 8.507059e+37 }
0x1a93   :  { %v2861_v42 = vpop.eup %2860 }
0x1a94   :  { %v1899_v0 = vmul.f32 %v2861_v42, %v1897_v33  ;;  %vm1904_vm9 = vweird.f32 %v2861_v42  ;;  %v2863_v4 = vpop.eup %2862 }
0x1a95   :  { %vm1905_vm11 = vmor %vm1903_vm10, %vm1904_vm9  ;;  %v1964_v32 = vadd.f32 1.0, %v2863_v4 }
0x1a96   :  { %v1900_v29 = vsub.f32 1.0, %v1899_v0 }
0x1a97   :  { %2864 = vrcp.f32 %v1964_v32  ;;  %v1976_v54 = vand.u32 2147483648, %v1964_v32  ;;  %vm1970_vm1 = vweird.f32 %v1964_v32  ;;  %v1974_v55 = vand.u32 2147483647, %v1964_v32 }
0x1a98   :  { %v1901_v44 = vmul.f32 %v2861_v42, %v1900_v29 }
0x1a99   :  { %v1977_v19 = vor.u32 1.1754944e-38, %v1976_v54  ;;  %vm1975_vm3 = vcmp.eq.f32.partialorder %v1974_v55, 8.507059e+37 }
0x1a9a   :  { %v1902_v45 = vadd.f32 %v2861_v42, %v1901_v44 }
0x1a9c   :  { %v1906_v18 = vsel %vm1905_vm11, %v2861_v42, %v1902_v45 }
0x1a9d   :  { %v1911_v53 = vsel %vm1908_vm13, %v1910_v43, %v1906_v18  ;;  %v2865_v7 = vpop.eup %2864 }
0x1a9e   :  { %v1966_v6 = vmul.f32 %v2865_v7, %v1964_v32  ;;  %vm1971_vm0 = vweird.f32 %v2865_v7  ;;  %v1914_v5 = vmul.f32 %v1911_v53, %v3707_v52 }
0x1a9f   :  { %vm1972_vm2 = vmor %vm1970_vm1, %vm1971_vm0 }
0x1aa0   :  { %v1967_v12 = vsub.f32 1.0, %v1966_v6 }
0x1aa2   :  { %v1968_v20 = vmul.f32 %v2865_v7, %v1967_v12 }
0x1aa4   :  { %v1969_v27 = vadd.f32 %v2865_v7, %v1968_v20 }
0x1aa6   :  { %v1973_v10 = vsel %vm1972_vm2, %v2865_v7, %v1969_v27 }
0x1aa7   :  { %v1978_v56 = vsel %vm1975_vm3, %v1977_v19, %v1973_v10 }
0x1aa8   :  { %v1981_v23 = vmul.f32 %v1978_v56, %v3712_v14 }
0x1ac0   :  { %v1917_v16 = vpop.permute.xlu0 %1916 }
0x1ac1   :  { %v1919_v21 = vmul.f32 %v1917_v16, %v1911_v53 }
0x1ac3   :  { %1921 = vrot.lane.b32.xlu2 %v1919_v21, %s2999_s16 }
0x1afc   :  { %v1984_v36 = vpop.permute.xlu1 %1983 }
0x1afd   :  { %v1986_v58 = vmul.f32 %v1984_v36, %v1978_v56 }
0x1aff   :  { %1988 = vrot.lane.b32.xlu0 %v1986_v58, %s2999_s16 }
0x1b1d   :  { %v1922_v11 = vpop.permute.xlu2 %1921 }
0x1b1e   :  { %v3737_v17 = vadd.f32 %v1922_v11, %v1914_v5 }
0x1b20   :  { %2866 = vtanh.f32 %v3737_v17 }
0x1b26   :  { %v2867_v24 = vpop.eup %2866 }
0x1b27   :  { %1927 = vrot.lane.b32.xlu1 %v2867_v24, %s2998_s4 }
0x1b71   :  { %v1989_v9 = vpop.permute.xlu0 %1988 }
0x1b72   :  { %v3742_v30 = vadd.f32 %v1989_v9, %v1981_v23 }
0x1b74   :  { %2868 = vtanh.f32 %v3742_v30 }
0x1b7a   :  { %v2869_v31 = vpop.eup %2868 }
0x1b7b   :  { %1994 = vrot.lane.b32.xlu2 %v2869_v31, %s2998_s4 }
0x1b99   :  { %v1928_v63 = vpop.permute.xlu1 %1927 }
0x1b9a   :  { %v1930_v52 = vmul.f32 %v1928_v63, %v1911_v53 }
0x1b9c   :  { %1999 = vst [vmem:[#allocation1] ss:$4 sm:$0xff] %v1930_v52 }
0x1ba3   :  { %v2000_v51 = vld.sshfl [vmem:[#allocation1] sm:$0xff pattern:$0x73625140] }
0x1ba4   :  { %2001 = vrot.lane.b32.xlu0 %v2000_v51, %s2999_s16 }
0x1bd5   :  { %v1995_v28 = vpop.permute.xlu2 %1994 }
0x1bd6   :  { %v1997_v25 = vmul.f32 %v1995_v28, %v1978_v56 }
0x1bd8   :  { %2066 = vst [vmem:[#allocation1] ss:$4 sm:$0xff] %v1997_v25 }
0x1bdf   :  { %v2067_v26 = vld.sshfl [vmem:[#allocation1] sm:$0xff pattern:$0x73625140] }
0x1be0   :  { %2068 = vrot.lane.b32.xlu1 %v2067_v26, %s2999_s16 }
0x1c16   :  { %v2002_v14 = vpop.permute.xlu0 %2001 }
0x1c17   :  { %2653 = vmatmul.msk.f32.vlgmr.msrb.gmra.mxu0 %vm214_vm12, %v2002_v14 }
0x1c52   :  { %v2069_v59 = vpop.permute.xlu1 %2068 }
0x1c53   :  { %2655 = vmatmul.msk.f32.vlgmr.msrb.gmra.mxu1 %vm214_vm12, %v2069_v59 }
0x1c94   :  { %v2022_v2 = vpop.f32.mrf.mxu0 }
0x1c95   :  { %v2025_v8 = vadd.f32 %v2022_v2, %v3636_v49 }
0x1c97   :  { %2870 = vtanh.f32 %v2025_v8  ;;  %v2654_v34 = vmul.f32 -1.442695, %v2025_v8 }
0x1c99   :  { %2872 = vpow2.f32 %v2654_v34 }
0x1c9d   :  { %v2871_v1 = vpop.eup %2870 }
0x1c9e   :  { %2048 = vrot.lane.b32.xlu2 %v2871_v1, %s2998_s4 }
0x1c9f   :  { %v2873_v42 = vpop.eup %2872 }
0x1ca0   :  { %v2029_v0 = vadd.f32 1.0, %v2873_v42 }
0x1ca2   :  { %v2041_v18 = vand.u32 2147483648, %v2029_v0  ;;  %vm2035_vm4 = vweird.f32 %v2029_v0  ;;  %v2039_v43 = vand.u32 2147483647, %v2029_v0 }
0x1ca4   :  { %v2042_v41 = vor.u32 1.1754944e-38, %v2041_v18  ;;  %vm2040_vm6 = vcmp.eq.f32.partialorder %v2039_v43, 8.507059e+37 }
0x1cd0   :  { %v2089_v39 = vpop.f32.mrf.mxu1 }
0x1cd1   :  { %v2092_v33 = vadd.f32 %v2089_v39, %v2063_v37  ;;  %v2195_v37 = vrot.slane %v1466_v3, 2 }
0x1cd3   :  { %2874 = vtanh.f32 %v2092_v33  ;;  %v2656_v46 = vmul.f32 -1.442695, %v2092_v33 }
0x1cd4   :  { %2876 = vrcp.f32 %v2029_v0 }
0x1cd5   :  { %2878 = vpow2.f32 %v2656_v46 }
0x1cd9   :  { %v2875_v29 = vpop.eup %2874 }
0x1cda   :  { %2115 = vrot.lane.b32.xlu0 %v2875_v29, %s2998_s4  ;;  %v2877_v44 = vpop.eup %2876 }
0x1cdb   :  { %v2031_v49 = vmul.f32 %v2877_v44, %v2029_v0  ;;  %vm2036_vm15 = vweird.f32 %v2877_v44  ;;  %v2879_v4 = vpop.eup %2878 }
0x1cdc   :  { %vm2037_vm5 = vmor %vm2035_vm4, %vm2036_vm15  ;;  %v2096_v32 = vadd.f32 1.0, %v2879_v4 }
0x1cdd   :  { %v2032_v45 = vsub.f32 1.0, %v2031_v49 }
0x1cde   :  { %2880 = vrcp.f32 %v2096_v32  ;;  %v2108_v54 = vand.u32 2147483648, %v2096_v32  ;;  %vm2102_vm8 = vweird.f32 %v2096_v32  ;;  %v2106_v55 = vand.u32 2147483647, %v2096_v32 }
0x1cdf   :  { %v2033_v57 = vmul.f32 %v2877_v44, %v2032_v45 }
0x1ce0   :  { %v2109_v19 = vor.u32 1.1754944e-38, %v2108_v54  ;;  %vm2107_vm10 = vcmp.eq.f32.partialorder %v2106_v55, 8.507059e+37 }
0x1ce1   :  { %v2034_v40 = vadd.f32 %v2877_v44, %v2033_v57 }
0x1ce3   :  { %v2038_v47 = vsel %vm2037_vm5, %v2877_v44, %v2034_v40 }
0x1ce4   :  { %v2043_v53 = vsel %vm2040_vm6, %v2042_v41, %v2038_v47  ;;  %v2881_v7 = vpop.eup %2880 }
0x1ce5   :  { %v2098_v6 = vmul.f32 %v2881_v7, %v2096_v32  ;;  %vm2103_vm7 = vweird.f32 %v2881_v7  ;;  %v2046_v5 = vmul.f32 %v2043_v53, %v3737_v17 }
0x1ce6   :  { %vm2104_vm9 = vmor %vm2102_vm8, %vm2103_vm7 }
0x1ce7   :  { %v2099_v12 = vsub.f32 1.0, %v2098_v6 }
0x1ce9   :  { %v2100_v20 = vmul.f32 %v2881_v7, %v2099_v12 }
0x1ceb   :  { %v2101_v27 = vadd.f32 %v2881_v7, %v2100_v20 }
0x1ced   :  { %v2105_v10 = vsel %vm2104_vm9, %v2881_v7, %v2101_v27 }
0x1cee   :  { %v2110_v36 = vsel %vm2107_vm10, %v2109_v19, %v2105_v10 }
0x1cef   :  { %v2113_v9 = vmul.f32 %v2110_v36, %v3742_v30 }
0x1cf8   :  { %v2049_v16 = vpop.permute.xlu2 %2048 }
0x1cf9   :  { %v2051_v21 = vmul.f32 %v2049_v16, %v2043_v53 }
0x1cfb   :  { %2053 = vrot.lane.b32.xlu1 %v2051_v21, %s2999_s16 }
0x1d4c   :  { %v2116_v56 = vpop.permute.xlu0 %2115 }
0x1d4d   :  { %v2118_v58 = vmul.f32 %v2116_v56, %v2110_v36 }
0x1d4f   :  { %2120 = vrot.lane.b32.xlu2 %v2118_v58, %s2999_s16 }
0x1d6d   :  { %v2054_v11 = vpop.permute.xlu1 %2053 }
0x1d6e   :  { %v3758_v24 = vadd.f32 %v2054_v11, %v2046_v5 }
0x1d70   :  { %2882 = vtanh.f32 %v3758_v24 }
0x1d76   :  { %v2883_v23 = vpop.eup %2882 }
0x1d77   :  { %2059 = vrot.lane.b32.xlu0 %v2883_v23, %s2998_s4 }
0x1da9   :  { %v2121_v31 = vpop.permute.xlu2 %2120 }
0x1daa   :  { %v3763_v63 = vadd.f32 %v2121_v31, %v2113_v9 }
0x1dac   :  { %2884 = vtanh.f32 %v3763_v63 }
0x1db2   :  { %v2885_v52 = vpop.eup %2884 }
0x1db3   :  { %2126 = vrot.lane.b32.xlu1 %v2885_v52, %s2998_s4 }
0x1de9   :  { %v2060_v51 = vpop.permute.xlu0 %2059 }
0x1dea   :  { %v2062_v17 = vmul.f32 %v2060_v51, %v2043_v53 }
0x1dec   :  { %2131 = vst [vmem:[#allocation1] ss:$4 sm:$0xff] %v2062_v17 }
0x1df3   :  { %v2132_v28 = vld.sshfl [vmem:[#allocation1] sm:$0xff pattern:$0x73625140] }
0x1df4   :  { %2133 = vrot.lane.b32.xlu2 %v2132_v28, %s2999_s16 }
0x1e25   :  { %v2127_v25 = vpop.permute.xlu1 %2126 }
0x1e26   :  { %v2129_v26 = vmul.f32 %v2127_v25, %v2110_v36 }
0x1e28   :  { %2198 = vst [vmem:[#allocation1] ss:$4 sm:$0xff] %v2129_v26 }
0x1e2f   :  { %v2199_v14 = vld.sshfl [vmem:[#allocation1] sm:$0xff pattern:$0x73625140] }
0x1e30   :  { %2200 = vrot.lane.b32.xlu0 %v2199_v14, %s2999_s16 }
0x1e4e   :  { %v2134_v30 = vpop.permute.xlu2 %2133 }
0x1e4f   :  { %2657 = vmatmul.msk.f32.vlgmr.msra.gmra.mxu2 %vm214_vm12, %v2134_v30 }
0x1ea2   :  { %v2201_v59 = vpop.permute.xlu0 %2200 }
0x1ea3   :  { %2659 = vmatmul.msk.f32.vlgmr.msra.gmra.mxu3 %vm214_vm12, %v2201_v59  ;;  %v2327_v59 = vrot.slane %v1464_v50, 2 }
0x1ed2   :  { %v2154_v2 = vpop.f32.mrf.mxu2 }
0x1ed3   :  { %v2157_v8 = vadd.f32 %v2154_v2, %v1471_v22 }
0x1ed5   :  { %2886 = vtanh.f32 %v2157_v8  ;;  %v2658_v34 = vmul.f32 -1.442695, %v2157_v8 }
0x1ed7   :  { %2888 = vpow2.f32 %v2658_v34 }
0x1edb   :  { %v2887_v1 = vpop.eup %2886 }
0x1edc   :  { %2180 = vrot.lane.b32.xlu1 %v2887_v1, %s2998_s4 }
0x1edd   :  { %v2889_v42 = vpop.eup %2888 }
0x1ede   :  { %v2161_v0 = vadd.f32 1.0, %v2889_v42 }
0x1ee0   :  { %v2173_v57 = vand.u32 2147483648, %v2161_v0  ;;  %vm2167_vm13 = vweird.f32 %v2161_v0  ;;  %v2171_v40 = vand.u32 2147483647, %v2161_v0 }
0x1ee2   :  { %v2174_v3 = vor.u32 1.1754944e-38, %v2173_v57  ;;  %vm2172_vm1 = vcmp.eq.f32.partialorder %v2171_v40, 8.507059e+37 }
0x1f26   :  { %v2221_v39 = vpop.f32.mrf.mxu3 }
0x1f27   :  { %v2224_v33 = vadd.f32 %v2221_v39, %v2195_v37 }
0x1f29   :  { %2890 = vtanh.f32 %v2224_v33  ;;  %v2660_v41 = vmul.f32 -1.442695, %v2224_v33 }
0x1f2a   :  { %2892 = vrcp.f32 %v2161_v0 }
0x1f2b   :  { %2894 = vpow2.f32 %v2660_v41 }
0x1f2f   :  { %v2891_v29 = vpop.eup %2890 }
0x1f30   :  { %2247 = vrot.lane.b32.xlu2 %v2891_v29, %s2998_s4  ;;  %v2893_v48 = vpop.eup %2892 }
0x1f31   :  { %v2163_v22 = vmul.f32 %v2893_v48, %v2161_v0  ;;  %vm2168_vm11 = vweird.f32 %v2893_v48  ;;  %v2895_v16 = vpop.eup %2894 }
0x1f32   :  { %vm2169_vm0 = vmor %vm2167_vm13, %vm2168_vm11  ;;  %v2228_v53 = vadd.f32 1.0, %v2895_v16 }
0x1f33   :  { %v2164_v44 = vsub.f32 1.0, %v2163_v22 }
0x1f34   :  { %2896 = vrcp.f32 %v2228_v53  ;;  %v2240_v6 = vand.u32 2147483648, %v2228_v53  ;;  %vm2234_vm3 = vweird.f32 %v2228_v53  ;;  %v2238_v12 = vand.u32 2147483647, %v2228_v53 }
0x1f35   :  { %v2165_v49 = vmul.f32 %v2893_v48, %v2164_v44 }
0x1f36   :  { %v2241_v27 = vor.u32 1.1754944e-38, %v2240_v6  ;;  %vm2239_vm4 = vcmp.eq.f32.partialorder %v2238_v12, 8.507059e+37 }
0x1f37   :  { %v2166_v45 = vadd.f32 %v2893_v48, %v2165_v49 }
0x1f39   :  { %v2170_v38 = vsel %vm2169_vm0, %v2893_v48, %v2166_v45 }
0x1f3a   :  { %v2175_v18 = vsel %vm2172_vm1, %v2174_v3, %v2170_v38  ;;  %v2897_v21 = vpop.eup %2896 }
0x1f3b   :  { %v2230_v46 = vmul.f32 %v2897_v21, %v2228_v53  ;;  %vm2235_vm2 = vweird.f32 %v2897_v21  ;;  %v2178_v19 = vmul.f32 %v2175_v18, %v3758_v24 }
0x1f3c   :  { %vm2236_vm15 = vmor %vm2234_vm3, %vm2235_vm2 }
0x1f3d   :  { %v2231_v4 = vsub.f32 1.0, %v2230_v46 }
0x1f3f   :  { %v2232_v32 = vmul.f32 %v2897_v21, %v2231_v4 }
0x1f41   :  { %v2233_v7 = vadd.f32 %v2897_v21, %v2232_v32 }
0x1f43   :  { %v2237_v20 = vsel %vm2236_vm15, %v2897_v21, %v2233_v7 }
0x1f44   :  { %v2242_v55 = vsel %vm2239_vm4, %v2241_v27, %v2237_v20 }
0x1f45   :  { %v2245_v5 = vmul.f32 %v2242_v55, %v3763_v63 }
0x1f4e   :  { %v2181_v43 = vpop.permute.xlu1 %2180 }
0x1f4f   :  { %v2183_v47 = vmul.f32 %v2181_v43, %v2175_v18 }
0x1f51   :  { %2185 = vrot.lane.b32.xlu0 %v2183_v47, %s2999_s16 }
0x1f8a   :  { %v2248_v54 = vpop.permute.xlu2 %2247 }
0x1f8b   :  { %v2250_v10 = vmul.f32 %v2248_v54, %v2242_v55 }
0x1f8d   :  { %2252 = vrot.lane.b32.xlu1 %v2250_v10, %s2999_s16 }
0x1fc3   :  { %v2186_v56 = vpop.permute.xlu0 %2185 }
0x1fc4   :  { %v3780_v36 = vadd.f32 %v2186_v56, %v2178_v19 }
0x1fc6   :  { %2898 = vtanh.f32 %v3780_v36 }
0x1fcc   :  { %v2899_v58 = vpop.eup %2898 }
0x1fcd   :  { %2191 = vrot.lane.b32.xlu2 %v2899_v58, %s2998_s4 }
0x1fff   :  { %v2253_v11 = vpop.permute.xlu1 %2252 }
0x2000   :  { %v3785_v23 = vadd.f32 %v2253_v11, %v2245_v5 }
0x2002   :  { %2900 = vtanh.f32 %v3785_v23 }
0x2008   :  { %v2901_v9 = vpop.eup %2900 }
0x2009   :  { %2258 = vrot.lane.b32.xlu0 %v2901_v9, %s2998_s4 }
0x2027   :  { %v2192_v31 = vpop.permute.xlu2 %2191 }
0x2028   :  { %v2194_v24 = vmul.f32 %v2192_v31, %v2175_v18 }
0x202a   :  { %2263 = vst [vmem:[#allocation1] ss:$4 sm:$0xff] %v2194_v24 }
0x2031   :  { %v2264_v52 = vld.sshfl [vmem:[#allocation1] sm:$0xff pattern:$0x73625140] }
0x2032   :  { %2265 = vrot.lane.b32.xlu1 %v2264_v52, %s2999_s16 }
0x207b   :  { %v2259_v51 = vpop.permute.xlu0 %2258 }
0x207c   :  { %v2261_v17 = vmul.f32 %v2259_v51, %v2242_v55 }
0x207e   :  { %2330 = vst [vmem:[#allocation1] ss:$4 sm:$0xff] %v2261_v17  ;;  %v2459_v17 = vrot.slane %v3613_v35, 2 }
0x2085   :  { %v2331_v28 = vld.sshfl [vmem:[#allocation1] sm:$0xff pattern:$0x73625140] }
0x2086   :  { %2332 = vrot.lane.b32.xlu2 %v2331_v28, %s2999_s16 }
0x20a4   :  { %v2266_v63 = vpop.permute.xlu1 %2265 }
0x20a5   :  { %2661 = vmatmul.msk.f32.vlgmr.msra.gmra.mxu0 %vm214_vm12, %v2266_v63 }
0x20e0   :  { %v2333_v25 = vpop.permute.xlu2 %2332 }
0x20e1   :  { %2663 = vmatmul.msk.f32.vlgmr.msra.gmra.mxu1 %vm214_vm12, %v2333_v25 }
0x2122   :  { %v2286_v26 = vpop.f32.mrf.mxu0 }
0x2123   :  { %v2289_v14 = vadd.f32 %v2286_v26, %v1473_v13 }
0x2125   :  { %2902 = vtanh.f32 %v2289_v14  ;;  %v2662_v34 = vmul.f32 -1.442695, %v2289_v14 }
0x212b   :  { %v2903_v30 = vpop.eup %2902 }
0x212c   :  { %2312 = vrot.lane.b32.xlu0 %v2903_v30, %s2998_s4 }
0x215e   :  { %v2353_v2 = vpop.f32.mrf.mxu1 }
0x215f   :  { %v2356_v8 = vadd.f32 %v2353_v2, %v2327_v59 }
0x2161   :  { %2904 = vtanh.f32 %v2356_v8  ;;  %v2664_v45 = vmul.f32 -1.442695, %v2356_v8 }
0x2162   :  { %2906 = vpow2.f32 %v2662_v34 }
0x2167   :  { %v2905_v1 = vpop.eup %2904 }
0x2168   :  { %2379 = vrot.lane.b32.xlu1 %v2905_v1, %s2998_s4  ;;  %v2907_v37 = vpop.eup %2906 }
0x2169   :  { %v2293_v39 = vadd.f32 1.0, %v2907_v37 }
0x216b   :  { %2908 = vrcp.f32 %v2293_v39  ;;  %v2305_v29 = vand.u32 2147483648, %v2293_v39  ;;  %vm2299_vm6 = vweird.f32 %v2293_v39  ;;  %v2303_v62 = vand.u32 2147483647, %v2293_v39 }
0x216c   :  { %2910 = vpow2.f32 %v2664_v45 }
0x216d   :  { %v2306_v48 = vor.u32 1.1754944e-38, %v2305_v29  ;;  %vm2304_vm8 = vcmp.eq.f32.partialorder %v2303_v62, 8.507059e+37 }
0x2171   :  { %v2909_v15 = vpop.eup %2908 }
0x2172   :  { %v2295_v13 = vmul.f32 %v2909_v15, %v2293_v39  ;;  %vm2300_vm5 = vweird.f32 %v2909_v15  ;;  %v2911_v57 = vpop.eup %2910 }
0x2173   :  { %vm2301_vm7 = vmor %vm2299_vm6, %vm2300_vm5  ;;  %v2360_v40 = vadd.f32 1.0, %v2911_v57 }
0x2174   :  { %v2296_v33 = vsub.f32 1.0, %v2295_v13 }
0x2175   :  { %2912 = vrcp.f32 %v2360_v40  ;;  %v2372_v41 = vand.u32 2147483648, %v2360_v40  ;;  %vm2366_vm10 = vweird.f32 %v2360_v40  ;;  %v2370_v16 = vand.u32 2147483647, %v2360_v40 }
0x2176   :  { %v2297_v42 = vmul.f32 %v2909_v15, %v2296_v33 }
0x2177   :  { %v2373_v21 = vor.u32 1.1754944e-38, %v2372_v41  ;;  %vm2371_vm13 = vcmp.eq.f32.partialorder %v2370_v16, 8.507059e+37 }
0x2178   :  { %v2298_v0 = vadd.f32 %v2909_v15, %v2297_v42 }
0x217a   :  { %v2302_v50 = vsel %vm2301_vm7, %v2909_v15, %v2298_v0  ;;  %vm2574_vm7 = vcmask 9216  }
0x217b   :  { %v2307_v44 = vsel %vm2304_vm8, %v2306_v48, %v2302_v50  ;;  %v2913_v38 = vpop.eup %2912 }
0x217c   :  { %v2362_v3 = vmul.f32 %v2913_v38, %v2360_v40  ;;  %vm2367_vm9 = vweird.f32 %v2913_v38  ;;  %v2310_v7 = vmul.f32 %v2307_v44, %v3780_v36 }
0x217d   :  { %vm2368_vm11 = vmor %vm2366_vm10, %vm2367_vm9 }
0x217e   :  { %v2363_v18 = vsub.f32 1.0, %v2362_v3 }
0x2180   :  { %v2364_v43 = vmul.f32 %v2913_v38, %v2363_v18 }
0x2182   :  { %v2365_v47 = vadd.f32 %v2913_v38, %v2364_v43 }
0x2184   :  { %v2369_v53 = vsel %vm2368_vm11, %v2913_v38, %v2365_v47 }
0x2185   :  { %v2374_v46 = vsel %vm2371_vm13, %v2373_v21, %v2369_v53 }
0x2186   :  { %v2377_v27 = vmul.f32 %v2374_v46, %v3785_v23 }
0x219e   :  { %v2313_v22 = vpop.permute.xlu0 %2312 }
0x219f   :  { %v2315_v49 = vmul.f32 %v2313_v22, %v2307_v44 }
0x21a1   :  { %2317 = vrot.lane.b32.xlu2 %v2315_v49, %s2999_s16 }
0x21da   :  { %v2380_v4 = vpop.permute.xlu1 %2379 }
0x21db   :  { %v2382_v32 = vmul.f32 %v2380_v4, %v2374_v46 }
0x21dd   :  { %2384 = vrot.lane.b32.xlu0 %v2382_v32, %s2999_s16 }
0x21fb   :  { %v2318_v6 = vpop.permute.xlu2 %2317 }
0x21fc   :  { %v3802_v12 = vadd.f32 %v2318_v6, %v2310_v7 }
0x21fe   :  { %2914 = vtanh.f32 %v3802_v12 }
0x2204   :  { %v2915_v20 = vpop.eup %2914 }
0x2205   :  { %2323 = vrot.lane.b32.xlu1 %v2915_v20, %s2998_s4  ;;  %v2545_v20 = vld [vmem:[%s3872_s9 + $0x30] sm:$0xff] }
0x224f   :  { %v2385_v54 = vpop.permute.xlu0 %2384 }
0x2250   :  { %v3807_v55 = vadd.f32 %v2385_v54, %v2377_v27  ;;  %v2544_v54 = vld [vmem:[%s3872_s9 + $0x28] sm:$0xff] }
0x2252   :  { %2916 = vtanh.f32 %v3807_v55 }
0x2258   :  { %v2917_v10 = vpop.eup %2916 }
0x2259   :  { %2390 = vrot.lane.b32.xlu2 %v2917_v10, %s2998_s4  ;;  %v2542_v10 = vld [vmem:[%s3872_s9 + $0x18] sm:$0xff] }
0x2277   :  { %v2324_v19 = vpop.permute.xlu1 %2323 }
0x2278   :  { %v2326_v56 = vmul.f32 %v2324_v19, %v2307_v44  ;;  %v2541_v19 = vld [vmem:[%s3872_s9 + $0x10] sm:$0xff] }
0x227a   :  { %2395 = vst [vmem:[#allocation1] ss:$4 sm:$0xff] %v2326_v56  ;;  %v2540_v56 = vld [vmem:[%s3872_s9 + $0x8] sm:$0xff] }
0x2281   :  { %v2396_v36 = vld.sshfl [vmem:[#allocation1] sm:$0xff pattern:$0x73625140] }
0x2282   :  { %2397 = vrot.lane.b32.xlu0 %v2396_v36, %s2999_s16  ;;  %v2539_v36 = vld [vmem:[%s3872_s9] sm:$0xff] }
0x22b3   :  { %v2391_v58 = vpop.permute.xlu2 %2390 }
0x22b4   :  { %v2393_v5 = vmul.f32 %v2391_v58, %v2374_v46 }
0x22b6   :  { %2462 = vst [vmem:[#allocation1] ss:$4 sm:$0xff] %v2393_v5 }
0x22bd   :  { %v2463_v11 = vld.sshfl [vmem:[#allocation1] sm:$0xff pattern:$0x73625140] }
0x22be   :  { %2464 = vrot.lane.b32.xlu1 %v2463_v11, %s2999_s16 }
0x22f4   :  { %v2398_v23 = vpop.permute.xlu0 %2397 }
0x22f5   :  { %2665 = vmatmul.msk.f32.vlgmr.msrb.gmra.mxu2 %vm214_vm12, %v2398_v23  ;;  %v2677_v23 = vld [vmem:[%s3873_s10] ss:$0 sm:$0xff] }
0x2330   :  { %v2465_v9 = vpop.permute.xlu1 %2464 }
0x2331   :  { %2667 = vmatmul.msk.f32.vlgmr.msrb.gmra.mxu3 %vm214_vm12, %v2465_v9 }
0x2378   :  { %v2418_v31 = vpop.f32.mrf.mxu2 }
0x2379   :  { %v2421_v24 = vadd.f32 %v2418_v31, %v1475_v61 }
0x237b   :  { %2918 = vtanh.f32 %v2421_v24  ;;  %v2666_v51 = vmul.f32 -1.442695, %v2421_v24 }
0x237d   :  { %2920 = vpow2.f32 %v2666_v51 }
0x2381   :  { %v2919_v52 = vpop.eup %2918 }
0x2382   :  { %2444 = vrot.lane.b32.xlu2 %v2919_v52, %s2998_s4 }
0x2383   :  { %v2921_v25 = vpop.eup %2920 }
0x2384   :  { %v2425_v26 = vadd.f32 1.0, %v2921_v25 }
0x2386   :  { %v2437_v8 = vand.u32 2147483648, %v2425_v26  ;;  %vm2431_vm1 = vweird.f32 %v2425_v26  ;;  %v2435_v1 = vand.u32 2147483647, %v2425_v26 }
0x2388   :  { %v2438_v34 = vor.u32 1.1754944e-38, %v2437_v8  ;;  %vm2436_vm3 = vcmp.eq.f32.partialorder %v2435_v1, 8.507059e+37 }
0x23b4   :  { %v2485_v28 = vpop.f32.mrf.mxu3 }
0x23b5   :  { %v2488_v63 = vadd.f32 %v2485_v28, %v2459_v17 }
0x23b7   :  { %2922 = vtanh.f32 %v2488_v63  ;;  %v2668_v13 = vmul.f32 -1.442695, %v2488_v63 }
0x23b8   :  { %2924 = vrcp.f32 %v2425_v26 }
0x23b9   :  { %2926 = vpow2.f32 %v2668_v13 }
0x23bd   :  { %v2923_v14 = vpop.eup %2922 }
0x23be   :  { %2511 = vrot.lane.b32.xlu0 %v2923_v14, %s2998_s4  ;;  %v2925_v30 = vpop.eup %2924 }
0x23bf   :  { %v2427_v60 = vmul.f32 %v2925_v30, %v2425_v26  ;;  %vm2432_vm0 = vweird.f32 %v2925_v30  ;;  %v2927_v33 = vpop.eup %2926 }
0x23c0   :  { %vm2433_vm2 = vmor %vm2431_vm1, %vm2432_vm0  ;;  %v2492_v42 = vadd.f32 1.0, %v2927_v33 }
0x23c1   :  { %v2428_v61 = vsub.f32 1.0, %v2427_v60 }
0x23c2   :  { %2928 = vrcp.f32 %v2492_v42  ;;  %v2504_v22 = vand.u32 2147483648, %v2492_v42  ;;  %vm2498_vm4 = vweird.f32 %v2492_v42  ;;  %v2502_v44 = vand.u32 2147483647, %v2492_v42 }
0x23c3   :  { %v2429_v59 = vmul.f32 %v2925_v30, %v2428_v61 }
0x23c4   :  { %v2505_v45 = vor.u32 1.1754944e-38, %v2504_v22  ;;  %vm2503_vm6 = vcmp.eq.f32.partialorder %v2502_v44, 8.507059e+37 }
0x23c5   :  { %v2430_v2 = vadd.f32 %v2925_v30, %v2429_v59 }
0x23c7   :  { %v2434_v35 = vsel %vm2433_vm2, %v2925_v30, %v2430_v2 }
0x23c8   :  { %v2439_v39 = vsel %vm2436_vm3, %v2438_v34, %v2434_v35  ;;  %v2929_v0 = vpop.eup %2928 }
0x23c9   :  { %v2494_v29 = vmul.f32 %v2929_v0, %v2492_v42  ;;  %vm2499_vm15 = vweird.f32 %v2929_v0  ;;  %v2442_v3 = vmul.f32 %v2439_v39, %v3802_v12  ;;  %v2546_v12 = vld [vmem:[%s3872_s9 + $0x38] sm:$0xff] }
0x23ca   :  { %vm2500_vm5 = vmor %vm2498_vm4, %vm2499_vm15  ;;  %2562 = vmatpush.msrb.mxu0 %v2546_v12 }
0x23cb   :  { %v2495_v62 = vsub.f32 1.0, %v2494_v29 }
0x23cc   :  { %2563 = vmatpush.msrb.mxu0 %v2545_v20 }
0x23cd   :  { %v2496_v50 = vmul.f32 %v2929_v0, %v2495_v62 }
0x23ce   :  { %2564 = vmatpush.msrb.mxu0 %v2544_v54 }
0x23cf   :  { %v2497_v48 = vadd.f32 %v2929_v0, %v2496_v50 }
0x23d1   :  { %v2501_v49 = vsel %vm2500_vm5, %v2929_v0, %v2497_v48 }
0x23d2   :  { %v2506_v40 = vsel %vm2503_vm6, %v2505_v45, %v2501_v49 }
0x23d3   :  { %v2509_v41 = vmul.f32 %v2506_v40, %v3807_v55  ;;  %v2543_v55 = vld [vmem:[%s3872_s9 + $0x20] sm:$0xff]  ;;  %s3000_s9 = smov [#allocation5]  }
0x23d4   :  { %2565 = vmatpush.msrb.mxu0 %v2543_v55  ;;  %s2593_s6 = sshll.u32 %s3000_s9, 4  ;;  %s2594_s6 = int_to_ptr.vmem [resolvable:$true] %s2593_s6 }
0x23d6   :  { %2566 = vmatpush.msrb.mxu0 %v2542_v10 }
0x23d8   :  { %2567 = vmatpush.msrb.mxu0 %v2541_v19 }
0x23da   :  { %2568 = vmatpush.msrb.mxu0 %v2540_v56 }
0x23dc   :  { %v2445_v37 = vpop.permute.xlu2 %2444  ;;  %2569 = vmatpush.msrb.mxu0 %v2539_v36 }
0x23dd   :  { %v2447_v15 = vmul.f32 %v2445_v37, %v2439_v39 }
0x23df   :  { %2449 = vrot.lane.b32.xlu1 %v2447_v15, %s2999_s16 }
0x2430   :  { %v2512_v57 = vpop.permute.xlu0 %2511 }
0x2431   :  { %v2514_v38 = vmul.f32 %v2512_v57, %v2506_v40 }
0x2433   :  { %2516 = vrot.lane.b32.xlu2 %v2514_v38, %s2999_s16 }
0x2451   :  { %v2450_v18 = vpop.permute.xlu1 %2449 }
0x2452   :  { %v2452_v43 = vadd.f32 %v2450_v18, %v2442_v3 }
0x2454   :  { %2930 = vtanh.f32 %v2452_v43 }
0x245a   :  { %v2931_v47 = vpop.eup %2930 }
0x245b   :  { %2455 = vrot.lane.b32.xlu0 %v2931_v47, %s2998_s4 }
0x248d   :  { %v2517_v16 = vpop.permute.xlu2 %2516 }
0x248e   :  { %v2519_v53 = vadd.f32 %v2517_v16, %v2509_v41 }
0x2490   :  { %2932 = vtanh.f32 %v2519_v53 }
0x2496   :  { %v2933_v21 = vpop.eup %2932 }
0x2497   :  { %2522 = vrot.lane.b32.xlu1 %v2933_v21, %s2998_s4 }
0x24cd   :  { %v2456_v46 = vpop.permute.xlu0 %2455 }
0x24ce   :  { %v2458_v4 = vmul.f32 %v2456_v46, %v2439_v39 }
0x24d0   :  { %2527 = vst [vmem:[#allocation1] ss:$4 sm:$0xff] %v2458_v4 }
0x24d7   :  { %v2528_v32 = vld.sshfl [vmem:[#allocation1] sm:$0xff pattern:$0x73625140] }
0x24d8   :  { %2529 = vrot.lane.b32.xlu2 %v2528_v32, %s2999_s16 }
0x2509   :  { %v2523_v7 = vpop.permute.xlu1 %2522 }
0x250a   :  { %v2525_v6 = vmul.f32 %v2523_v7, %v2506_v40 }
0x250c   :  { %2533 = vst [vmem:[#allocation1] ss:$4 sm:$0xff] %v2525_v6 }
0x2513   :  { %v2534_v27 = vld.sshfl [vmem:[#allocation1] sm:$0xff pattern:$0x73625140] }
0x2514   :  { %2535 = vrot.lane.b32.xlu0 %v2534_v27, %s2998_s4 }
0x2532   :  { %v2530_v58 = vpop.permute.xlu2 %2529 }
0x2586   :  { %v2536_v5 = vpop.permute.xlu0 %2535 }
0x2587   :  { %v2538_v11 = vsel %vm214_vm12, %v2530_v58, %v2536_v5 }
0x2588   :  { %2669 = vmatmul.msk.f32.vlgmr.msrb.gmra.mxu0 %vm1405_vm14, %v2538_v11 }
0x2605   :  { %v2571_v9 = vpop.f32.mrf.mxu0 }
0x2606   :  { %v2572_v31 = vadd.f32 %v2677_v23, %v2571_v9 }
0x2608   :  { %v2575_v24 = vsel %vm2574_vm7, %v2572_v31, -inf }
0x2609   :  { %2576 = vmax.xlane.f32.xlu1 %v2575_v24 }
0x267c   :  { %v2577_v52 = vpop.xlane.xlu1 %2576 }
0x267d   :  { %v2578_v51 = vsub.f32 %v2572_v31, %v2577_v52 }
0x267f   :  { %v2579_v17 = vmul.f32 1.442695, %v2578_v51 }
0x2681   :  { %2934 = vpow2.f32 %v2579_v17 }
0x2687   :  { %v2935_v28 = vpop.eup %2934 }
0x2688   :  { %v2581_v63 = vsel %vm2574_vm7, %v2935_v28, 0.0 }
0x2689   :  { %2582 = vadd.xlane.f32.xlu2 %v2581_v63 }
0x26fc   :  { %v2583_v25 = vpop.xlane.xlu2 %2582 }
0x26fd   :  { %2936 = vlog2.f32 %v2583_v25 }
0x2703   :  { %v2937_v26 = vpop.eup %2936 }
0x2704   :  { %v2585_v14 = vmul.f32 0.6931472, %v2937_v26 }
0x2706   :  { %v2586_v30 = vsub.f32 %v2578_v51, %v2585_v14 }
0x2708   :  { %2587 = vst.msk [vmem:[#allocation5] sm:$0x3] %vm2574_vm7, %v2586_v30 }
0x2709   :  { %2598 = dma.vmem_to_hbm [thread:$0]  %s2594_s6, 32, %s2596_s20, [#allocation4]  }
0x270a   :  { %2992 = dma.done.wait [#allocation4], 32  }
0x270b   :  { %2993 = vsyncadd [#allocation4], 4294967264 }
0x270c   :  { %2603 = vsyncpa [#allocation3], 1 }
0x270d   :  { %2604 = vsyncpa [#allocation4], 1 }

</bundles_post_ra>
